<compile_context>
chip_gen: v5e
topology: v5e:2x2
jax: 0.10.0
libtpu: 0.0.40
codegen_flags: <defaults>
</compile_context>

<pallas_src>
import functools

import jax
import jax.numpy as jnp
import numpy as np
from jax.experimental import pallas as pl
from jax.experimental.pallas import tpu as pltpu

EPS = 1e-5  # LayerNorm eps


# ----------------------------- in-kernel helpers -----------------------------

def _ln(x, g, b):
    mu = jnp.mean(x, axis=-1, keepdims=True)
    var = jnp.mean(jnp.square(x - mu), axis=-1, keepdims=True)
    return (x - mu) * jax.lax.rsqrt(var + EPS) * g + b


# ------------------------------ fused decoder kernel ------------------------------

def decoder_kernel(
    # per-batch-block inputs (constant along the layer grid axis)
    tgt_ref, enc_ref, tbias_ref, sbias_ref,
    # self-attn per-layer weights (layer axis streamed by the grid)
    sa_lng, sa_lnb, sa_wqkv, sa_bqkv, sa_wo, sa_bo,
    # cross-attn per-layer weights
    ca_lng, ca_lnb, ca_wq, ca_bq, ca_wkv, ca_bkv, ca_wo, ca_bo,
    # FFN per-layer weights
    ff_lng, ff_lnb, ff_w1, ff_b1, ff_w2, ff_b2,
    # final LayerNorm (shared)
    fin_g, fin_b,
    # output + scratch
    o_ref, x_acc, head_acc,
    *, n_heads):
    l = pl.program_id(1)
    n_layer = pl.num_programs(1)

    @pl.when(l == 0)
    def _():
        x_acc[...] = tgt_ref[...].astype(jnp.float32)

    x = x_acc[...]                       # (Bb, T, D) f32 residual stream
    Bb, T, D = x.shape
    enc = enc_ref[...]                   # (Bb, S, D) bf16 (cast once in wrapper)
    S = enc.shape[1]

    def project(x2d_bf16, w_ref, b_ref):
        # (rows, D) bf16 @ (D, N) bf16 -> f32 accumulate, + f32 bias
        return jnp.dot(x2d_bf16, w_ref[...],
                       preferred_element_type=jnp.float32) + b_ref[...]

    def attend(q, k, v_bf, bias):
        """q:(Bb,T,D) f32, k:(Bb,S',D) f32, v_bf:(Bb,S',D) bf16, bias:(Bb,T,S') f32.
        Writes per-head outputs into head_acc (Bb,T,D) f32 at lane offsets."""
        dk = D // n_heads
        scale = 1.0 / float(dk) ** 0.5
        for h in range(n_heads):
            sl = slice(h * dk, (h + 1) * dk)
            s = jnp.einsum("bqd,bkd->bqk",
                           q[:, :, sl].astype(jnp.bfloat16),
                           k[:, :, sl].astype(jnp.bfloat16),
                           preferred_element_type=jnp.float32) * scale + bias
            s = s - jnp.max(s, axis=-1, keepdims=True)
            p = jnp.exp(s)
            p = p * pl.reciprocal(jnp.sum(p, axis=-1, keepdims=True), approx=True)
            head_acc[:, :, sl] = jnp.einsum(
                "bqk,bkd->bqd", p.astype(jnp.bfloat16), v_bf[:, :, sl],
                preferred_element_type=jnp.float32)

    # ---- self attention (pre-LN + residual), fused QKV projection ----
    xn = _ln(x, sa_lng[...], sa_lnb[...]).reshape(Bb * T, D).astype(jnp.bfloat16)
    qkv = project(xn, sa_wqkv, sa_bqkv)                      # (Bb*T, 3D) f32
    q = qkv[:, 0 * D:1 * D].reshape(Bb, T, D)
    k = qkv[:, 1 * D:2 * D].reshape(Bb, T, D)
    v = qkv[:, 2 * D:3 * D].reshape(Bb, T, D).astype(jnp.bfloat16)
    attend(q, k, v, tbias_ref[...])
    att = project(head_acc[...].astype(jnp.bfloat16).reshape(Bb * T, D), sa_wo, sa_bo)
    x = x + att.reshape(Bb, T, D)

    # ---- cross attention (pre-LN + residual), fused KV projection ----
    xn = _ln(x, ca_lng[...], ca_lnb[...]).reshape(Bb * T, D).astype(jnp.bfloat16)
    q = project(xn, ca_wq, ca_bq).reshape(Bb, T, D)
    kv = project(enc.reshape(Bb * S, D), ca_wkv, ca_bkv)     # (Bb*S, 2D) f32
    k = kv[:, 0 * D:1 * D].reshape(Bb, S, D)
    v = kv[:, 1 * D:2 * D].reshape(Bb, S, D).astype(jnp.bfloat16)
    attend(q, k, v, sbias_ref[...])
    att = project(head_acc[...].astype(jnp.bfloat16).reshape(Bb * T, D), ca_wo, ca_bo)
    x = x + att.reshape(Bb, T, D)

    # ---- feed-forward (pre-LN + residual) ----
    xn = _ln(x, ff_lng[...], ff_lnb[...]).reshape(Bb * T, D).astype(jnp.bfloat16)
    h = jnp.maximum(project(xn, ff_w1, ff_b1), 0.0).astype(jnp.bfloat16)
    y = project(h, ff_w2, ff_b2)
    x = x + y.reshape(Bb, T, D)

    x_acc[...] = x

    @pl.when(l == n_layer - 1)
    def _():
        o_ref[...] = _ln(x, fin_g[...], fin_b[...]).astype(o_ref.dtype)


# --------------------------------- wrapper ---------------------------------

def decoder_forward(tgt, encoder_out, tgt_mask, src_tgt_mask, params, *, n_heads,
                    batch_block=None):
    B, T, D = tgt.shape
    S = encoder_out.shape[1]
    L = len(params["layers"])
    F = params["layers"][0]["ffn"]["w1"].shape[1]
    assert D % n_heads == 0

    bblk = B if batch_block is None else batch_block
    assert B % bblk == 0
    nb = B // bblk      # keep this small (<=2 for megacore) so weights stream ~once

    w_dt = jnp.bfloat16

    def stack(fn):
        return jnp.stack([fn(lp) for lp in params["layers"]], axis=0)

    # self-attention: fuse Wq/Wk/Wv -> [D, 3D]
    sa_lng = stack(lambda p: p["self_attn"]["ln_g"])
    sa_lnb = stack(lambda p: p["self_attn"]["ln_b"])
    sa_wqkv = stack(lambda p: jnp.concatenate(
        [p["self_attn"]["wq"], p["self_attn"]["wk"], p["self_attn"]["wv"]],
        axis=1).astype(w_dt))
    sa_bqkv = stack(lambda p: jnp.concatenate(
        [p["self_attn"]["bq"], p["self_attn"]["bk"], p["self_attn"]["bv"]], axis=1))
    sa_wo = stack(lambda p: p["self_attn"]["wo"].astype(w_dt))
    sa_bo = stack(lambda p: p["self_attn"]["bo"])

    # cross-attention: fuse Wk/Wv -> [D, 2D]
    ca_lng = stack(lambda p: p["cross_attn"]["ln_g"])
    ca_lnb = stack(lambda p: p["cross_attn"]["ln_b"])
    ca_wq = stack(lambda p: p["cross_attn"]["wq"].astype(w_dt))
    ca_bq = stack(lambda p: p["cross_attn"]["bq"])
    ca_wkv = stack(lambda p: jnp.concatenate(
        [p["cross_attn"]["wk"], p["cross_attn"]["wv"]], axis=1).astype(w_dt))
    ca_bkv = stack(lambda p: jnp.concatenate(
        [p["cross_attn"]["bk"], p["cross_attn"]["bv"]], axis=1))
    ca_wo = stack(lambda p: p["cross_attn"]["wo"].astype(w_dt))
    ca_bo = stack(lambda p: p["cross_attn"]["bo"])

    # FFN
    ff_lng = stack(lambda p: p["ffn"]["ln_g"])
    ff_lnb = stack(lambda p: p["ffn"]["ln_b"])
    ff_w1 = stack(lambda p: p["ffn"]["w1"].astype(w_dt))
    ff_b1 = stack(lambda p: p["ffn"]["b1"])
    ff_w2 = stack(lambda p: p["ffn"]["w2"].astype(w_dt))
    ff_b2 = stack(lambda p: p["ffn"]["b2"])

    weights = [sa_lng, sa_lnb, sa_wqkv, sa_bqkv, sa_wo, sa_bo,
               ca_lng, ca_lnb, ca_wq, ca_bq, ca_wkv, ca_bkv, ca_wo, ca_bo,
               ff_lng, ff_lnb, ff_w1, ff_b1, ff_w2, ff_b2]

    # Additive score biases computed once (no per-layer '== 0' compares in-kernel);
    # encoder output pre-cast to bf16 (no per-layer astype, feeds MXU directly).
    tbias = jnp.where(tgt_mask == 0, -1e9, 0.0).astype(jnp.float32)
    sbias = jnp.where(src_tgt_mask == 0, -1e9, 0.0).astype(jnp.float32)
    enc_bf = encoder_out.astype(jnp.bfloat16)

    def per_batch(arr):      # one batch block per grid step b (constant over l)
        return pl.BlockSpec((bblk,) + arr.shape[1:], lambda b, l: (b, 0, 0))

    def per_layer(arr):      # one layer slice per grid step l (constant over b)
        return pl.BlockSpec((None,) + arr.shape[1:], lambda b, l: (l, 0, 0))

    def shared(arr):         # shared small 2-D params
        return pl.BlockSpec(arr.shape, lambda b, l: (0, 0))

    in_specs = ([per_batch(tgt), per_batch(enc_bf), per_batch(tbias), per_batch(sbias)]
                + [per_layer(w) for w in weights]
                + [shared(params["final_ln_g"]), shared(params["final_ln_b"])])

    # Advisory cost estimate for the fused stack.
    flops_layer = (2 * T * D * 3 * D + 4 * T * T * D + 2 * T * D * D          # self
                   + 2 * T * D * D + 2 * S * D * 2 * D + 4 * T * S * D
                   + 2 * T * D * D                                            # cross
                   + 4 * T * D * F)                                           # ffn
    weight_bytes = sum(int(w.size) * w.dtype.itemsize for w in weights)
    act_bytes = (tgt.size * tgt.dtype.itemsize + enc_bf.size * 2
                 + tbias.size * 4 + sbias.size * 4 + B * T * D * 4)
    cost = pl.CostEstimate(
        flops=int(B * L * flops_layer),
        transcendentals=int(B * L * n_heads * (T * T + T * S)),
        bytes_accessed=int(nb * weight_bytes + act_bytes))

    kernel = functools.partial(decoder_kernel, n_heads=n_heads)

    return pl.pallas_call(
        kernel,
        out_shape=jax.ShapeDtypeStruct((B, T, D), tgt.dtype),
        grid=(nb, L),
        in_specs=in_specs,
        out_specs=pl.BlockSpec((bblk, T, D), lambda b, l: (b, 0, 0)),
        scratch_shapes=[pltpu.VMEM((bblk, T, D), jnp.float32),   # residual stream
                        pltpu.VMEM((bblk, T, D), jnp.float32)],  # per-head attn out
        compiler_params=pltpu.CompilerParams(
            dimension_semantics=("parallel", "arbitrary"),
            # above the 16/32 MiB scoped defaults, below v7x's 64 MiB physical;
            # for realistic D/F also keep bf16 weights so double-buffered layer
            # blocks fit this budget.
            vmem_limit_bytes=48 * 1024 * 1024),
        cost_estimate=cost,
    )(tgt, enc_bf, tbias, sbias, *weights,
      params["final_ln_g"], params["final_ln_b"])


# ------------------------- pure-JAX reference model -------------------------

def _ref_ln(x, g, b):
    mu = jnp.mean(x, axis=-1, keepdims=True)
    var = jnp.mean(jnp.square(x - mu), axis=-1, keepdims=True)
    return (x - mu) * jax.lax.rsqrt(var + EPS) * g + b


def _ref_mha(q_in, kv_in, mask, p, n_heads):
    B, T, D = q_in.shape
    S = kv_in.shape[1]
    dk = D // n_heads
    q = q_in @ p["wq"] + p["bq"]
    k = kv_in @ p["wk"] + p["bk"]
    v = kv_in @ p["wv"] + p["bv"]
    q = q.reshape(B, T, n_heads, dk).transpose(0, 2, 1, 3)
    k = k.reshape(B, S, n_heads, dk).transpose(0, 2, 1, 3)
    v = v.reshape(B, S, n_heads, dk).transpose(0, 2, 1, 3)
    s = jnp.einsum("bhtd,bhsd->bhts", q, k) / (dk ** 0.5)
    s = jnp.where(mask[:, None, :, :] == 0, -1e9, s)
    a = jax.nn.softmax(s, axis=-1)
    o = jnp.einsum("bhts,bhsd->bhtd", a, v).transpose(0, 2, 1, 3).reshape(B, T, D)
    return o @ p["wo"] + p["bo"]


def decoder_reference(tgt, encoder_out, tgt_mask, src_tgt_mask, params, *, n_heads):
    out = tgt
    for lp in params["layers"]:
        pa = lp["self_attn"]
        xn = _ref_ln(out, pa["ln_g"], pa["ln_b"])
        out = out + _ref_mha(xn, xn, tgt_mask, pa, n_heads)
        pc = lp["cross_attn"]
        xn = _ref_ln(out, pc["ln_g"], pc["ln_b"])
        out = out + _ref_mha(xn, encoder_out, src_tgt_mask, pc, n_heads)
        pf = lp["ffn"]
        xn = _ref_ln(out, pf["ln_g"], pf["ln_b"])
        h = jnp.maximum(xn @ pf["w1"] + pf["b1"], 0.0)
        out = out + h @ pf["w2"] + pf["b2"]
    return _ref_ln(out, params["final_ln_g"], params["final_ln_b"])


# ------------------------------- param init --------------------------------

def init_params(key, n_layer, d_model, d_ff):
    def dense(k, fan_in, fan_out):
        return 0.05 * jax.random.normal(k, (fan_in, fan_out), jnp.float32)

    layers = []
    for _ in range(n_layer):
        keys = jax.random.split(key, 7)
        key = keys[0]

        def attn_params(k):
            ks = jax.random.split(k, 4)
            return {
                "ln_g": jnp.ones((1, d_model), jnp.float32),
                "ln_b": jnp.zeros((1, d_model), jnp.float32),
                "wq": dense(ks[0], d_model, d_model),
                "bq": jnp.zeros((1, d_model), jnp.float32),
                "wk": dense(ks[1], d_model, d_model),
                "bk": jnp.zeros((1, d_model), jnp.float32),
                "wv": dense(ks[2], d_model, d_model),
                "bv": jnp.zeros((1, d_model), jnp.float32),
                "wo": dense(ks[3], d_model, d_model),
                "bo": jnp.zeros((1, d_model), jnp.float32),
            }

        ffn = {
            "ln_g": jnp.ones((1, d_model), jnp.float32),
            "ln_b": jnp.zeros((1, d_model), jnp.float32),
            "w1": dense(keys[3], d_model, d_ff),
            "b1": jnp.zeros((1, d_ff), jnp.float32),
            "w2": dense(keys[4], d_ff, d_model),
            "b2": jnp.zeros((1, d_model), jnp.float32),
        }
        layers.append({"self_attn": attn_params(keys[1]),
                       "cross_attn": attn_params(keys[2]),
                       "ffn": ffn})
    return {
        "layers": layers,
        "final_ln_g": jnp.ones((1, d_model), jnp.float32),
        "final_ln_b": jnp.zeros((1, d_model), jnp.float32),
    }


# ----------------------------------- main -----------------------------------

if __name__ == "__main__":
    B, T, S, D, H, F, N_LAYER = 2, 8, 8, 32, 4, 64, 2

    root = jax.random.PRNGKey(0)
    k_tgt, k_enc, k_par = jax.random.split(root, 3)

    tgt = jax.random.normal(k_tgt, (B, T, D), jnp.float32)
    encoder_out = jax.random.normal(k_enc, (B, S, D), jnp.float32)

    # causal self-attention mask (1 = attend, 0 = masked)
    tgt_mask = jnp.broadcast_to(
        jnp.tril(jnp.ones((T, T), jnp.int32)), (B, T, T)).astype(jnp.int32)
    # cross-attention pad mask: batch 1 has last 2 encoder positions padded
    src_valid = jnp.array([[1] * S, [1] * (S - 2) + [0] * 2], jnp.int32)
    src_tgt_mask = jnp.broadcast_to(src_valid[:, None, :], (B, T, S)).astype(jnp.int32)

    params = init_params(k_par, N_LAYER, D, F)

    out = decoder_forward(tgt, encoder_out, tgt_mask, src_tgt_mask, params,
                          n_heads=H)
    out = jax.block_until_ready(out)

    ref = decoder_reference(tgt, encoder_out, tgt_mask, src_tgt_mask, params,
                            n_heads=H)
    # bf16 matmul operands + approx softmax reciprocal -> looser tolerance vs f32 ref
    np.testing.assert_allclose(np.asarray(out), np.asarray(ref),
                               rtol=3e-2, atol=3e-2)

    print("KERNEL_OK")
</pallas_src>

<mosaic_0001>
module attributes {stable_mosaic.version = 11 : i64} {
  func.func @decoder_kernel(%arg0: i32, %arg1: i32, %arg2: memref<2x8x32xf32, #tpu.memory_space<vmem>>, %arg3: memref<2x8x32xbf16, #tpu.memory_space<vmem>>, %arg4: memref<2x8x8xf32, #tpu.memory_space<vmem>>, %arg5: memref<2x8x8xf32, #tpu.memory_space<vmem>>, %arg6: memref<1x1x32xf32, #tpu.memory_space<vmem>>, %arg7: memref<1x1x32xf32, #tpu.memory_space<vmem>>, %arg8: memref<1x32x96xbf16, #tpu.memory_space<vmem>>, %arg9: memref<1x1x96xf32, #tpu.memory_space<vmem>>, %arg10: memref<1x32x32xbf16, #tpu.memory_space<vmem>>, %arg11: memref<1x1x32xf32, #tpu.memory_space<vmem>>, %arg12: memref<1x1x32xf32, #tpu.memory_space<vmem>>, %arg13: memref<1x1x32xf32, #tpu.memory_space<vmem>>, %arg14: memref<1x32x32xbf16, #tpu.memory_space<vmem>>, %arg15: memref<1x1x32xf32, #tpu.memory_space<vmem>>, %arg16: memref<1x32x64xbf16, #tpu.memory_space<vmem>>, %arg17: memref<1x1x64xf32, #tpu.memory_space<vmem>>, %arg18: memref<1x32x32xbf16, #tpu.memory_space<vmem>>, %arg19: memref<1x1x32xf32, #tpu.memory_space<vmem>>, %arg20: memref<1x1x32xf32, #tpu.memory_space<vmem>>, %arg21: memref<1x1x32xf32, #tpu.memory_space<vmem>>, %arg22: memref<1x32x64xbf16, #tpu.memory_space<vmem>>, %arg23: memref<1x1x64xf32, #tpu.memory_space<vmem>>, %arg24: memref<1x64x32xbf16, #tpu.memory_space<vmem>>, %arg25: memref<1x1x32xf32, #tpu.memory_space<vmem>>, %arg26: memref<1x32xf32, #tpu.memory_space<vmem>>, %arg27: memref<1x32xf32, #tpu.memory_space<vmem>>, %arg28: memref<2x8x32xf32, #tpu.memory_space<vmem>>, %arg29: memref<2x8x32xf32, #tpu.memory_space<vmem>>, %arg30: memref<2x8x32xf32, #tpu.memory_space<vmem>>) attributes {dimension_semantics = [#tpu.dimension_semantics<parallel>, #tpu.dimension_semantics<arbitrary>], iteration_bounds = array<i64: 1, 2>, scalar_prefetch = 0 : i64, scratch_operands = 2 : i64, tpu.core_type = #tpu.core_type<tc>, window_params = [{transform_indices = @transform_0, window_bounds = array<i64: 2, 8, 32>}, {transform_indices = @transform_1, window_bounds = array<i64: 2, 8, 32>}, {transform_indices = @transform_2, window_bounds = array<i64: 2, 8, 8>}, {transform_indices = @transform_3, window_bounds = array<i64: 2, 8, 8>}, {transform_indices = @transform_4, window_bounds = array<i64: 1, 1, 32>}, {transform_indices = @transform_5, window_bounds = array<i64: 1, 1, 32>}, {transform_indices = @transform_6, window_bounds = array<i64: 1, 32, 96>}, {transform_indices = @transform_7, window_bounds = array<i64: 1, 1, 96>}, {transform_indices = @transform_8, window_bounds = array<i64: 1, 32, 32>}, {transform_indices = @transform_9, window_bounds = array<i64: 1, 1, 32>}, {transform_indices = @transform_10, window_bounds = array<i64: 1, 1, 32>}, {transform_indices = @transform_11, window_bounds = array<i64: 1, 1, 32>}, {transform_indices = @transform_12, window_bounds = array<i64: 1, 32, 32>}, {transform_indices = @transform_13, window_bounds = array<i64: 1, 1, 32>}, {transform_indices = @transform_14, window_bounds = array<i64: 1, 32, 64>}, {transform_indices = @transform_15, window_bounds = array<i64: 1, 1, 64>}, {transform_indices = @transform_16, window_bounds = array<i64: 1, 32, 32>}, {transform_indices = @transform_17, window_bounds = array<i64: 1, 1, 32>}, {transform_indices = @transform_18, window_bounds = array<i64: 1, 1, 32>}, {transform_indices = @transform_19, window_bounds = array<i64: 1, 1, 32>}, {transform_indices = @transform_20, window_bounds = array<i64: 1, 32, 64>}, {transform_indices = @transform_21, window_bounds = array<i64: 1, 1, 64>}, {transform_indices = @transform_22, window_bounds = array<i64: 1, 64, 32>}, {transform_indices = @transform_23, window_bounds = array<i64: 1, 1, 32>}, {pipeline_mode = #tpu.pipeline_mode<synchronous>, transform_indices = @transform_24, window_bounds = array<i64: 1, 32>}, {pipeline_mode = #tpu.pipeline_mode<synchronous>, transform_indices = @transform_25, window_bounds = array<i64: 1, 32>}, {transform_indices = @transform_26, window_bounds = array<i64: 2, 8, 32>}]} {
    %c0_i32 = arith.constant 0 : i32
    %0 = arith.cmpi eq, %arg1, %c0_i32 : i32
    %1 = arith.extui %0 : i1 to i32
    %c0_i32_0 = arith.constant 0 : i32
    %2 = arith.cmpi ne, %1, %c0_i32_0 : i32
    scf.if %2 {
      %c0_165 = arith.constant 0 : index
      %c0_166 = arith.constant 0 : index
      %c0_167 = arith.constant 0 : index
      %355 = vector.load %arg2[%c0_165, %c0_166, %c0_167] : memref<2x8x32xf32, #tpu.memory_space<vmem>>, vector<2x8x32xf32>
      %c0_168 = arith.constant 0 : index
      %c0_169 = arith.constant 0 : index
      %c0_170 = arith.constant 0 : index
      %356 = vector.load %arg29[%c0_168, %c0_169, %c0_170] : memref<2x8x32xf32, #tpu.memory_space<vmem>>, vector<2x8x32xf32>
      tpu.vector_store %arg29[%c0_168, %c0_169, %c0_170], %355 {strides = array<i32>} : memref<2x8x32xf32, #tpu.memory_space<vmem>>, vector<2x8x32xf32>,
    } else {
    }
    %c0 = arith.constant 0 : index
    %c0_1 = arith.constant 0 : index
    %c0_2 = arith.constant 0 : index
    %3 = vector.load %arg29[%c0, %c0_1, %c0_2] : memref<2x8x32xf32, #tpu.memory_space<vmem>>, vector<2x8x32xf32>
    %c0_3 = arith.constant 0 : index
    %c0_4 = arith.constant 0 : index
    %c0_5 = arith.constant 0 : index
    %4 = vector.load %arg3[%c0_3, %c0_4, %c0_5] : memref<2x8x32xbf16, #tpu.memory_space<vmem>>, vector<2x8x32xbf16>
    %c0_6 = arith.constant 0 : index
    %c0_7 = arith.constant 0 : index
    %c0_8 = arith.constant 0 : index
    %5 = vector.load %arg6[%c0_6, %c0_7, %c0_8] : memref<1x1x32xf32, #tpu.memory_space<vmem>>, vector<1x1x32xf32>
    %6 = vector.shape_cast %5 : vector<1x1x32xf32> to vector<1x32xf32>
    %c0_9 = arith.constant 0 : index
    %c0_10 = arith.constant 0 : index
    %c0_11 = arith.constant 0 : index
    %7 = vector.load %arg7[%c0_9, %c0_10, %c0_11] : memref<1x1x32xf32, #tpu.memory_space<vmem>>, vector<1x1x32xf32>
    %8 = vector.shape_cast %7 : vector<1x1x32xf32> to vector<1x32xf32>
    %cst = arith.constant dense<0.000000e+00> : vector<2x8xf32>
    %9 = vector.multi_reduction <add>, %3, %cst [2] : vector<2x8x32xf32> to vector<2x8xf32>
    %10 = vector.shape_cast %9 : vector<2x8xf32> to vector<2x8x1xf32>
    %cst_12 = arith.constant 3.200000e+01 : f32
    %11 = vector.broadcast %cst_12 : f32 to vector<2x8x1xf32>
    %12 = arith.divf %10, %11 : vector<2x8x1xf32>
    %13 = vector.broadcast %12 : vector<2x8x1xf32> to vector<2x8x32xf32>
    %14 = arith.subf %3, %13 : vector<2x8x32xf32>
    %15 = arith.mulf %14, %14 : vector<2x8x32xf32>
    %cst_13 = arith.constant dense<0.000000e+00> : vector<2x8xf32>
    %16 = vector.multi_reduction <add>, %15, %cst_13 [2] : vector<2x8x32xf32> to vector<2x8xf32>
    %17 = vector.shape_cast %16 : vector<2x8xf32> to vector<2x8x1xf32>
    %cst_14 = arith.constant 3.200000e+01 : f32
    %18 = vector.broadcast %cst_14 : f32 to vector<2x8x1xf32>
    %19 = arith.divf %17, %18 : vector<2x8x1xf32>
    %20 = vector.broadcast %12 : vector<2x8x1xf32> to vector<2x8x32xf32>
    %21 = arith.subf %3, %20 : vector<2x8x32xf32>
    %cst_15 = arith.constant 9.99999974E-6 : f32
    %22 = vector.broadcast %cst_15 : f32 to vector<2x8x1xf32>
    %23 = arith.addf %19, %22 : vector<2x8x1xf32>
    %24 = math.rsqrt %23 : vector<2x8x1xf32>
    %25 = vector.broadcast %24 : vector<2x8x1xf32> to vector<2x8x32xf32>
    %26 = arith.mulf %21, %25 : vector<2x8x32xf32>
    %27 = vector.shape_cast %6 : vector<1x32xf32> to vector<1x1x32xf32>
    %28 = vector.broadcast %27 : vector<1x1x32xf32> to vector<2x8x32xf32>
    %29 = arith.mulf %26, %28 : vector<2x8x32xf32>
    %30 = vector.shape_cast %8 : vector<1x32xf32> to vector<1x1x32xf32>
    %31 = vector.broadcast %30 : vector<1x1x32xf32> to vector<2x8x32xf32>
    %32 = arith.addf %29, %31 : vector<2x8x32xf32>
    %33 = vector.shape_cast %32 : vector<2x8x32xf32> to vector<16x32xf32>
    %34 = arith.truncf %33 : vector<16x32xf32> to vector<16x32xbf16>
    %c0_16 = arith.constant 0 : index
    %c0_17 = arith.constant 0 : index
    %c0_18 = arith.constant 0 : index
    %35 = vector.load %arg8[%c0_16, %c0_17, %c0_18] : memref<1x32x96xbf16, #tpu.memory_space<vmem>>, vector<1x32x96xbf16>
    %36 = vector.shape_cast %35 : vector<1x32x96xbf16> to vector<32x96xbf16>
    %cst_19 = arith.constant dense<0.000000e+00> : vector<16x96xf32>
    %37 = tpu.matmul %34, %36, %cst_19 {dimension_numbers = #tpu.dot_dimension_numbers<[1], [0], [0], [1], [0, 0, 1, 1], [], []>} : vector<16x32xbf16>, vector<32x96xbf16>, vector<16x96xf32> -> vector<16x96xf32>
    %c0_20 = arith.constant 0 : index
    %c0_21 = arith.constant 0 : index
    %c0_22 = arith.constant 0 : index
    %38 = vector.load %arg9[%c0_20, %c0_21, %c0_22] : memref<1x1x96xf32, #tpu.memory_space<vmem>>, vector<1x1x96xf32>
    %39 = vector.shape_cast %38 : vector<1x1x96xf32> to vector<1x96xf32>
    %40 = vector.broadcast %39 : vector<1x96xf32> to vector<16x96xf32>
    %41 = arith.addf %37, %40 : vector<16x96xf32>
    %42 = vector.extract_strided_slice %41 {offsets = [0, 0], sizes = [16, 32], strides = [1, 1]} : vector<16x96xf32> to vector<16x32xf32>
    %43 = vector.shape_cast %42 : vector<16x32xf32> to vector<2x8x32xf32>
    %44 = vector.extract_strided_slice %41 {offsets = [0, 32], sizes = [16, 32], strides = [1, 1]} : vector<16x96xf32> to vector<16x32xf32>
    %45 = vector.shape_cast %44 : vector<16x32xf32> to vector<2x8x32xf32>
    %46 = vector.extract_strided_slice %41 {offsets = [0, 64], sizes = [16, 32], strides = [1, 1]} : vector<16x96xf32> to vector<16x32xf32>
    %47 = vector.shape_cast %46 : vector<16x32xf32> to vector<2x8x32xf32>
    %48 = arith.truncf %47 : vector<2x8x32xf32> to vector<2x8x32xbf16>
    %c0_23 = arith.constant 0 : index
    %c0_24 = arith.constant 0 : index
    %c0_25 = arith.constant 0 : index
    %49 = vector.load %arg4[%c0_23, %c0_24, %c0_25] : memref<2x8x8xf32, #tpu.memory_space<vmem>>, vector<2x8x8xf32>
    %50 = vector.extract_strided_slice %43 {offsets = [0, 0, 0], sizes = [2, 8, 8], strides = [1, 1, 1]} : vector<2x8x32xf32> to vector<2x8x8xf32>
    %51 = arith.truncf %50 : vector<2x8x8xf32> to vector<2x8x8xbf16>
    %52 = vector.extract_strided_slice %45 {offsets = [0, 0, 0], sizes = [2, 8, 8], strides = [1, 1, 1]} : vector<2x8x32xf32> to vector<2x8x8xf32>
    %53 = arith.truncf %52 : vector<2x8x8xf32> to vector<2x8x8xbf16>
    "tpu.trace_start"() <{level = 10 : i32, message = "bqd,bkd->bqk"}> : () -> ()
    %cst_26 = arith.constant dense<0.000000e+00> : vector<2x8x8xf32>
    %54 = tpu.matmul %51, %53, %cst_26 {dimension_numbers = #tpu.dot_dimension_numbers<[2], [2], [1], [1], [0, 0, 0, 1, 1, 1], [0], [0]>} : vector<2x8x8xbf16>, vector<2x8x8xbf16>, vector<2x8x8xf32> -> vector<2x8x8xf32>
    "tpu.trace_stop"() : () -> ()
    %cst_27 = arith.constant 0.353553385 : f32
    %55 = vector.broadcast %cst_27 : f32 to vector<2x8x8xf32>
    %56 = arith.mulf %54, %55 : vector<2x8x8xf32>
    %57 = arith.addf %56, %49 : vector<2x8x8xf32>
    %cst_28 = arith.constant dense<0xFF800000> : vector<2x8xf32>
    %58 = vector.multi_reduction <maximumf>, %57, %cst_28 [2] : vector<2x8x8xf32> to vector<2x8xf32>
    %59 = vector.shape_cast %58 : vector<2x8xf32> to vector<2x8x1xf32>
    %60 = vector.broadcast %59 : vector<2x8x1xf32> to vector<2x8x8xf32>
    %61 = arith.subf %57, %60 : vector<2x8x8xf32>
    %62 = math.exp %61 : vector<2x8x8xf32>
    %cst_29 = arith.constant dense<0.000000e+00> : vector<2x8xf32>
    %63 = vector.multi_reduction <add>, %62, %cst_29 [2] : vector<2x8x8xf32> to vector<2x8xf32>
    %64 = vector.shape_cast %63 : vector<2x8xf32> to vector<2x8x1xf32>
    %65 = tpu.reciprocal %64 {approx = true} : vector<2x8x1xf32> -> vector<2x8x1xf32>
    %66 = vector.broadcast %65 : vector<2x8x1xf32> to vector<2x8x8xf32>
    %67 = arith.mulf %62, %66 : vector<2x8x8xf32>
    %68 = arith.truncf %67 : vector<2x8x8xf32> to vector<2x8x8xbf16>
    %69 = vector.extract_strided_slice %48 {offsets = [0, 0, 0], sizes = [2, 8, 8], strides = [1, 1, 1]} : vector<2x8x32xbf16> to vector<2x8x8xbf16>
    "tpu.trace_start"() <{level = 10 : i32, message = "bqk,bkd->bqd"}> : () -> ()
    %cst_30 = arith.constant dense<0.000000e+00> : vector<2x8x8xf32>
    %70 = tpu.matmul %68, %69, %cst_30 {dimension_numbers = #tpu.dot_dimension_numbers<[2], [1], [1], [2], [0, 0, 0, 1, 1, 2], [0], [0]>} : vector<2x8x8xbf16>, vector<2x8x8xbf16>, vector<2x8x8xf32> -> vector<2x8x8xf32>
    "tpu.trace_stop"() : () -> ()
    %c0_31 = arith.constant 0 : index
    %c0_32 = arith.constant 0 : index
    %c0_33 = arith.constant 0 : index
    %71 = vector.load %arg30[%c0_31, %c0_32, %c0_33] : memref<2x8x32xf32, #tpu.memory_space<vmem>>, vector<2x8x8xf32>
    tpu.vector_store %arg30[%c0_31, %c0_32, %c0_33], %70 {strides = array<i32>} : memref<2x8x32xf32, #tpu.memory_space<vmem>>, vector<2x8x8xf32>,
    %72 = vector.extract_strided_slice %43 {offsets = [0, 0, 8], sizes = [2, 8, 8], strides = [1, 1, 1]} : vector<2x8x32xf32> to vector<2x8x8xf32>
    %73 = arith.truncf %72 : vector<2x8x8xf32> to vector<2x8x8xbf16>
    %74 = vector.extract_strided_slice %45 {offsets = [0, 0, 8], sizes = [2, 8, 8], strides = [1, 1, 1]} : vector<2x8x32xf32> to vector<2x8x8xf32>
    %75 = arith.truncf %74 : vector<2x8x8xf32> to vector<2x8x8xbf16>
    "tpu.trace_start"() <{level = 10 : i32, message = "bqd,bkd->bqk"}> : () -> ()
    %cst_34 = arith.constant dense<0.000000e+00> : vector<2x8x8xf32>
    %76 = tpu.matmul %73, %75, %cst_34 {dimension_numbers = #tpu.dot_dimension_numbers<[2], [2], [1], [1], [0, 0, 0, 1, 1, 1], [0], [0]>} : vector<2x8x8xbf16>, vector<2x8x8xbf16>, vector<2x8x8xf32> -> vector<2x8x8xf32>
    "tpu.trace_stop"() : () -> ()
    %cst_35 = arith.constant 0.353553385 : f32
    %77 = vector.broadcast %cst_35 : f32 to vector<2x8x8xf32>
    %78 = arith.mulf %76, %77 : vector<2x8x8xf32>
    %79 = arith.addf %78, %49 : vector<2x8x8xf32>
    %cst_36 = arith.constant dense<0xFF800000> : vector<2x8xf32>
    %80 = vector.multi_reduction <maximumf>, %79, %cst_36 [2] : vector<2x8x8xf32> to vector<2x8xf32>
    %81 = vector.shape_cast %80 : vector<2x8xf32> to vector<2x8x1xf32>
    %82 = vector.broadcast %81 : vector<2x8x1xf32> to vector<2x8x8xf32>
    %83 = arith.subf %79, %82 : vector<2x8x8xf32>
    %84 = math.exp %83 : vector<2x8x8xf32>
    %cst_37 = arith.constant dense<0.000000e+00> : vector<2x8xf32>
    %85 = vector.multi_reduction <add>, %84, %cst_37 [2] : vector<2x8x8xf32> to vector<2x8xf32>
    %86 = vector.shape_cast %85 : vector<2x8xf32> to vector<2x8x1xf32>
    %87 = tpu.reciprocal %86 {approx = true} : vector<2x8x1xf32> -> vector<2x8x1xf32>
    %88 = vector.broadcast %87 : vector<2x8x1xf32> to vector<2x8x8xf32>
    %89 = arith.mulf %84, %88 : vector<2x8x8xf32>
    %90 = arith.truncf %89 : vector<2x8x8xf32> to vector<2x8x8xbf16>
    %91 = vector.extract_strided_slice %48 {offsets = [0, 0, 8], sizes = [2, 8, 8], strides = [1, 1, 1]} : vector<2x8x32xbf16> to vector<2x8x8xbf16>
    "tpu.trace_start"() <{level = 10 : i32, message = "bqk,bkd->bqd"}> : () -> ()
    %cst_38 = arith.constant dense<0.000000e+00> : vector<2x8x8xf32>
    %92 = tpu.matmul %90, %91, %cst_38 {dimension_numbers = #tpu.dot_dimension_numbers<[2], [1], [1], [2], [0, 0, 0, 1, 1, 2], [0], [0]>} : vector<2x8x8xbf16>, vector<2x8x8xbf16>, vector<2x8x8xf32> -> vector<2x8x8xf32>
    "tpu.trace_stop"() : () -> ()
    %c0_39 = arith.constant 0 : index
    %c0_40 = arith.constant 0 : index
    %c8 = arith.constant 8 : index
    %93 = vector.load %arg30[%c0_39, %c0_40, %c8] : memref<2x8x32xf32, #tpu.memory_space<vmem>>, vector<2x8x8xf32>
    tpu.vector_store %arg30[%c0_39, %c0_40, %c8], %92 {strides = array<i32>} : memref<2x8x32xf32, #tpu.memory_space<vmem>>, vector<2x8x8xf32>,
    %94 = vector.extract_strided_slice %43 {offsets = [0, 0, 16], sizes = [2, 8, 8], strides = [1, 1, 1]} : vector<2x8x32xf32> to vector<2x8x8xf32>
    %95 = arith.truncf %94 : vector<2x8x8xf32> to vector<2x8x8xbf16>
    %96 = vector.extract_strided_slice %45 {offsets = [0, 0, 16], sizes = [2, 8, 8], strides = [1, 1, 1]} : vector<2x8x32xf32> to vector<2x8x8xf32>
    %97 = arith.truncf %96 : vector<2x8x8xf32> to vector<2x8x8xbf16>
    "tpu.trace_start"() <{level = 10 : i32, message = "bqd,bkd->bqk"}> : () -> ()
    %cst_41 = arith.constant dense<0.000000e+00> : vector<2x8x8xf32>
    %98 = tpu.matmul %95, %97, %cst_41 {dimension_numbers = #tpu.dot_dimension_numbers<[2], [2], [1], [1], [0, 0, 0, 1, 1, 1], [0], [0]>} : vector<2x8x8xbf16>, vector<2x8x8xbf16>, vector<2x8x8xf32> -> vector<2x8x8xf32>
    "tpu.trace_stop"() : () -> ()
    %cst_42 = arith.constant 0.353553385 : f32
    %99 = vector.broadcast %cst_42 : f32 to vector<2x8x8xf32>
    %100 = arith.mulf %98, %99 : vector<2x8x8xf32>
    %101 = arith.addf %100, %49 : vector<2x8x8xf32>
    %cst_43 = arith.constant dense<0xFF800000> : vector<2x8xf32>
    %102 = vector.multi_reduction <maximumf>, %101, %cst_43 [2] : vector<2x8x8xf32> to vector<2x8xf32>
    %103 = vector.shape_cast %102 : vector<2x8xf32> to vector<2x8x1xf32>
    %104 = vector.broadcast %103 : vector<2x8x1xf32> to vector<2x8x8xf32>
    %105 = arith.subf %101, %104 : vector<2x8x8xf32>
    %106 = math.exp %105 : vector<2x8x8xf32>
    %cst_44 = arith.constant dense<0.000000e+00> : vector<2x8xf32>
    %107 = vector.multi_reduction <add>, %106, %cst_44 [2] : vector<2x8x8xf32> to vector<2x8xf32>
    %108 = vector.shape_cast %107 : vector<2x8xf32> to vector<2x8x1xf32>
    %109 = tpu.reciprocal %108 {approx = true} : vector<2x8x1xf32> -> vector<2x8x1xf32>
    %110 = vector.broadcast %109 : vector<2x8x1xf32> to vector<2x8x8xf32>
    %111 = arith.mulf %106, %110 : vector<2x8x8xf32>
    %112 = arith.truncf %111 : vector<2x8x8xf32> to vector<2x8x8xbf16>
    %113 = vector.extract_strided_slice %48 {offsets = [0, 0, 16], sizes = [2, 8, 8], strides = [1, 1, 1]} : vector<2x8x32xbf16> to vector<2x8x8xbf16>
    "tpu.trace_start"() <{level = 10 : i32, message = "bqk,bkd->bqd"}> : () -> ()
    %cst_45 = arith.constant dense<0.000000e+00> : vector<2x8x8xf32>
    %114 = tpu.matmul %112, %113, %cst_45 {dimension_numbers = #tpu.dot_dimension_numbers<[2], [1], [1], [2], [0, 0, 0, 1, 1, 2], [0], [0]>} : vector<2x8x8xbf16>, vector<2x8x8xbf16>, vector<2x8x8xf32> -> vector<2x8x8xf32>
    "tpu.trace_stop"() : () -> ()
    %c0_46 = arith.constant 0 : index
    %c0_47 = arith.constant 0 : index
    %c16 = arith.constant 16 : index
    %115 = vector.load %arg30[%c0_46, %c0_47, %c16] : memref<2x8x32xf32, #tpu.memory_space<vmem>>, vector<2x8x8xf32>
    tpu.vector_store %arg30[%c0_46, %c0_47, %c16], %114 {strides = array<i32>} : memref<2x8x32xf32, #tpu.memory_space<vmem>>, vector<2x8x8xf32>,
    %116 = vector.extract_strided_slice %43 {offsets = [0, 0, 24], sizes = [2, 8, 8], strides = [1, 1, 1]} : vector<2x8x32xf32> to vector<2x8x8xf32>
    %117 = arith.truncf %116 : vector<2x8x8xf32> to vector<2x8x8xbf16>
    %118 = vector.extract_strided_slice %45 {offsets = [0, 0, 24], sizes = [2, 8, 8], strides = [1, 1, 1]} : vector<2x8x32xf32> to vector<2x8x8xf32>
    %119 = arith.truncf %118 : vector<2x8x8xf32> to vector<2x8x8xbf16>
    "tpu.trace_start"() <{level = 10 : i32, message = "bqd,bkd->bqk"}> : () -> ()
    %cst_48 = arith.constant dense<0.000000e+00> : vector<2x8x8xf32>
    %120 = tpu.matmul %117, %119, %cst_48 {dimension_numbers = #tpu.dot_dimension_numbers<[2], [2], [1], [1], [0, 0, 0, 1, 1, 1], [0], [0]>} : vector<2x8x8xbf16>, vector<2x8x8xbf16>, vector<2x8x8xf32> -> vector<2x8x8xf32>
    "tpu.trace_stop"() : () -> ()
    %cst_49 = arith.constant 0.353553385 : f32
    %121 = vector.broadcast %cst_49 : f32 to vector<2x8x8xf32>
    %122 = arith.mulf %120, %121 : vector<2x8x8xf32>
    %123 = arith.addf %122, %49 : vector<2x8x8xf32>
    %cst_50 = arith.constant dense<0xFF800000> : vector<2x8xf32>
    %124 = vector.multi_reduction <maximumf>, %123, %cst_50 [2] : vector<2x8x8xf32> to vector<2x8xf32>
    %125 = vector.shape_cast %124 : vector<2x8xf32> to vector<2x8x1xf32>
    %126 = vector.broadcast %125 : vector<2x8x1xf32> to vector<2x8x8xf32>
    %127 = arith.subf %123, %126 : vector<2x8x8xf32>
    %128 = math.exp %127 : vector<2x8x8xf32>
    %cst_51 = arith.constant dense<0.000000e+00> : vector<2x8xf32>
    %129 = vector.multi_reduction <add>, %128, %cst_51 [2] : vector<2x8x8xf32> to vector<2x8xf32>
    %130 = vector.shape_cast %129 : vector<2x8xf32> to vector<2x8x1xf32>
    %131 = tpu.reciprocal %130 {approx = true} : vector<2x8x1xf32> -> vector<2x8x1xf32>
    %132 = vector.broadcast %131 : vector<2x8x1xf32> to vector<2x8x8xf32>
    %133 = arith.mulf %128, %132 : vector<2x8x8xf32>
    %134 = arith.truncf %133 : vector<2x8x8xf32> to vector<2x8x8xbf16>
    %135 = vector.extract_strided_slice %48 {offsets = [0, 0, 24], sizes = [2, 8, 8], strides = [1, 1, 1]} : vector<2x8x32xbf16> to vector<2x8x8xbf16>
    "tpu.trace_start"() <{level = 10 : i32, message = "bqk,bkd->bqd"}> : () -> ()
    %cst_52 = arith.constant dense<0.000000e+00> : vector<2x8x8xf32>
    %136 = tpu.matmul %134, %135, %cst_52 {dimension_numbers = #tpu.dot_dimension_numbers<[2], [1], [1], [2], [0, 0, 0, 1, 1, 2], [0], [0]>} : vector<2x8x8xbf16>, vector<2x8x8xbf16>, vector<2x8x8xf32> -> vector<2x8x8xf32>
    "tpu.trace_stop"() : () -> ()
    %c0_53 = arith.constant 0 : index
    %c0_54 = arith.constant 0 : index
    %c24 = arith.constant 24 : index
    %137 = vector.load %arg30[%c0_53, %c0_54, %c24] : memref<2x8x32xf32, #tpu.memory_space<vmem>>, vector<2x8x8xf32>
    tpu.vector_store %arg30[%c0_53, %c0_54, %c24], %136 {strides = array<i32>} : memref<2x8x32xf32, #tpu.memory_space<vmem>>, vector<2x8x8xf32>,
    %c0_55 = arith.constant 0 : index
    %c0_56 = arith.constant 0 : index
    %c0_57 = arith.constant 0 : index
    %138 = vector.load %arg30[%c0_55, %c0_56, %c0_57] : memref<2x8x32xf32, #tpu.memory_space<vmem>>, vector<2x8x32xf32>
    %139 = arith.truncf %138 : vector<2x8x32xf32> to vector<2x8x32xbf16>
    %140 = vector.shape_cast %139 : vector<2x8x32xbf16> to vector<16x32xbf16>
    %c0_58 = arith.constant 0 : index
    %c0_59 = arith.constant 0 : index
    %c0_60 = arith.constant 0 : index
    %141 = vector.load %arg10[%c0_58, %c0_59, %c0_60] : memref<1x32x32xbf16, #tpu.memory_space<vmem>>, vector<1x32x32xbf16>
    %142 = vector.shape_cast %141 : vector<1x32x32xbf16> to vector<32x32xbf16>
    %cst_61 = arith.constant dense<0.000000e+00> : vector<16x32xf32>
    %143 = tpu.matmul %140, %142, %cst_61 {dimension_numbers = #tpu.dot_dimension_numbers<[1], [0], [0], [1], [0, 0, 1, 1], [], []>} : vector<16x32xbf16>, vector<32x32xbf16>, vector<16x32xf32> -> vector<16x32xf32>
    %c0_62 = arith.constant 0 : index
    %c0_63 = arith.constant 0 : index
    %c0_64 = arith.constant 0 : index
    %144 = vector.load %arg11[%c0_62, %c0_63, %c0_64] : memref<1x1x32xf32, #tpu.memory_space<vmem>>, vector<1x1x32xf32>
    %145 = vector.shape_cast %144 : vector<1x1x32xf32> to vector<1x32xf32>
    %146 = vector.broadcast %145 : vector<1x32xf32> to vector<16x32xf32>
    %147 = arith.addf %143, %146 : vector<16x32xf32>
    %148 = vector.shape_cast %147 : vector<16x32xf32> to vector<2x8x32xf32>
    %149 = arith.addf %3, %148 : vector<2x8x32xf32>
    %c0_65 = arith.constant 0 : index
    %c0_66 = arith.constant 0 : index
    %c0_67 = arith.constant 0 : index
    %150 = vector.load %arg12[%c0_65, %c0_66, %c0_67] : memref<1x1x32xf32, #tpu.memory_space<vmem>>, vector<1x1x32xf32>
    %151 = vector.shape_cast %150 : vector<1x1x32xf32> to vector<1x32xf32>
    %c0_68 = arith.constant 0 : index
    %c0_69 = arith.constant 0 : index
    %c0_70 = arith.constant 0 : index
    %152 = vector.load %arg13[%c0_68, %c0_69, %c0_70] : memref<1x1x32xf32, #tpu.memory_space<vmem>>, vector<1x1x32xf32>
    %153 = vector.shape_cast %152 : vector<1x1x32xf32> to vector<1x32xf32>
    %cst_71 = arith.constant dense<0.000000e+00> : vector<2x8xf32>
    %154 = vector.multi_reduction <add>, %149, %cst_71 [2] : vector<2x8x32xf32> to vector<2x8xf32>
    %155 = vector.shape_cast %154 : vector<2x8xf32> to vector<2x8x1xf32>
    %cst_72 = arith.constant 3.200000e+01 : f32
    %156 = vector.broadcast %cst_72 : f32 to vector<2x8x1xf32>
    %157 = arith.divf %155, %156 : vector<2x8x1xf32>
    %158 = vector.broadcast %157 : vector<2x8x1xf32> to vector<2x8x32xf32>
    %159 = arith.subf %149, %158 : vector<2x8x32xf32>
    %160 = arith.mulf %159, %159 : vector<2x8x32xf32>
    %cst_73 = arith.constant dense<0.000000e+00> : vector<2x8xf32>
    %161 = vector.multi_reduction <add>, %160, %cst_73 [2] : vector<2x8x32xf32> to vector<2x8xf32>
    %162 = vector.shape_cast %161 : vector<2x8xf32> to vector<2x8x1xf32>
    %cst_74 = arith.constant 3.200000e+01 : f32
    %163 = vector.broadcast %cst_74 : f32 to vector<2x8x1xf32>
    %164 = arith.divf %162, %163 : vector<2x8x1xf32>
    %165 = vector.broadcast %157 : vector<2x8x1xf32> to vector<2x8x32xf32>
    %166 = arith.subf %149, %165 : vector<2x8x32xf32>
    %cst_75 = arith.constant 9.99999974E-6 : f32
    %167 = vector.broadcast %cst_75 : f32 to vector<2x8x1xf32>
    %168 = arith.addf %164, %167 : vector<2x8x1xf32>
    %169 = math.rsqrt %168 : vector<2x8x1xf32>
    %170 = vector.broadcast %169 : vector<2x8x1xf32> to vector<2x8x32xf32>
    %171 = arith.mulf %166, %170 : vector<2x8x32xf32>
    %172 = vector.shape_cast %151 : vector<1x32xf32> to vector<1x1x32xf32>
    %173 = vector.broadcast %172 : vector<1x1x32xf32> to vector<2x8x32xf32>
    %174 = arith.mulf %171, %173 : vector<2x8x32xf32>
    %175 = vector.shape_cast %153 : vector<1x32xf32> to vector<1x1x32xf32>
    %176 = vector.broadcast %175 : vector<1x1x32xf32> to vector<2x8x32xf32>
    %177 = arith.addf %174, %176 : vector<2x8x32xf32>
    %178 = vector.shape_cast %177 : vector<2x8x32xf32> to vector<16x32xf32>
    %179 = arith.truncf %178 : vector<16x32xf32> to vector<16x32xbf16>
    %c0_76 = arith.constant 0 : index
    %c0_77 = arith.constant 0 : index
    %c0_78 = arith.constant 0 : index
    %180 = vector.load %arg14[%c0_76, %c0_77, %c0_78] : memref<1x32x32xbf16, #tpu.memory_space<vmem>>, vector<1x32x32xbf16>
    %181 = vector.shape_cast %180 : vector<1x32x32xbf16> to vector<32x32xbf16>
    %cst_79 = arith.constant dense<0.000000e+00> : vector<16x32xf32>
    %182 = tpu.matmul %179, %181, %cst_79 {dimension_numbers = #tpu.dot_dimension_numbers<[1], [0], [0], [1], [0, 0, 1, 1], [], []>} : vector<16x32xbf16>, vector<32x32xbf16>, vector<16x32xf32> -> vector<16x32xf32>
    %c0_80 = arith.constant 0 : index
    %c0_81 = arith.constant 0 : index
    %c0_82 = arith.constant 0 : index
    %183 = vector.load %arg15[%c0_80, %c0_81, %c0_82] : memref<1x1x32xf32, #tpu.memory_space<vmem>>, vector<1x1x32xf32>
    %184 = vector.shape_cast %183 : vector<1x1x32xf32> to vector<1x32xf32>
    %185 = vector.broadcast %184 : vector<1x32xf32> to vector<16x32xf32>
    %186 = arith.addf %182, %185 : vector<16x32xf32>
    %187 = vector.shape_cast %186 : vector<16x32xf32> to vector<2x8x32xf32>
    %188 = vector.shape_cast %4 : vector<2x8x32xbf16> to vector<16x32xbf16>
    %c0_83 = arith.constant 0 : index
    %c0_84 = arith.constant 0 : index
    %c0_85 = arith.constant 0 : index
    %189 = vector.load %arg16[%c0_83, %c0_84, %c0_85] : memref<1x32x64xbf16, #tpu.memory_space<vmem>>, vector<1x32x64xbf16>
    %190 = vector.shape_cast %189 : vector<1x32x64xbf16> to vector<32x64xbf16>
    %cst_86 = arith.constant dense<0.000000e+00> : vector<16x64xf32>
    %191 = tpu.matmul %188, %190, %cst_86 {dimension_numbers = #tpu.dot_dimension_numbers<[1], [0], [0], [1], [0, 0, 1, 1], [], []>} : vector<16x32xbf16>, vector<32x64xbf16>, vector<16x64xf32> -> vector<16x64xf32>
    %c0_87 = arith.constant 0 : index
    %c0_88 = arith.constant 0 : index
    %c0_89 = arith.constant 0 : index
    %192 = vector.load %arg17[%c0_87, %c0_88, %c0_89] : memref<1x1x64xf32, #tpu.memory_space<vmem>>, vector<1x1x64xf32>
    %193 = vector.shape_cast %192 : vector<1x1x64xf32> to vector<1x64xf32>
    %194 = vector.broadcast %193 : vector<1x64xf32> to vector<16x64xf32>
    %195 = arith.addf %191, %194 : vector<16x64xf32>
    %196 = vector.extract_strided_slice %195 {offsets = [0, 0], sizes = [16, 32], strides = [1, 1]} : vector<16x64xf32> to vector<16x32xf32>
    %197 = vector.shape_cast %196 : vector<16x32xf32> to vector<2x8x32xf32>
    %198 = vector.extract_strided_slice %195 {offsets = [0, 32], sizes = [16, 32], strides = [1, 1]} : vector<16x64xf32> to vector<16x32xf32>
    %199 = vector.shape_cast %198 : vector<16x32xf32> to vector<2x8x32xf32>
    %200 = arith.truncf %199 : vector<2x8x32xf32> to vector<2x8x32xbf16>
    %c0_90 = arith.constant 0 : index
    %c0_91 = arith.constant 0 : index
    %c0_92 = arith.constant 0 : index
    %201 = vector.load %arg5[%c0_90, %c0_91, %c0_92] : memref<2x8x8xf32, #tpu.memory_space<vmem>>, vector<2x8x8xf32>
    %202 = vector.extract_strided_slice %187 {offsets = [0, 0, 0], sizes = [2, 8, 8], strides = [1, 1, 1]} : vector<2x8x32xf32> to vector<2x8x8xf32>
    %203 = arith.truncf %202 : vector<2x8x8xf32> to vector<2x8x8xbf16>
    %204 = vector.extract_strided_slice %197 {offsets = [0, 0, 0], sizes = [2, 8, 8], strides = [1, 1, 1]} : vector<2x8x32xf32> to vector<2x8x8xf32>
    %205 = arith.truncf %204 : vector<2x8x8xf32> to vector<2x8x8xbf16>
    "tpu.trace_start"() <{level = 10 : i32, message = "bqd,bkd->bqk"}> : () -> ()
    %cst_93 = arith.constant dense<0.000000e+00> : vector<2x8x8xf32>
    %206 = tpu.matmul %203, %205, %cst_93 {dimension_numbers = #tpu.dot_dimension_numbers<[2], [2], [1], [1], [0, 0, 0, 1, 1, 1], [0], [0]>} : vector<2x8x8xbf16>, vector<2x8x8xbf16>, vector<2x8x8xf32> -> vector<2x8x8xf32>
    "tpu.trace_stop"() : () -> ()
    %cst_94 = arith.constant 0.353553385 : f32
    %207 = vector.broadcast %cst_94 : f32 to vector<2x8x8xf32>
    %208 = arith.mulf %206, %207 : vector<2x8x8xf32>
    %209 = arith.addf %208, %201 : vector<2x8x8xf32>
    %cst_95 = arith.constant dense<0xFF800000> : vector<2x8xf32>
    %210 = vector.multi_reduction <maximumf>, %209, %cst_95 [2] : vector<2x8x8xf32> to vector<2x8xf32>
    %211 = vector.shape_cast %210 : vector<2x8xf32> to vector<2x8x1xf32>
    %212 = vector.broadcast %211 : vector<2x8x1xf32> to vector<2x8x8xf32>
    %213 = arith.subf %209, %212 : vector<2x8x8xf32>
    %214 = math.exp %213 : vector<2x8x8xf32>
    %cst_96 = arith.constant dense<0.000000e+00> : vector<2x8xf32>
    %215 = vector.multi_reduction <add>, %214, %cst_96 [2] : vector<2x8x8xf32> to vector<2x8xf32>
    %216 = vector.shape_cast %215 : vector<2x8xf32> to vector<2x8x1xf32>
    %217 = tpu.reciprocal %216 {approx = true} : vector<2x8x1xf32> -> vector<2x8x1xf32>
    %218 = vector.broadcast %217 : vector<2x8x1xf32> to vector<2x8x8xf32>
    %219 = arith.mulf %214, %218 : vector<2x8x8xf32>
    %220 = arith.truncf %219 : vector<2x8x8xf32> to vector<2x8x8xbf16>
    %221 = vector.extract_strided_slice %200 {offsets = [0, 0, 0], sizes = [2, 8, 8], strides = [1, 1, 1]} : vector<2x8x32xbf16> to vector<2x8x8xbf16>
    "tpu.trace_start"() <{level = 10 : i32, message = "bqk,bkd->bqd"}> : () -> ()
    %cst_97 = arith.constant dense<0.000000e+00> : vector<2x8x8xf32>
    %222 = tpu.matmul %220, %221, %cst_97 {dimension_numbers = #tpu.dot_dimension_numbers<[2], [1], [1], [2], [0, 0, 0, 1, 1, 2], [0], [0]>} : vector<2x8x8xbf16>, vector<2x8x8xbf16>, vector<2x8x8xf32> -> vector<2x8x8xf32>
    "tpu.trace_stop"() : () -> ()
    %c0_98 = arith.constant 0 : index
    %c0_99 = arith.constant 0 : index
    %c0_100 = arith.constant 0 : index
    %223 = vector.load %arg30[%c0_98, %c0_99, %c0_100] : memref<2x8x32xf32, #tpu.memory_space<vmem>>, vector<2x8x8xf32>
    tpu.vector_store %arg30[%c0_98, %c0_99, %c0_100], %222 {strides = array<i32>} : memref<2x8x32xf32, #tpu.memory_space<vmem>>, vector<2x8x8xf32>,
    %224 = vector.extract_strided_slice %187 {offsets = [0, 0, 8], sizes = [2, 8, 8], strides = [1, 1, 1]} : vector<2x8x32xf32> to vector<2x8x8xf32>
    %225 = arith.truncf %224 : vector<2x8x8xf32> to vector<2x8x8xbf16>
    %226 = vector.extract_strided_slice %197 {offsets = [0, 0, 8], sizes = [2, 8, 8], strides = [1, 1, 1]} : vector<2x8x32xf32> to vector<2x8x8xf32>
    %227 = arith.truncf %226 : vector<2x8x8xf32> to vector<2x8x8xbf16>
    "tpu.trace_start"() <{level = 10 : i32, message = "bqd,bkd->bqk"}> : () -> ()
    %cst_101 = arith.constant dense<0.000000e+00> : vector<2x8x8xf32>
    %228 = tpu.matmul %225, %227, %cst_101 {dimension_numbers = #tpu.dot_dimension_numbers<[2], [2], [1], [1], [0, 0, 0, 1, 1, 1], [0], [0]>} : vector<2x8x8xbf16>, vector<2x8x8xbf16>, vector<2x8x8xf32> -> vector<2x8x8xf32>
    "tpu.trace_stop"() : () -> ()
    %cst_102 = arith.constant 0.353553385 : f32
    %229 = vector.broadcast %cst_102 : f32 to vector<2x8x8xf32>
    %230 = arith.mulf %228, %229 : vector<2x8x8xf32>
    %231 = arith.addf %230, %201 : vector<2x8x8xf32>
    %cst_103 = arith.constant dense<0xFF800000> : vector<2x8xf32>
    %232 = vector.multi_reduction <maximumf>, %231, %cst_103 [2] : vector<2x8x8xf32> to vector<2x8xf32>
    %233 = vector.shape_cast %232 : vector<2x8xf32> to vector<2x8x1xf32>
    %234 = vector.broadcast %233 : vector<2x8x1xf32> to vector<2x8x8xf32>
    %235 = arith.subf %231, %234 : vector<2x8x8xf32>
    %236 = math.exp %235 : vector<2x8x8xf32>
    %cst_104 = arith.constant dense<0.000000e+00> : vector<2x8xf32>
    %237 = vector.multi_reduction <add>, %236, %cst_104 [2] : vector<2x8x8xf32> to vector<2x8xf32>
    %238 = vector.shape_cast %237 : vector<2x8xf32> to vector<2x8x1xf32>
    %239 = tpu.reciprocal %238 {approx = true} : vector<2x8x1xf32> -> vector<2x8x1xf32>
    %240 = vector.broadcast %239 : vector<2x8x1xf32> to vector<2x8x8xf32>
    %241 = arith.mulf %236, %240 : vector<2x8x8xf32>
    %242 = arith.truncf %241 : vector<2x8x8xf32> to vector<2x8x8xbf16>
    %243 = vector.extract_strided_slice %200 {offsets = [0, 0, 8], sizes = [2, 8, 8], strides = [1, 1, 1]} : vector<2x8x32xbf16> to vector<2x8x8xbf16>
    "tpu.trace_start"() <{level = 10 : i32, message = "bqk,bkd->bqd"}> : () -> ()
    %cst_105 = arith.constant dense<0.000000e+00> : vector<2x8x8xf32>
    %244 = tpu.matmul %242, %243, %cst_105 {dimension_numbers = #tpu.dot_dimension_numbers<[2], [1], [1], [2], [0, 0, 0, 1, 1, 2], [0], [0]>} : vector<2x8x8xbf16>, vector<2x8x8xbf16>, vector<2x8x8xf32> -> vector<2x8x8xf32>
    "tpu.trace_stop"() : () -> ()
    %c0_106 = arith.constant 0 : index
    %c0_107 = arith.constant 0 : index
    %c8_108 = arith.constant 8 : index
    %245 = vector.load %arg30[%c0_106, %c0_107, %c8_108] : memref<2x8x32xf32, #tpu.memory_space<vmem>>, vector<2x8x8xf32>
    tpu.vector_store %arg30[%c0_106, %c0_107, %c8_108], %244 {strides = array<i32>} : memref<2x8x32xf32, #tpu.memory_space<vmem>>, vector<2x8x8xf32>,
    %246 = vector.extract_strided_slice %187 {offsets = [0, 0, 16], sizes = [2, 8, 8], strides = [1, 1, 1]} : vector<2x8x32xf32> to vector<2x8x8xf32>
    %247 = arith.truncf %246 : vector<2x8x8xf32> to vector<2x8x8xbf16>
    %248 = vector.extract_strided_slice %197 {offsets = [0, 0, 16], sizes = [2, 8, 8], strides = [1, 1, 1]} : vector<2x8x32xf32> to vector<2x8x8xf32>
    %249 = arith.truncf %248 : vector<2x8x8xf32> to vector<2x8x8xbf16>
    "tpu.trace_start"() <{level = 10 : i32, message = "bqd,bkd->bqk"}> : () -> ()
    %cst_109 = arith.constant dense<0.000000e+00> : vector<2x8x8xf32>
    %250 = tpu.matmul %247, %249, %cst_109 {dimension_numbers = #tpu.dot_dimension_numbers<[2], [2], [1], [1], [0, 0, 0, 1, 1, 1], [0], [0]>} : vector<2x8x8xbf16>, vector<2x8x8xbf16>, vector<2x8x8xf32> -> vector<2x8x8xf32>
    "tpu.trace_stop"() : () -> ()
    %cst_110 = arith.constant 0.353553385 : f32
    %251 = vector.broadcast %cst_110 : f32 to vector<2x8x8xf32>
    %252 = arith.mulf %250, %251 : vector<2x8x8xf32>
    %253 = arith.addf %252, %201 : vector<2x8x8xf32>
    %cst_111 = arith.constant dense<0xFF800000> : vector<2x8xf32>
    %254 = vector.multi_reduction <maximumf>, %253, %cst_111 [2] : vector<2x8x8xf32> to vector<2x8xf32>
    %255 = vector.shape_cast %254 : vector<2x8xf32> to vector<2x8x1xf32>
    %256 = vector.broadcast %255 : vector<2x8x1xf32> to vector<2x8x8xf32>
    %257 = arith.subf %253, %256 : vector<2x8x8xf32>
    %258 = math.exp %257 : vector<2x8x8xf32>
    %cst_112 = arith.constant dense<0.000000e+00> : vector<2x8xf32>
    %259 = vector.multi_reduction <add>, %258, %cst_112 [2] : vector<2x8x8xf32> to vector<2x8xf32>
    %260 = vector.shape_cast %259 : vector<2x8xf32> to vector<2x8x1xf32>
    %261 = tpu.reciprocal %260 {approx = true} : vector<2x8x1xf32> -> vector<2x8x1xf32>
    %262 = vector.broadcast %261 : vector<2x8x1xf32> to vector<2x8x8xf32>
    %263 = arith.mulf %258, %262 : vector<2x8x8xf32>
    %264 = arith.truncf %263 : vector<2x8x8xf32> to vector<2x8x8xbf16>
    %265 = vector.extract_strided_slice %200 {offsets = [0, 0, 16], sizes = [2, 8, 8], strides = [1, 1, 1]} : vector<2x8x32xbf16> to vector<2x8x8xbf16>
    "tpu.trace_start"() <{level = 10 : i32, message = "bqk,bkd->bqd"}> : () -> ()
    %cst_113 = arith.constant dense<0.000000e+00> : vector<2x8x8xf32>
    %266 = tpu.matmul %264, %265, %cst_113 {dimension_numbers = #tpu.dot_dimension_numbers<[2], [1], [1], [2], [0, 0, 0, 1, 1, 2], [0], [0]>} : vector<2x8x8xbf16>, vector<2x8x8xbf16>, vector<2x8x8xf32> -> vector<2x8x8xf32>
    "tpu.trace_stop"() : () -> ()
    %c0_114 = arith.constant 0 : index
    %c0_115 = arith.constant 0 : index
    %c16_116 = arith.constant 16 : index
    %267 = vector.load %arg30[%c0_114, %c0_115, %c16_116] : memref<2x8x32xf32, #tpu.memory_space<vmem>>, vector<2x8x8xf32>
    tpu.vector_store %arg30[%c0_114, %c0_115, %c16_116], %266 {strides = array<i32>} : memref<2x8x32xf32, #tpu.memory_space<vmem>>, vector<2x8x8xf32>,
    %268 = vector.extract_strided_slice %187 {offsets = [0, 0, 24], sizes = [2, 8, 8], strides = [1, 1, 1]} : vector<2x8x32xf32> to vector<2x8x8xf32>
    %269 = arith.truncf %268 : vector<2x8x8xf32> to vector<2x8x8xbf16>
    %270 = vector.extract_strided_slice %197 {offsets = [0, 0, 24], sizes = [2, 8, 8], strides = [1, 1, 1]} : vector<2x8x32xf32> to vector<2x8x8xf32>
    %271 = arith.truncf %270 : vector<2x8x8xf32> to vector<2x8x8xbf16>
    "tpu.trace_start"() <{level = 10 : i32, message = "bqd,bkd->bqk"}> : () -> ()
    %cst_117 = arith.constant dense<0.000000e+00> : vector<2x8x8xf32>
    %272 = tpu.matmul %269, %271, %cst_117 {dimension_numbers = #tpu.dot_dimension_numbers<[2], [2], [1], [1], [0, 0, 0, 1, 1, 1], [0], [0]>} : vector<2x8x8xbf16>, vector<2x8x8xbf16>, vector<2x8x8xf32> -> vector<2x8x8xf32>
    "tpu.trace_stop"() : () -> ()
    %cst_118 = arith.constant 0.353553385 : f32
    %273 = vector.broadcast %cst_118 : f32 to vector<2x8x8xf32>
    %274 = arith.mulf %272, %273 : vector<2x8x8xf32>
    %275 = arith.addf %274, %201 : vector<2x8x8xf32>
    %cst_119 = arith.constant dense<0xFF800000> : vector<2x8xf32>
    %276 = vector.multi_reduction <maximumf>, %275, %cst_119 [2] : vector<2x8x8xf32> to vector<2x8xf32>
    %277 = vector.shape_cast %276 : vector<2x8xf32> to vector<2x8x1xf32>
    %278 = vector.broadcast %277 : vector<2x8x1xf32> to vector<2x8x8xf32>
    %279 = arith.subf %275, %278 : vector<2x8x8xf32>
    %280 = math.exp %279 : vector<2x8x8xf32>
    %cst_120 = arith.constant dense<0.000000e+00> : vector<2x8xf32>
    %281 = vector.multi_reduction <add>, %280, %cst_120 [2] : vector<2x8x8xf32> to vector<2x8xf32>
    %282 = vector.shape_cast %281 : vector<2x8xf32> to vector<2x8x1xf32>
    %283 = tpu.reciprocal %282 {approx = true} : vector<2x8x1xf32> -> vector<2x8x1xf32>
    %284 = vector.broadcast %283 : vector<2x8x1xf32> to vector<2x8x8xf32>
    %285 = arith.mulf %280, %284 : vector<2x8x8xf32>
    %286 = arith.truncf %285 : vector<2x8x8xf32> to vector<2x8x8xbf16>
    %287 = vector.extract_strided_slice %200 {offsets = [0, 0, 24], sizes = [2, 8, 8], strides = [1, 1, 1]} : vector<2x8x32xbf16> to vector<2x8x8xbf16>
    "tpu.trace_start"() <{level = 10 : i32, message = "bqk,bkd->bqd"}> : () -> ()
    %cst_121 = arith.constant dense<0.000000e+00> : vector<2x8x8xf32>
    %288 = tpu.matmul %286, %287, %cst_121 {dimension_numbers = #tpu.dot_dimension_numbers<[2], [1], [1], [2], [0, 0, 0, 1, 1, 2], [0], [0]>} : vector<2x8x8xbf16>, vector<2x8x8xbf16>, vector<2x8x8xf32> -> vector<2x8x8xf32>
    "tpu.trace_stop"() : () -> ()
    %c0_122 = arith.constant 0 : index
    %c0_123 = arith.constant 0 : index
    %c24_124 = arith.constant 24 : index
    %289 = vector.load %arg30[%c0_122, %c0_123, %c24_124] : memref<2x8x32xf32, #tpu.memory_space<vmem>>, vector<2x8x8xf32>
    tpu.vector_store %arg30[%c0_122, %c0_123, %c24_124], %288 {strides = array<i32>} : memref<2x8x32xf32, #tpu.memory_space<vmem>>, vector<2x8x8xf32>,
    %c0_125 = arith.constant 0 : index
    %c0_126 = arith.constant 0 : index
    %c0_127 = arith.constant 0 : index
    %290 = vector.load %arg30[%c0_125, %c0_126, %c0_127] : memref<2x8x32xf32, #tpu.memory_space<vmem>>, vector<2x8x32xf32>
    %291 = arith.truncf %290 : vector<2x8x32xf32> to vector<2x8x32xbf16>
    %292 = vector.shape_cast %291 : vector<2x8x32xbf16> to vector<16x32xbf16>
    %c0_128 = arith.constant 0 : index
    %c0_129 = arith.constant 0 : index
    %c0_130 = arith.constant 0 : index
    %293 = vector.load %arg18[%c0_128, %c0_129, %c0_130] : memref<1x32x32xbf16, #tpu.memory_space<vmem>>, vector<1x32x32xbf16>
    %294 = vector.shape_cast %293 : vector<1x32x32xbf16> to vector<32x32xbf16>
    %cst_131 = arith.constant dense<0.000000e+00> : vector<16x32xf32>
    %295 = tpu.matmul %292, %294, %cst_131 {dimension_numbers = #tpu.dot_dimension_numbers<[1], [0], [0], [1], [0, 0, 1, 1], [], []>} : vector<16x32xbf16>, vector<32x32xbf16>, vector<16x32xf32> -> vector<16x32xf32>
    %c0_132 = arith.constant 0 : index
    %c0_133 = arith.constant 0 : index
    %c0_134 = arith.constant 0 : index
    %296 = vector.load %arg19[%c0_132, %c0_133, %c0_134] : memref<1x1x32xf32, #tpu.memory_space<vmem>>, vector<1x1x32xf32>
    %297 = vector.shape_cast %296 : vector<1x1x32xf32> to vector<1x32xf32>
    %298 = vector.broadcast %297 : vector<1x32xf32> to vector<16x32xf32>
    %299 = arith.addf %295, %298 : vector<16x32xf32>
    %300 = vector.shape_cast %299 : vector<16x32xf32> to vector<2x8x32xf32>
    %301 = arith.addf %149, %300 : vector<2x8x32xf32>
    %c0_135 = arith.constant 0 : index
    %c0_136 = arith.constant 0 : index
    %c0_137 = arith.constant 0 : index
    %302 = vector.load %arg20[%c0_135, %c0_136, %c0_137] : memref<1x1x32xf32, #tpu.memory_space<vmem>>, vector<1x1x32xf32>
    %303 = vector.shape_cast %302 : vector<1x1x32xf32> to vector<1x32xf32>
    %c0_138 = arith.constant 0 : index
    %c0_139 = arith.constant 0 : index
    %c0_140 = arith.constant 0 : index
    %304 = vector.load %arg21[%c0_138, %c0_139, %c0_140] : memref<1x1x32xf32, #tpu.memory_space<vmem>>, vector<1x1x32xf32>
    %305 = vector.shape_cast %304 : vector<1x1x32xf32> to vector<1x32xf32>
    %cst_141 = arith.constant dense<0.000000e+00> : vector<2x8xf32>
    %306 = vector.multi_reduction <add>, %301, %cst_141 [2] : vector<2x8x32xf32> to vector<2x8xf32>
    %307 = vector.shape_cast %306 : vector<2x8xf32> to vector<2x8x1xf32>
    %cst_142 = arith.constant 3.200000e+01 : f32
    %308 = vector.broadcast %cst_142 : f32 to vector<2x8x1xf32>
    %309 = arith.divf %307, %308 : vector<2x8x1xf32>
    %310 = vector.broadcast %309 : vector<2x8x1xf32> to vector<2x8x32xf32>
    %311 = arith.subf %301, %310 : vector<2x8x32xf32>
    %312 = arith.mulf %311, %311 : vector<2x8x32xf32>
    %cst_143 = arith.constant dense<0.000000e+00> : vector<2x8xf32>
    %313 = vector.multi_reduction <add>, %312, %cst_143 [2] : vector<2x8x32xf32> to vector<2x8xf32>
    %314 = vector.shape_cast %313 : vector<2x8xf32> to vector<2x8x1xf32>
    %cst_144 = arith.constant 3.200000e+01 : f32
    %315 = vector.broadcast %cst_144 : f32 to vector<2x8x1xf32>
    %316 = arith.divf %314, %315 : vector<2x8x1xf32>
    %317 = vector.broadcast %309 : vector<2x8x1xf32> to vector<2x8x32xf32>
    %318 = arith.subf %301, %317 : vector<2x8x32xf32>
    %cst_145 = arith.constant 9.99999974E-6 : f32
    %319 = vector.broadcast %cst_145 : f32 to vector<2x8x1xf32>
    %320 = arith.addf %316, %319 : vector<2x8x1xf32>
    %321 = math.rsqrt %320 : vector<2x8x1xf32>
    %322 = vector.broadcast %321 : vector<2x8x1xf32> to vector<2x8x32xf32>
    %323 = arith.mulf %318, %322 : vector<2x8x32xf32>
    %324 = vector.shape_cast %303 : vector<1x32xf32> to vector<1x1x32xf32>
    %325 = vector.broadcast %324 : vector<1x1x32xf32> to vector<2x8x32xf32>
    %326 = arith.mulf %323, %325 : vector<2x8x32xf32>
    %327 = vector.shape_cast %305 : vector<1x32xf32> to vector<1x1x32xf32>
    %328 = vector.broadcast %327 : vector<1x1x32xf32> to vector<2x8x32xf32>
    %329 = arith.addf %326, %328 : vector<2x8x32xf32>
    %330 = vector.shape_cast %329 : vector<2x8x32xf32> to vector<16x32xf32>
    %331 = arith.truncf %330 : vector<16x32xf32> to vector<16x32xbf16>
    %c0_146 = arith.constant 0 : index
    %c0_147 = arith.constant 0 : index
    %c0_148 = arith.constant 0 : index
    %332 = vector.load %arg22[%c0_146, %c0_147, %c0_148] : memref<1x32x64xbf16, #tpu.memory_space<vmem>>, vector<1x32x64xbf16>
    %333 = vector.shape_cast %332 : vector<1x32x64xbf16> to vector<32x64xbf16>
    %cst_149 = arith.constant dense<0.000000e+00> : vector<16x64xf32>
    %334 = tpu.matmul %331, %333, %cst_149 {dimension_numbers = #tpu.dot_dimension_numbers<[1], [0], [0], [1], [0, 0, 1, 1], [], []>} : vector<16x32xbf16>, vector<32x64xbf16>, vector<16x64xf32> -> vector<16x64xf32>
    %c0_150 = arith.constant 0 : index
    %c0_151 = arith.constant 0 : index
    %c0_152 = arith.constant 0 : index
    %335 = vector.load %arg23[%c0_150, %c0_151, %c0_152] : memref<1x1x64xf32, #tpu.memory_space<vmem>>, vector<1x1x64xf32>
    %336 = vector.shape_cast %335 : vector<1x1x64xf32> to vector<1x64xf32>
    %337 = vector.broadcast %336 : vector<1x64xf32> to vector<16x64xf32>
    %338 = arith.addf %334, %337 : vector<16x64xf32>
    %cst_153 = arith.constant 0.000000e+00 : f32
    %339 = vector.broadcast %cst_153 : f32 to vector<16x64xf32>
    %340 = arith.maximumf %338, %339 : vector<16x64xf32>
    %341 = arith.truncf %340 : vector<16x64xf32> to vector<16x64xbf16>
    %c0_154 = arith.constant 0 : index
    %c0_155 = arith.constant 0 : index
    %c0_156 = arith.constant 0 : index
    %342 = vector.load %arg24[%c0_154, %c0_155, %c0_156] : memref<1x64x32xbf16, #tpu.memory_space<vmem>>, vector<1x64x32xbf16>
    %343 = vector.shape_cast %342 : vector<1x64x32xbf16> to vector<64x32xbf16>
    %cst_157 = arith.constant dense<0.000000e+00> : vector<16x32xf32>
    %344 = tpu.matmul %341, %343, %cst_157 {dimension_numbers = #tpu.dot_dimension_numbers<[1], [0], [0], [1], [0, 0, 1, 1], [], []>} : vector<16x64xbf16>, vector<64x32xbf16>, vector<16x32xf32> -> vector<16x32xf32>
    %c0_158 = arith.constant 0 : index
    %c0_159 = arith.constant 0 : index
    %c0_160 = arith.constant 0 : index
    %345 = vector.load %arg25[%c0_158, %c0_159, %c0_160] : memref<1x1x32xf32, #tpu.memory_space<vmem>>, vector<1x1x32xf32>
    %346 = vector.shape_cast %345 : vector<1x1x32xf32> to vector<1x32xf32>
    %347 = vector.broadcast %346 : vector<1x32xf32> to vector<16x32xf32>
    %348 = arith.addf %344, %347 : vector<16x32xf32>
    %349 = vector.shape_cast %348 : vector<16x32xf32> to vector<2x8x32xf32>
    %350 = arith.addf %301, %349 : vector<2x8x32xf32>
    %c0_161 = arith.constant 0 : index
    %c0_162 = arith.constant 0 : index
    %c0_163 = arith.constant 0 : index
    %351 = vector.load %arg29[%c0_161, %c0_162, %c0_163] : memref<2x8x32xf32, #tpu.memory_space<vmem>>, vector<2x8x32xf32>
    tpu.vector_store %arg29[%c0_161, %c0_162, %c0_163], %350 {strides = array<i32>} : memref<2x8x32xf32, #tpu.memory_space<vmem>>, vector<2x8x32xf32>,
    %c1_i32 = arith.constant 1 : i32
    %352 = arith.cmpi eq, %arg1, %c1_i32 : i32
    %353 = arith.extui %352 : i1 to i32
    %c0_i32_164 = arith.constant 0 : i32
    %354 = arith.cmpi ne, %353, %c0_i32_164 : i32
    scf.if %354 {
      %c0_165 = arith.constant 0 : index
      %c0_166 = arith.constant 0 : index
      %355 = vector.load %arg26[%c0_165, %c0_166] : memref<1x32xf32, #tpu.memory_space<vmem>>, vector<1x32xf32>
      %c0_167 = arith.constant 0 : index
      %c0_168 = arith.constant 0 : index
      %356 = vector.load %arg27[%c0_167, %c0_168] : memref<1x32xf32, #tpu.memory_space<vmem>>, vector<1x32xf32>
      %cst_169 = arith.constant dense<0.000000e+00> : vector<2x8xf32>
      %357 = vector.multi_reduction <add>, %350, %cst_169 [2] : vector<2x8x32xf32> to vector<2x8xf32>
      %358 = vector.shape_cast %357 : vector<2x8xf32> to vector<2x8x1xf32>
      %cst_170 = arith.constant 3.200000e+01 : f32
      %359 = vector.broadcast %cst_170 : f32 to vector<2x8x1xf32>
      %360 = arith.divf %358, %359 : vector<2x8x1xf32>
      %361 = vector.broadcast %360 : vector<2x8x1xf32> to vector<2x8x32xf32>
      %362 = arith.subf %350, %361 : vector<2x8x32xf32>
      %363 = arith.mulf %362, %362 : vector<2x8x32xf32>
      %cst_171 = arith.constant dense<0.000000e+00> : vector<2x8xf32>
      %364 = vector.multi_reduction <add>, %363, %cst_171 [2] : vector<2x8x32xf32> to vector<2x8xf32>
      %365 = vector.shape_cast %364 : vector<2x8xf32> to vector<2x8x1xf32>
      %cst_172 = arith.constant 3.200000e+01 : f32
      %366 = vector.broadcast %cst_172 : f32 to vector<2x8x1xf32>
      %367 = arith.divf %365, %366 : vector<2x8x1xf32>
      %368 = vector.broadcast %360 : vector<2x8x1xf32> to vector<2x8x32xf32>
      %369 = arith.subf %350, %368 : vector<2x8x32xf32>
      %cst_173 = arith.constant 9.99999974E-6 : f32
      %370 = vector.broadcast %cst_173 : f32 to vector<2x8x1xf32>
      %371 = arith.addf %367, %370 : vector<2x8x1xf32>
      %372 = math.rsqrt %371 : vector<2x8x1xf32>
      %373 = vector.broadcast %372 : vector<2x8x1xf32> to vector<2x8x32xf32>
      %374 = arith.mulf %369, %373 : vector<2x8x32xf32>
      %375 = vector.shape_cast %355 : vector<1x32xf32> to vector<1x1x32xf32>
      %376 = vector.broadcast %375 : vector<1x1x32xf32> to vector<2x8x32xf32>
      %377 = arith.mulf %374, %376 : vector<2x8x32xf32>
      %378 = vector.shape_cast %356 : vector<1x32xf32> to vector<1x1x32xf32>
      %379 = vector.broadcast %378 : vector<1x1x32xf32> to vector<2x8x32xf32>
      %380 = arith.addf %377, %379 : vector<2x8x32xf32>
      %c0_174 = arith.constant 0 : index
      %c0_175 = arith.constant 0 : index
      %c0_176 = arith.constant 0 : index
      %381 = vector.load %arg28[%c0_174, %c0_175, %c0_176] : memref<2x8x32xf32, #tpu.memory_space<vmem>>, vector<2x8x32xf32>
      tpu.vector_store %arg28[%c0_174, %c0_175, %c0_176], %380 {strides = array<i32>} : memref<2x8x32xf32, #tpu.memory_space<vmem>>, vector<2x8x32xf32>,
    } else {
    }
    return
  }
  func.func @transform_0(%arg0: i32, %arg1: i32) -> (i32, i32, i32) {
    %c0_i32 = arith.constant 0 : i32
    %c0_i32_0 = arith.constant 0 : i32
    %c0_i32_1 = arith.constant 0 : i32
    return %arg0, %c0_i32, %c0_i32_0 : i32, i32, i32
  }
  func.func @transform_1(%arg0: i32, %arg1: i32) -> (i32, i32, i32) {
    %c0_i32 = arith.constant 0 : i32
    %c0_i32_0 = arith.constant 0 : i32
    %c0_i32_1 = arith.constant 0 : i32
    return %arg0, %c0_i32, %c0_i32_0 : i32, i32, i32
  }
  func.func @transform_2(%arg0: i32, %arg1: i32) -> (i32, i32, i32) {
    %c0_i32 = arith.constant 0 : i32
    %c0_i32_0 = arith.constant 0 : i32
    %c0_i32_1 = arith.constant 0 : i32
    return %arg0, %c0_i32, %c0_i32_0 : i32, i32, i32
  }
  func.func @transform_3(%arg0: i32, %arg1: i32) -> (i32, i32, i32) {
    %c0_i32 = arith.constant 0 : i32
    %c0_i32_0 = arith.constant 0 : i32
    %c0_i32_1 = arith.constant 0 : i32
    return %arg0, %c0_i32, %c0_i32_0 : i32, i32, i32
  }
  func.func @transform_4(%arg0: i32, %arg1: i32) -> (i32, i32, i32) {
    %c0_i32 = arith.constant 0 : i32
    %c0_i32_0 = arith.constant 0 : i32
    %c0_i32_1 = arith.constant 0 : i32
    return %arg1, %c0_i32, %c0_i32_0 : i32, i32, i32
  }
  func.func @transform_5(%arg0: i32, %arg1: i32) -> (i32, i32, i32) {
    %c0_i32 = arith.constant 0 : i32
    %c0_i32_0 = arith.constant 0 : i32
    %c0_i32_1 = arith.constant 0 : i32
    return %arg1, %c0_i32, %c0_i32_0 : i32, i32, i32
  }
  func.func @transform_6(%arg0: i32, %arg1: i32) -> (i32, i32, i32) {
    %c0_i32 = arith.constant 0 : i32
    %c0_i32_0 = arith.constant 0 : i32
    %c0_i32_1 = arith.constant 0 : i32
    return %arg1, %c0_i32, %c0_i32_0 : i32, i32, i32
  }
  func.func @transform_7(%arg0: i32, %arg1: i32) -> (i32, i32, i32) {
    %c0_i32 = arith.constant 0 : i32
    %c0_i32_0 = arith.constant 0 : i32
    %c0_i32_1 = arith.constant 0 : i32
    return %arg1, %c0_i32, %c0_i32_0 : i32, i32, i32
  }
  func.func @transform_8(%arg0: i32, %arg1: i32) -> (i32, i32, i32) {
    %c0_i32 = arith.constant 0 : i32
    %c0_i32_0 = arith.constant 0 : i32
    %c0_i32_1 = arith.constant 0 : i32
    return %arg1, %c0_i32, %c0_i32_0 : i32, i32, i32
  }
  func.func @transform_9(%arg0: i32, %arg1: i32) -> (i32, i32, i32) {
    %c0_i32 = arith.constant 0 : i32
    %c0_i32_0 = arith.constant 0 : i32
    %c0_i32_1 = arith.constant 0 : i32
    return %arg1, %c0_i32, %c0_i32_0 : i32, i32, i32
  }
  func.func @transform_10(%arg0: i32, %arg1: i32) -> (i32, i32, i32) {
    %c0_i32 = arith.constant 0 : i32
    %c0_i32_0 = arith.constant 0 : i32
    %c0_i32_1 = arith.constant 0 : i32
    return %arg1, %c0_i32, %c0_i32_0 : i32, i32, i32
  }
  func.func @transform_11(%arg0: i32, %arg1: i32) -> (i32, i32, i32) {
    %c0_i32 = arith.constant 0 : i32
    %c0_i32_0 = arith.constant 0 : i32
    %c0_i32_1 = arith.constant 0 : i32
    return %arg1, %c0_i32, %c0_i32_0 : i32, i32, i32
  }
  func.func @transform_12(%arg0: i32, %arg1: i32) -> (i32, i32, i32) {
    %c0_i32 = arith.constant 0 : i32
    %c0_i32_0 = arith.constant 0 : i32
    %c0_i32_1 = arith.constant 0 : i32
    return %arg1, %c0_i32, %c0_i32_0 : i32, i32, i32
  }
  func.func @transform_13(%arg0: i32, %arg1: i32) -> (i32, i32, i32) {
    %c0_i32 = arith.constant 0 : i32
    %c0_i32_0 = arith.constant 0 : i32
    %c0_i32_1 = arith.constant 0 : i32
    return %arg1, %c0_i32, %c0_i32_0 : i32, i32, i32
  }
  func.func @transform_14(%arg0: i32, %arg1: i32) -> (i32, i32, i32) {
    %c0_i32 = arith.constant 0 : i32
    %c0_i32_0 = arith.constant 0 : i32
    %c0_i32_1 = arith.constant 0 : i32
    return %arg1, %c0_i32, %c0_i32_0 : i32, i32, i32
  }
  func.func @transform_15(%arg0: i32, %arg1: i32) -> (i32, i32, i32) {
    %c0_i32 = arith.constant 0 : i32
    %c0_i32_0 = arith.constant 0 : i32
    %c0_i32_1 = arith.constant 0 : i32
    return %arg1, %c0_i32, %c0_i32_0 : i32, i32, i32
  }
  func.func @transform_16(%arg0: i32, %arg1: i32) -> (i32, i32, i32) {
    %c0_i32 = arith.constant 0 : i32
    %c0_i32_0 = arith.constant 0 : i32
    %c0_i32_1 = arith.constant 0 : i32
    return %arg1, %c0_i32, %c0_i32_0 : i32, i32, i32
  }
  func.func @transform_17(%arg0: i32, %arg1: i32) -> (i32, i32, i32) {
    %c0_i32 = arith.constant 0 : i32
    %c0_i32_0 = arith.constant 0 : i32
    %c0_i32_1 = arith.constant 0 : i32
    return %arg1, %c0_i32, %c0_i32_0 : i32, i32, i32
  }
  func.func @transform_18(%arg0: i32, %arg1: i32) -> (i32, i32, i32) {
    %c0_i32 = arith.constant 0 : i32
    %c0_i32_0 = arith.constant 0 : i32
    %c0_i32_1 = arith.constant 0 : i32
    return %arg1, %c0_i32, %c0_i32_0 : i32, i32, i32
  }
  func.func @transform_19(%arg0: i32, %arg1: i32) -> (i32, i32, i32) {
    %c0_i32 = arith.constant 0 : i32
    %c0_i32_0 = arith.constant 0 : i32
    %c0_i32_1 = arith.constant 0 : i32
    return %arg1, %c0_i32, %c0_i32_0 : i32, i32, i32
  }
  func.func @transform_20(%arg0: i32, %arg1: i32) -> (i32, i32, i32) {
    %c0_i32 = arith.constant 0 : i32
    %c0_i32_0 = arith.constant 0 : i32
    %c0_i32_1 = arith.constant 0 : i32
    return %arg1, %c0_i32, %c0_i32_0 : i32, i32, i32
  }
  func.func @transform_21(%arg0: i32, %arg1: i32) -> (i32, i32, i32) {
    %c0_i32 = arith.constant 0 : i32
    %c0_i32_0 = arith.constant 0 : i32
    %c0_i32_1 = arith.constant 0 : i32
    return %arg1, %c0_i32, %c0_i32_0 : i32, i32, i32
  }
  func.func @transform_22(%arg0: i32, %arg1: i32) -> (i32, i32, i32) {
    %c0_i32 = arith.constant 0 : i32
    %c0_i32_0 = arith.constant 0 : i32
    %c0_i32_1 = arith.constant 0 : i32
    return %arg1, %c0_i32, %c0_i32_0 : i32, i32, i32
  }
  func.func @transform_23(%arg0: i32, %arg1: i32) -> (i32, i32, i32) {
    %c0_i32 = arith.constant 0 : i32
    %c0_i32_0 = arith.constant 0 : i32
    %c0_i32_1 = arith.constant 0 : i32
    return %arg1, %c0_i32, %c0_i32_0 : i32, i32, i32
  }
  func.func @transform_24(%arg0: i32, %arg1: i32) -> (i32, i32) {
    %c0_i32 = arith.constant 0 : i32
    %c0_i32_0 = arith.constant 0 : i32
    %c0_i32_1 = arith.constant 0 : i32
    return %c0_i32, %c0_i32_0 : i32, i32
  }
  func.func @transform_25(%arg0: i32, %arg1: i32) -> (i32, i32) {
    %c0_i32 = arith.constant 0 : i32
    %c0_i32_0 = arith.constant 0 : i32
    %c0_i32_1 = arith.constant 0 : i32
    return %c0_i32, %c0_i32_0 : i32, i32
  }
  func.func @transform_26(%arg0: i32, %arg1: i32) -> (i32, i32, i32) {
    %c0_i32 = arith.constant 0 : i32
    %c0_i32_0 = arith.constant 0 : i32
    %c0_i32_1 = arith.constant 0 : i32
    return %arg0, %c0_i32, %c0_i32_0 : i32, i32, i32
  }
}

</mosaic_0001>

<bundles_post_ra>
// kernel: tpu_custom_call.1
= control target key start
LH: loop header
LB: loop body
LE: loop exit
PB: predicated region body
PF: predicated region fallthrough
CT: control target
= control target key end

     0   :  { %s4920_s0 = inlined_call_operand.hbm [shape: f32[2,8,32], index: 0, kind: input, shape index: {}]   ;;  %s4921_s1 = inlined_call_operand.hbm [shape: bf16[2,8,32], index: 1, kind: input, shape index: {}]   ;;  %s4922_s2 = inlined_call_operand.hbm [shape: f32[2,8,8], index: 2, kind: input, shape index: {}]   ;;  %s4923_s3 = inlined_call_operand.hbm [shape: f32[2,8,8], index: 3, kind: input, shape index: {}]   ;;  %s4924_s4 = inlined_call_operand.vmem [shape: f32[2,1,32], index: 4, kind: input, shape index: {}]   ;;  %s4925_s5 = inlined_call_operand.hbm [shape: f32[2,1,32], index: 5, kind: input, shape index: {}]   ;;  %s4926_s6 = inlined_call_operand.vmem [shape: bf16[2,32,96], index: 6, kind: input, shape index: {}]   ;;  %s4927_s7 = inlined_call_operand.vmem [shape: f32[2,1,96], index: 7, kind: input, shape index: {}]   ;;  %s4928_s8 = inlined_call_operand.vmem [shape: bf16[2,32,32], index: 8, kind: input, shape index: {}]   ;;  %s4929_s9 = inlined_call_operand.vmem [shape: f32[2,1,32], index: 9, kind: input, shape index: {}]   ;;  %s4930_s10 = inlined_call_operand.vmem [shape: f32[2,1,32], index: 10, kind: input, shape index: {}]   ;;  %s4931_s11 = inlined_call_operand.hbm [shape: f32[2,1,32], index: 11, kind: input, shape index: {}]   ;;  %s4932_s12 = inlined_call_operand.vmem [shape: bf16[2,32,32], index: 12, kind: input, shape index: {}]   ;;  %s4933_s13 = inlined_call_operand.vmem [shape: f32[2,1,32], index: 13, kind: input, shape index: {}]   ;;  %s4934_s14 = inlined_call_operand.hbm [shape: bf16[2,32,64], index: 14, kind: input, shape index: {}]   ;;  %s4935_s15 = inlined_call_operand.vmem [shape: f32[2,1,64], index: 15, kind: input, shape index: {}]   ;;  %s4936_s16 = inlined_call_operand.hbm [shape: bf16[2,32,32], index: 16, kind: input, shape index: {}]   ;;  %s4937_s17 = inlined_call_operand.vmem [shape: f32[2,1,32], index: 17, kind: input, shape index: {}]   ;;  %s4938_s18 = inlined_call_operand.vmem [shape: f32[2,1,32], index: 18, kind: input, shape index: {}]   ;;  %s4939_s19 = inlined_call_operand.hbm [shape: f32[2,1,32], index: 19, kind: input, shape index: {}]   ;;  %s4940_s20 = inlined_call_operand.hbm [shape: bf16[2,32,64], index: 20, kind: input, shape index: {}]   ;;  %s4941_s21 = inlined_call_operand.vmem [shape: f32[2,1,64], index: 21, kind: input, shape index: {}]   ;;  %s4942_s22 = inlined_call_operand.vmem [shape: bf16[2,64,32], index: 22, kind: input, shape index: {}]   ;;  %s4943_s23 = inlined_call_operand.vmem [shape: f32[2,1,32], index: 23, kind: input, shape index: {}]   ;;  %s4944_s24 = inlined_call_operand.vmem [shape: f32[1,32], index: 24, kind: input, shape index: {}]   ;;  %s4945_s25 = inlined_call_operand.vmem [shape: f32[1,32], index: 25, kind: input, shape index: {}]   ;;  %s4946_s26 = inlined_call_operand.hbm [shape: f32[2,8,32], index: 26, kind: output, shape index: {}]  }
   0x1   :  { %4956 = sst [smem:[#allocation29_spill]] %s4920_s0 }
   0x2   :  { %4957 = sst [smem:[#allocation30_spill]] %s4921_s1 }
   0x3   :  { %4958 = sst [smem:[#allocation31_spill]] %s4922_s2 }
   0x4   :  { %4959 = sst [smem:[#allocation32_spill]] %s4923_s3 }
   0x5   :  { %4960 = sst [smem:[#allocation33_spill]] %s4924_s4 }
   0x6   :  { %4961 = sst [smem:[#allocation34_spill]] %s4925_s5 }
   0x7   :  { %4962 = sst [smem:[#allocation35_spill]] %s4926_s6 }
   0x8   :  { %4963 = sst [smem:[#allocation36_spill]] %s4927_s7 }
   0x9   :  { %4964 = sst [smem:[#allocation37_spill]] %s4928_s8 }
   0xa   :  { %4965 = sst [smem:[#allocation38_spill]] %s4929_s9 }
   0xb   :  { %4966 = sst [smem:[#allocation39_spill]] %s4930_s10 }
   0xc   :  { %4967 = sst [smem:[#allocation40_spill]] %s4931_s11 }
   0xd   :  { %4968 = sst [smem:[#allocation41_spill]] %s4932_s12 }
   0xe   :  { %4969 = sst [smem:[#allocation42_spill]] %s4934_s14 }
   0xf   :  { %4970 = sst [smem:[#allocation43_spill]] %s4935_s15 }
  0x10   :  { %4971 = sst [smem:[#allocation44_spill]] %s4936_s16 }
  0x11   :  { %4972 = sst [smem:[#allocation45_spill]] %s4937_s17 }
  0x12   :  { %4973 = sst [smem:[#allocation46_spill]] %s4938_s18 }
  0x13   :  { %4974 = sst [smem:[#allocation47_spill]] %s4939_s19 }
  0x14   :  { %4975 = sst [smem:[#allocation48_spill]] %s4940_s20 }
  0x15   :  { %4976 = sst [smem:[#allocation49_spill]] %s4941_s21 }
  0x16   :  { %4977 = sst [smem:[#allocation50_spill]] %s4942_s22 }
  0x17   :  { %4978 = sst [smem:[#allocation51_spill]] %s4943_s23 }
  0x18   :  { %4979 = sst [smem:[#allocation52_spill]] %s4944_s24 }
  0x19   :  { %4980 = sst [smem:[#allocation53_spill]] %s4945_s25 }
  0x1a   :  { %4981 = sst [smem:[#allocation54_spill]] %s4946_s26 }
  0x1b   :  { %31 = vsyncpa [#allocation5], 0 }
  0x1c   :  { %32 = vsyncpa [#allocation8], 0 }
  0x1d   :  { %33 = vsyncpa [#allocation11], 0 }
  0x1e   :  { %34 = vsyncpa [#allocation6], 0  ;;  %s4207_s27 = smov 0   ;;  %s4209_s3 = smov 0  }
  0x1f   :  { %s4211_s7 = smov 0   ;;  %s4213_s28 = smov 0  }
  0x20   :  { %s4215_s8 = smov 0   ;;  %s4217_s4 = smov 0  }
  0x21 LB: > { %4982 = sst [smem:[#allocation24_spill]] %s4033_s7  ;;  %s4236_s29 = sadd.s32 4294967295, %s4045_s4   ;;  %s4045_s4 = sphi %s4217_s4, %s40_s4   ;;  %s4041_s8 = sphi %s4215_s8, %s5043_s8   ;;  %s4037_s28 = sphi %s4213_s28, %s5042_s28   ;;  %s4033_s7 = sphi %s4211_s7, %s5041_s7   ;;  %s4029_s3 = sphi %s4209_s3, %s5045_s3   ;;  %s4025_s27 = sphi %s4207_s27, %s5044_s27  }
  0x22   : > { %4983 = sst [smem:[#allocation25_spill]] %s4041_s8  ;;  %p202_p0 = scmp.ne.s32.totalorder %s4029_s3, %s4025_s27 }
  0x23   : > { %4984 = sst [smem:[#allocation26_spill]] %s4045_s4  ;;  %p203_p1 = scmp.eq.s32.totalorder %s4236_s29, 0 }
  0x24   : > { %p3238_p2 = scmp.ge.s32.totalorder %s4045_s4, 1  ;;  %p749_p3 = scmp.lt.s32.totalorder %s4045_s4, 3 }
  0x25   : > { %p4244_p4 = por %p203_p1, %p202_p0  ;;  %s4986_s2 = sld [smem:[#allocation29_spill]] }
  0x26   : > { %p4251_p5 = pnand %p3238_p2, %p749_p3  ;;  %s4047_s6 = smov [#allocation4]  }
  0x27   : > { %s765_s1 = sshll.u32 %s4047_s6, 4  ;;  %s4947_s9 = smov 128   ;;  %s766_s1 = int_to_ptr.vmem [resolvable:$true] %s765_s1 }
  0x28   : > { %p3438_p6 = pneg %p4251_p5  ;;  %s4949_s30 = smov 8  }
  0x29   : > { %s189_s6 = sadd.s32 1, %s4033_s7  ;;  %p196_p9 = scmp.ne.s32.totalorder %s4033_s7, %s4029_s3 }
  0x2a   : > { %p4259_p7 = pnand %p3438_p6, %p203_p1  ;;  %p197_p10 = scmp.eq.s32.totalorder %s4045_s4, 0 }
  0x2b   : > { %s763_s5 = sshll.u32 %s4986_s2, 4  ;;  %s49_s2 = sadd.s32 1, %s4041_s8  ;;  %s764_s5 = int_to_ptr.hbm [resolvable:$true] %s763_s5 }
  0x2c   : > { %3441 = dma.hbm_to_vmem [thread:$0]  (!%p4259_p7), %s764_s5, 256, %s766_s1, [#allocation5], %s4947_s9, %s4947_s9, %s4949_s30  }
  0x2d   : > { %p50_p8 = scmp.ge.s32.totalorder %s49_s2, 2  ;;  %p4275_p11 = por %p197_p10, %p196_p9 }
  0x2e   : > { %p3474_p12 = scmp.lt.s32.totalorder %s4045_s4, 2  ;;  %s842_s24 = sand.u32 1, %s4045_s4  }
  0x2f   : > { %s5047_s2 = smov (%p50_p8, %s49_s2), 0  ;;  %s4284_s23 = sand.u32 1, %s4033_s7  }
  0x30   : > { %4989 = sst [smem:[#allocation27_spill]] %s5047_s2  ;;  %s186_s25 = ssub.s32 %s4041_s8, %s5047_s2 }
  0x31   : > { %p187_p13 = scmp.eq.s32.totalorder %s186_s25, 0  ;;  %s4991_s9 = sld [smem:[#allocation34_spill]] }
  0x32   : > { %s845_s18 = scalar_lea.vmem [#allocation12], %s4284_s23  ;;  %p4296_p0 = pnand %p3474_p12, %p4275_p11 }
  0x33   : > { %s4291_s22 = scalar_select %p187_p13, %s4033_s7, %s189_s6  }
  0x34   : > { %s852_s17 = sshll.u32 %s845_s18, 4  ;;  %s4301_s5 = sshll.u32 %s4284_s23, 4  ;;  %s853_s17 = int_to_ptr.vmem [resolvable:$true] %s852_s17 }
  0x35   : > { %4992 = sst [smem:[#allocation28_spill]] %s4291_s22  ;;  %s896_s26 = scalar_lea.vmem [#allocation13], %s4284_s23 }
  0x36   : > { %s4994_s11 = sld [smem:[#allocation40_spill]]  ;;  %s903_s6 = sshll.u32 %s896_s26, 4  ;;  %s904_s6 = int_to_ptr.vmem [resolvable:$true] %s903_s6 }
  0x37   : > { %s848_s30 = scalar_lea.hbm %s4991_s9, %s4041_s8  ;;  %s4317_s22 = sshll.u32 %s4041_s8, 4 }
  0x38   : > { %s850_s21 = sshll.u32 %s848_s30, 4  ;;  %s4307_s30 = scalar_lea.sflag [#allocation5], %s842_s24  ;;  %s851_s21 = int_to_ptr.hbm [resolvable:$true] %s850_s21 }
  0x39   : > { %3454 = dma.hbm_to_vmem [thread:$0]  (!%p4296_p0), %s851_s21, 16, %s853_s17, %s4307_s30  }
  0x3a   : > { %s4995_s14 = sld [smem:[#allocation42_spill]]  ;;  %s928_s17 = scalar_lea.vmem [#allocation14], %s4301_s5 }
  0x3b   : > { %s936_s21 = sshll.u32 %s928_s17, 4  ;;  %s4954_s26 = smov 64   ;;  %s937_s21 = int_to_ptr.vmem [resolvable:$true] %s936_s21 }
  0x3c   : > { %s899_s9 = scalar_lea.hbm %s4994_s11, %s4041_s8  ;;  %s4051_s11 = smov 4  }
  0x3d   : > { %s901_s18 = sshll.u32 %s899_s9, 4  ;;  %s4996_s16 = sld [smem:[#allocation44_spill]]  ;;  %s902_s18 = int_to_ptr.hbm [resolvable:$true] %s901_s18 }
  0x3e   : > { %3457 = dma.hbm_to_vmem [thread:$0]  (!%p4296_p0), %s902_s18, 16, %s904_s6, %s4307_s30  }
  0x3f   : > { %s956_s24 = scalar_lea.vmem [#allocation15], %s4301_s5  ;;  %s4997_s4 = sld [smem:[#allocation30_spill]] }
  0x40   : > { %s933_s1 = scalar_lea.hbm %s4995_s14, %s4317_s22  ;;  %s964_s14 = sshll.u32 %s956_s24, 4  ;;  %s965_s14 = int_to_ptr.vmem [resolvable:$true] %s964_s14 }
  0x41   : > { %s934_s9 = sshll.u32 %s933_s1, 4  ;;  %s4998_s19 = sld [smem:[#allocation47_spill]]  ;;  %s935_s9 = int_to_ptr.hbm [resolvable:$true] %s934_s9 }
  0x42   : > { %3460 = dma.hbm_to_vmem [thread:$0]  (!%p4296_p0), %s935_s9, 256, %s937_s21, %s4307_s30, %s4954_s26, %s4954_s26, %s4051_s11  }
  0x43   : > { %s961_s2 = scalar_lea.hbm %s4996_s16, %s4317_s22  ;;  %s4052_s21 = smov [#allocation7]  }
  0x44   : > { %s962_s17 = sshll.u32 %s961_s2, 4  ;;  %s782_s9 = sshll.u32 %s4052_s21, 4  ;;  %s963_s17 = int_to_ptr.hbm [resolvable:$true] %s962_s17  ;;  %s783_s9 = int_to_ptr.vmem [resolvable:$true] %s782_s9 }
  0x45   : > { %s780_s15 = sshll.u32 %s4997_s4, 4  ;;  %s989_s4 = scalar_lea.vmem [#allocation16], %s4284_s23  ;;  %s781_s15 = int_to_ptr.hbm [resolvable:$true] %s780_s15 }
  0x46   : > { %3463 = dma.hbm_to_vmem [thread:$0]  (!%p4296_p0), %s963_s17, 256, %s965_s14, %s4307_s30, %s4954_s26, %s4954_s26, %s4051_s11  }
  0x47   : > { %s992_s2 = scalar_lea.hbm %s4998_s19, %s4041_s8  ;;  %s996_s24 = sshll.u32 %s989_s4, 4  ;;  %s997_s24 = int_to_ptr.vmem [resolvable:$true] %s996_s24 }
  0x48   : > { %3444 = dma.hbm_to_vmem [thread:$0]  (!%p4259_p7), %s781_s15, 128, %s783_s9, [#allocation8], %s4954_s26, %s4954_s26, %s4051_s11  }
  0x49   : > { %s994_s7 = sshll.u32 %s992_s2, 4  ;;  %s4999_s1 = sld [smem:[#allocation31_spill]]  ;;  %s995_s7 = int_to_ptr.hbm [resolvable:$true] %s994_s7 }
  0x4a   : > { %3466 = dma.hbm_to_vmem [thread:$0]  (!%p4296_p0), %s995_s7, 16, %s997_s24, %s4307_s30  }
  0x4b   : > { %s4053_s18 = smov [#allocation9]   ;;  %s5000_s9 = sld [smem:[#allocation32_spill]] }
  0x4c   : > { %s799_s6 = sshll.u32 %s4053_s18, 4  ;;  %s5001_s4 = smov 8   ;;  %s800_s6 = int_to_ptr.vmem [resolvable:$true] %s799_s6 }
  0x4d   : > { %s5002_s26 = smov 128   ;;  %s4054_s7 = smov [#allocation10]  }
  0x4e   : > { %s816_s24 = sshll.u32 %s4054_s7, 4  ;;  %s5003_s20 = sld [smem:[#allocation48_spill]]  ;;  %s817_s24 = int_to_ptr.vmem [resolvable:$true] %s816_s24 }
  0x4f   : > { %s797_s21 = sshll.u32 %s4999_s1, 4  ;;  %s1007_s15 = scalar_lea.vmem [#allocation17], %s4301_s5  ;;  %s798_s21 = int_to_ptr.hbm [resolvable:$true] %s797_s21 }
  0x50   : > { %3447 = dma.hbm_to_vmem [thread:$0]  (!%p4259_p7), %s798_s21, 256, %s800_s6, [#allocation8], %s5002_s26, %s5002_s26, %s5001_s4  }
  0x51   : > { %s814_s2 = sshll.u32 %s5000_s9, 4  ;;  %s1015_s23 = sshll.u32 %s1007_s15, 4  ;;  %s815_s2 = int_to_ptr.hbm [resolvable:$true] %s814_s2  ;;  %s1016_s23 = int_to_ptr.vmem [resolvable:$true] %s1015_s23 }
  0x52   : > { %3450 = dma.hbm_to_vmem [thread:$0]  (!%p4259_p7), %s815_s2, 256, %s817_s24, [#allocation11], %s5002_s26, %s5002_s26, %s5001_s4  }
  0x53   : > { %s5004_s21 = smov 64   ;;  %1047 = sbr.rel (%p4251_p5) target bundleno = 3769 (0xeb9), region = 124 }
  0x54   : > { %s1012_s1 = scalar_lea.hbm %s5003_s20, %s4317_s22 }
  0x55   : > { %s1013_s18 = sshll.u32 %s1012_s1, 4  ;;  %s1014_s18 = int_to_ptr.hbm [resolvable:$true] %s1013_s18 }
  0x56   : > { %3469 = dma.hbm_to_vmem [thread:$0]  (!%p4296_p0), %s1014_s18, 256, %s1016_s23, %s4307_s30, %s5004_s21, %s5004_s21, %s4051_s11  }
  0x58   : > { %4004 = dma.done.wait (%p203_p1), [#allocation5], 256  }
  0x59   : > { %4006 = vsyncadd (%p203_p1), [#allocation5], 4294967040 }
  0x5a   : > { %4008 = dma.done.wait (%p203_p1), [#allocation8], 384  }
  0x5b   : > { %4010 = vsyncadd (%p203_p1), [#allocation8], 4294966912 }
  0x5c   : > { %4012 = dma.done.wait (%p203_p1), [#allocation11], 256  }
  0x5d   : > { %4014 = vsyncadd (%p203_p1), [#allocation11], 4294967040  ;;  %s1069_s11 = sand.u32 1, %s4236_s29   ;;  %s4400_s22 = sand.u32 1, %s4029_s3  }
  0x5e   : > { %s1070_s10 = scalar_lea.sflag [#allocation5], %s1069_s11 }
  0x5f   : > { %4016 = dma.done.wait (%p4244_p4), %s1070_s10, 816  }
  0x60   : > { %4018 = vsyncadd (%p4244_p4), %s1070_s10, 4294966480  ;;  %s4408_s25 = sshll.u32 %s4400_s22, 4  ;;  %p1261_p1 = scmp.lt.s32.totalorder %s4037_s28, 1 }
  0x61   : > { %s5006_s7 = sld [smem:[#allocation35_spill]]  ;;  %s1081_s10 = scalar_lea.vmem [#allocation13], %s4400_s22 }
  0x62   : > { %s4412_s5 = scalar_select %p1261_p1, %s4037_s28, 1 }
  0x63   : > { %s5008_s21 = sld [smem:[#allocation37_spill]]  ;;  %s1091_s30 = scalar_lea.vmem [#allocation14], %s4408_s25 }
  0x64   : > { %s3385_s9 = sshll.u32 %s4412_s5, 4  ;;  %s5011_s12 = sld [smem:[#allocation41_spill]] }
  0x65   : > { %s5014_s4 = sld [smem:[#allocation46_spill]]  ;;  %s1101_s26 = scalar_lea.vmem [#allocation15], %s4408_s25 }
  0x66   : > { %s5015_s0 = sld [smem:[#allocation49_spill]]  ;;  %s1110_s6 = scalar_lea.vmem [#allocation16], %s4400_s22 }
  0x67   : > { %s4422_s24 = scalar_lea.vmem %s5006_s7, %s3385_s9  ;;  %s5016_s1 = sld [smem:[#allocation50_spill]] }
  0x68   : > { %s1120_s20 = scalar_lea.vmem [#allocation17], %s4408_s25  ;;  %p3269_p2 = scmp.ne.s32.totalorder %s4037_s28, 0 }
  0x69   : > { %s4431_s11 = scalar_lea.vmem %s5008_s21, %s3385_s9 }
  0x6a   : > { %s4444_s14 = scalar_lea.vmem %s5011_s12, %s3385_s9  ;;  %s3388_s12 = sshll.u32 %s4412_s5, 5 }
  0x6b   : > { %s1299_s7 = scalar_lea.vmem %s5014_s4, %s4412_s5  ;;  %1316 = sbr.rel (%p3269_p2) target bundleno = 115 (0x73), region = 168 }
  0x6c   : > { %s1302_s9 = scalar_lea.vmem %s5015_s0, %s4412_s5 }
  0x6d   : > { %s4470_s15 = scalar_lea.vmem %s5016_s1, %s3388_s12 }
  0x70   : > { %v1317_v0 = vld [vmem:[#allocation4] sm:$0xff]  ;;  %vm1319_vm0 = vcmask 261120   ;;  %v1318_v1 = vld [vmem:[#allocation4 + $0x8] sm:$0xff] }
  0x71   : > { %1320 = vst.msk [vmem:[#allocation2] sm:$0xff] %vm1319_vm0, %v1317_v0 }
  0x72   : > { %1321 = vst.msk [vmem:[#allocation2 + $0x8] sm:$0xff] %vm1319_vm0, %v1318_v1 }
  0x73 PF: > { %vm1328_vm1 = vcmask 261120   ;;  %v4055_v6 = vmov 32.0   ;;  %v3391_v23 = vld [vmem:[%s4422_s24 + $0x8] sm:$0xff]  ;;  %v3390_v25 = vld [vmem:[%s4422_s24] sm:$0xff]  ;;  %s5018_s27 = sld [smem:[#allocation33_spill]]  ;;  %s5020_s2 = scalar_lea.vmem [#allocation12], %s4400_s22 }
  0x74   : > { %3567 = vrcp.f32 %v4055_v6  ;;  %1420 = vmatpush.bf16.msra.mxu0 %v3391_v23  ;;  %v3555_v49 = vld [vmem:[%s5020_s2] ss:$0 sm:$0xff]  ;;  %s5021_s0 = sld [smem:[#allocation36_spill]]  ;;  %s4056_s1 = smov 88   ;;  %vm1437_vm9 = vcmask 64512   ;;  %vm1514_vm10 = vcmask 1043456  }
  0x75   : > { %s4057_s23 = smov 96   ;;  %s4058_s18 = smov 80   ;;  %vm1678_vm11 = vcmask 130112   ;;  %vm1805_vm12 = vcmask 195712   ;;  %vm1932_vm13 = vcmask 261312  }
  0x76   : > { %s4059_s21 = smov 112   ;;  %s4060_s12 = smov 72  }
  0x77   : > { %s4061_s8 = smov 120   ;;  %s4064_s2 = smov 56  }
  0x78   : > { %v4482_v2 = vld [vmem:[#allocation2] sm:$0xff]  ;;  %1421 = vmatpush.bf16.msra.mxu0 %v3390_v25  ;;  %s4065_s4 = smov 48   ;;  %s4066_s16 = smov 40  }
  0x79   : > { %v1329_v3 = vsel %vm1328_vm1, %v4482_v2, 0.0  ;;  %v4486_v4 = vld [vmem:[#allocation2 + $0x8] sm:$0xff]  ;;  %s5019_s24 = scalar_lea.vmem %s5018_s27, %s4412_s5  ;;  %s4062_s27 = smov 104  }
  0x7a   : > { %1330 = vadd.xlane.f32.xlu0 %v1329_v3  ;;  %v1332_v5 = vsel %vm1328_vm1, %v4486_v4, 0.0  ;;  %v3568_v7 = vpop.eup %3567  ;;  %v3554_v44 = vld [vmem:[%s5019_s24] ss:$0 sm:$0xff]  ;;  %s5022_s17 = scalar_lea.vmem %s5021_s0, %s4412_s5  ;;  %s4063_s24 = smov 64  }
  0x7b   : > { %v1336_v8 = vmul.f32 32.0, %v3568_v7  ;;  %vm1340_vm2 = vweird.f32 %v3568_v7  ;;  %v3556_v54 = vld [vmem:[%s5022_s17] ss:$0 sm:$0xff]  ;;  %s4067_s0 = smov 8   ;;  %s4068_s17 = smov 16  }
  0x7c   : > { %p3377_p3 = scmp.ne.s32.totalorder %s4037_s28, 1 }
  0x7d   : > { %v1337_v9 = vsub.f32 1.0, %v1336_v8 }
  0x7f   : > { %v1338_v10 = vmul.f32 %v3568_v7, %v1337_v9 }
  0x81   : > { %v1339_v11 = vadd.f32 %v3568_v7, %v1338_v10 }
  0x82   : > { %1333 = vadd.xlane.f32.xlu0 %v1332_v5 }
  0x83   : > { %v4490_v12 = vsel %vm1340_vm2, %v3568_v7, %v1339_v11 }
  0xed   : > { %v1331_v13 = vpop.xlane.xlu0 %1330 }
  0xee   : > { %v1342_v14 = vmul.f32 %v4490_v12, %v1331_v13 }
  0xf0   : > { %v1344_v15 = vsub.f32 %v4482_v2, %v1342_v14 }
  0xf2   : > { %v1346_v16 = vmul.f32 %v1344_v15, %v1344_v15 }
  0xf4   : > { %v1348_v17 = vsel %vm1328_vm1, %v1346_v16, 0.0 }
  0xf5   : > { %1349 = vadd.xlane.f32.xlu1 %v1348_v17  ;;  %v1334_v18 = vpop.xlane.xlu0 %1333 }
  0xf6   : > { %v1343_v19 = vmul.f32 %v4490_v12, %v1334_v18 }
  0xf8   : > { %v1345_v20 = vsub.f32 %v4486_v4, %v1343_v19 }
  0xfa   : > { %v1347_v21 = vmul.f32 %v1345_v20, %v1345_v20 }
  0xfc   : > { %v1351_v22 = vsel %vm1328_vm1, %v1347_v21, 0.0 }
  0xfd   : > { %1352 = vadd.xlane.f32.xlu1 %v1351_v22 }
 0x168   : > { %v1350_v24 = vpop.xlane.xlu1 %1349 }
 0x169   : > { %v1354_v26 = vmul.f32 %v1350_v24, %v4490_v12 }
 0x16b   : > { %v1356_v27 = vadd.f32 1e-05, %v1354_v26 }
 0x16d   : > { %3569 = vrsqrt.f32 %v1356_v27  ;;  %vm1364_vm4 = vweird.f32 %v1356_v27 }
 0x170   : > { %v1353_v28 = vpop.xlane.xlu1 %1352 }
 0x171   : > { %v1355_v29 = vmul.f32 %v1353_v28, %v4490_v12 }
 0x173   : > { %v3570_v30 = vpop.eup %3569  ;;  %v1357_v31 = vadd.f32 1e-05, %v1355_v29 }
 0x174   : > { %v1359_v32 = vmul.f32 %v3570_v30, %v1356_v27  ;;  %vm1365_vm3 = vweird.f32 %v3570_v30  ;;  %v1430_v27 = vld [vmem:[#allocation9] sm:$0xff] }
 0x175   : > { %3571 = vrsqrt.f32 %v1357_v31  ;;  %vm1366_vm5 = vmor %vm1364_vm4, %vm1365_vm3  ;;  %vm1374_vm7 = vweird.f32 %v1357_v31 }
 0x176   : > { %v1360_v33 = vmul.f32 %v3570_v30, %v1359_v32 }
 0x178   : > { %v1361_v34 = vmul.f32 0.5, %v1360_v33  ;;  %v1431_v33 = vld [vmem:[#allocation9 + $0x8] sm:$0xff] }
 0x17a   : > { %v1362_v35 = vsub.f32 1.5, %v1361_v34 }
 0x17b   : > { %v3572_v36 = vpop.eup %3571 }
 0x17c   : > { %v1363_v37 = vmul.f32 %v3570_v30, %v1362_v35  ;;  %v1369_v38 = vmul.f32 %v3572_v36, %v1357_v31  ;;  %vm1375_vm6 = vweird.f32 %v3572_v36 }
 0x17d   : > { %vm1376_vm8 = vmor %vm1374_vm7, %vm1375_vm6 }
 0x17e   : > { %v1370_v39 = vmul.f32 %v3572_v36, %v1369_v38  ;;  %v1367_v40 = vsel %vm1366_vm5, %v3570_v30, %v1363_v37 }
 0x17f   : > { %v1378_v43 = vmul.f32 %v1367_v40, %v1344_v15 }
 0x180   : > { %v1371_v41 = vmul.f32 0.5, %v1370_v39 }
 0x181   : > { %v1383_v48 = vmul.f32 %v3554_v44, %v1378_v43 }
 0x182   : > { %v1372_v42 = vsub.f32 1.5, %v1371_v41 }
 0x183   : > { %v1388_v51 = vadd.f32 %v3555_v49, %v1383_v48 }
 0x184   : > { %v1373_v45 = vmul.f32 %v3572_v36, %v1372_v42 }
 0x186   : > { %v1377_v46 = vsel %vm1376_vm8, %v3572_v36, %v1373_v45 }
 0x187   : > { %v1379_v47 = vmul.f32 %v1377_v46, %v1345_v20 }
 0x189   : > { %v1384_v50 = vmul.f32 %v3554_v44, %v1379_v47 }
 0x18b   : > { %v1389_v52 = vadd.f32 %v3555_v49, %v1384_v50 }
 0x18d   : > { %v1390_v53 = vpack.c.bf16 %v1389_v52, %v1388_v51 }
 0x18f   : > { %3278 = vmatmul.msk.bf16.vlgmr.msra.gmra.mxu0 %vm1328_vm1, %v1390_v53 }
 0x20c   : > { %v1423_v55 = vpop.f32.mrf.mxu0 }
 0x20d   : > { %v1424_v56 = vadd.f32 %v3556_v54, %v1423_v55 }
 0x20f   : > { %v1428_v57 = vpack.c.bf16 %v1424_v56, %v1424_v56 }
 0x211   : > { %v1433_v58 = vunpack.c.l.b16 %v1428_v57 }
 0x213   : > { %v4515_v59 = vpack.c.b16 %v1433_v58, %v1433_v58 }
 0x214   : > { %v1425_v60 = vpop.f32.mrf.mxu0 }
 0x215   : > { %v1426_v61 = vadd.f32 %v3556_v54, %v1425_v60  ;;  %1556 = vrot.lane.b32.xlu0 %v4515_v59, %s4056_s1  ;;  %1435 = vrot.lane.b32.xlu2 %v4515_v59, %s4057_s23 }
 0x217   : > { %v1429_v62 = vpack.c.bf16 %v1426_v61, %v1426_v61 }
 0x219   : > { %v1458_v63 = vunpack.c.l.b16 %v1429_v62 }
 0x21b   : > { %v4521_v0 = vpack.c.b16 %v1458_v63, %v1458_v63 }
 0x21d   : > { %1579 = vrot.lane.b32.xlu1 %v4521_v0, %s4056_s1  ;;  %1706 = vrot.lane.b32.xlu0 %v4521_v0, %s4058_s18 }
 0x21e   : > { %1460 = vrot.lane.b32.xlu2 %v4521_v0, %s4057_s23 }
 0x225   : > { %1704 = vrot.lane.b32.xlu1 %v4521_v0, %s4059_s21  ;;  %1810 = vrot.lane.b32.xlu0 %v4515_v59, %s4060_s12 }
 0x226   : > { %1554 = vrot.lane.b32.xlu2 %v4515_v59, %s4061_s8 }
 0x22d   : > { %1808 = vrot.lane.b32.xlu1 %v4515_v59, %s4062_s27  ;;  %1831 = vrot.lane.b32.xlu0 %v4521_v0, %s4062_s27 }
 0x22e   : > { %1577 = vrot.lane.b32.xlu2 %v4521_v0, %s4061_s8 }
 0x236   : > { %1683 = vrot.lane.b32.xlu2 %v4515_v59, %s4058_s18 }
 0x23e   : > { %1681 = vrot.lane.b32.xlu2 %v4515_v59, %s4059_s21 }
 0x246   : > { %1833 = vrot.lane.b32.xlu2 %v4521_v0, %s4060_s12 }
 0x26f   : > { %v1436_v1 = vpop.permute.xlu2 %1435 }
 0x270   : > { %v1442_v3 = vsel %vm1437_vm9, %v1436_v1, 0 }
 0x271   : > { %1451 = vmatpush.bf16.xpose.msra.mxu1 %v1442_v3 }
 0x278   : > { %v1461_v5 = vpop.permute.xlu2 %1460  ;;  %3279 = vmatmul.msk.bf16.vlgmr.msra.gmra.mxu1 %vm1437_vm9, %v1428_v57 }
 0x279   : > { %v1466_v6 = vsel %vm1437_vm9, %v1461_v5, 0 }
 0x27a   : > { %1475 = vmatpush.bf16.xpose.msra.mxu2 %v1466_v6 }
 0x280   : > { %v1555_v7 = vpop.permute.xlu2 %1554 }
 0x281   : > { %3280 = vmatmul.msk.bf16.vlgmr.msra.gmra.mxu2 %vm1437_vm9, %v1429_v62 }
 0x287   : > { %v1557_v8 = vpop.permute.xlu0 %1556 }
 0x288   : > { %v1578_v9 = vpop.permute.xlu2 %1577  ;;  %v1562_v10 = vsel %vm1437_vm9, %v1557_v8, 0 }
 0x289   : > { %1571 = vmatpush.bf16.xpose.msrb.mxu0 %v1562_v10 }
 0x28f   : > { %v1580_v11 = vpop.permute.xlu1 %1579  ;;  %v1707_v13 = vpop.permute.xlu0 %1706 }
 0x290   : > { %v1712_v14 = vsel %vm1437_vm9, %v1707_v13, 0  ;;  %v1684_v15 = vpop.permute.xlu2 %1683  ;;  %3283 = vmatmul.msk.bf16.vlgmr.msrb.gmra.mxu0 %vm1437_vm9, %v1555_v7  ;;  %v1585_v16 = vsel %vm1437_vm9, %v1580_v11, 0 }
 0x291   : > { %v1689_v17 = vsel %vm1437_vm9, %v1684_v15, 0  ;;  %1594 = vmatpush.bf16.xpose.msrb.mxu1 %v1585_v16 }
 0x292   : > { %1698 = vmatpush.bf16.xpose.msra.mxu0 %v1689_v17 }
 0x297   : > { %v1811_v18 = vpop.permute.xlu0 %1810  ;;  %v1705_v23 = vpop.permute.xlu1 %1704 }
 0x298   : > { %v1816_v19 = vsel %vm1437_vm9, %v1811_v18, 0  ;;  %v1682_v20 = vpop.permute.xlu2 %1681  ;;  %3284 = vmatmul.msk.bf16.vlgmr.msrb.gmra.mxu1 %vm1437_vm9, %v1578_v9 }
 0x299   : > { %1721 = vmatpush.bf16.xpose.msra.mxu1 %v1712_v14 }
 0x29a   : > { %1825 = vmatpush.bf16.xpose.msrb.mxu0 %v1816_v19 }
 0x29f   : > { %v1809_v24 = vpop.permute.xlu1 %1808  ;;  %v1832_v25 = vpop.permute.xlu0 %1831 }
 0x2a0   : > { %v1834_v21 = vpop.permute.xlu2 %1833  ;;  %3287 = vmatmul.msk.bf16.vlgmr.msra.gmra.mxu0 %vm1437_vm9, %v1682_v20 }
 0x2a1   : > { %v1839_v22 = vsel %vm1437_vm9, %v1834_v21, 0 }
 0x2a2   : > { %1848 = vmatpush.bf16.xpose.msrb.mxu1 %v1839_v22 }
 0x2a8   : > { %3288 = vmatmul.msk.bf16.vlgmr.msra.gmra.mxu1 %vm1437_vm9, %v1705_v23 }
 0x2b0   : > { %3291 = vmatmul.msk.bf16.vlgmr.msrb.gmra.mxu0 %vm1437_vm9, %v1809_v24 }
 0x2b8   : > { %3292 = vmatmul.msk.bf16.vlgmr.msrb.gmra.mxu1 %vm1437_vm9, %v1832_v25 }
 0x2f5   : > { %v1453_v26 = vpop.f32.mrf.mxu1 }
 0x2f6   : > { %v1481_v28 = vmul.f32 0.35355338, %v1453_v26 }
 0x2f8   : > { %v1483_v29 = vadd.f32 %v1481_v28, %v1430_v27 }
 0x2fa   : > { %v1485_v30 = vsel %vm1437_vm9, %v1483_v29, -inf }
 0x2fb   : > { %1486 = vmax.xlane.f32.xlu2 %v1485_v30 }
 0x2fd   : > { %v1455_v31 = vpop.f32.mrf.mxu1 }
 0x304   : > { %v1477_v32 = vpop.f32.mrf.mxu2 }
 0x305   : > { %v1482_v34 = vmul.f32 0.35355338, %v1477_v32 }
 0x307   : > { %v1484_v35 = vadd.f32 %v1482_v34, %v1431_v33 }
 0x309   : > { %v1488_v36 = vsel %vm1437_vm9, %v1484_v35, -inf }
 0x30a   : > { %1489 = vmax.xlane.f32.xlu1 %v1488_v36 }
 0x30c   : > { %v1479_v37 = vpop.f32.mrf.mxu2 }
 0x30d   : > { %v1573_v38 = vpop.f32.mrf.mxu0 }
 0x30e   : > { %v1600_v39 = vmul.f32 0.35355338, %v1573_v38 }
 0x310   : > { %v1602_v40 = vadd.f32 %v1600_v39, %v1430_v27 }
 0x312   : > { %v1604_v41 = vsel %vm1437_vm9, %v1602_v40, -inf }
 0x313   : > { %1531 = vrot.lane.b32.xlu2 %v4521_v0, %s4063_s24  ;;  %1605 = vmax.xlane.f32.xlu0 %v1604_v41 }
 0x315   : > { %v1575_v42 = vpop.f32.mrf.mxu0  ;;  %v1596_v43 = vpop.f32.mrf.mxu1 }
 0x316   : > { %v1601_v52 = vmul.f32 0.35355338, %v1596_v43 }
 0x318   : > { %v1603_v54 = vadd.f32 %v1601_v52, %v1431_v33 }
 0x31a   : > { %v1607_v56 = vsel %vm1437_vm9, %v1603_v54, -inf }
 0x31b   : > { %1649 = vrot.lane.b32.xlu2 %v4521_v0, %s4064_s2 }
 0x31d   : > { %v1598_v44 = vpop.f32.mrf.mxu1  ;;  %v1700_v45 = vpop.f32.mrf.mxu0 }
 0x31e   : > { %v1727_v57 = vmul.f32 0.35355338, %v1700_v45 }
 0x320   : > { %v1729_v61 = vadd.f32 %v1727_v57, %v1430_v27 }
 0x322   : > { %v1731_v63 = vsel %vm1437_vm9, %v1729_v61, -inf }
 0x323   : > { %1509 = vrot.lane.b32.xlu1 %v4515_v59, %s4063_s24  ;;  %s4069_s24 = smov 24  }
 0x325   : > { %v1702_v46 = vpop.f32.mrf.mxu0  ;;  %v1723_v47 = vpop.f32.mrf.mxu1 }
 0x326   : > { %v1728_v60 = vmul.f32 0.35355338, %v1723_v47 }
 0x327   : > { %1628 = vrot.lane.b32.xlu0 %v4515_v59, %s4064_s2 }
 0x328   : > { %v1730_v1 = vadd.f32 %v1728_v60, %v1431_v33 }
 0x32a   : > { %v1734_v5 = vsel %vm1437_vm9, %v1730_v1, -inf }
 0x32d   : > { %v1725_v48 = vpop.f32.mrf.mxu1  ;;  %v1827_v49 = vpop.f32.mrf.mxu0 }
 0x32e   : > { %v1854_v3 = vmul.f32 0.35355338, %v1827_v49 }
 0x330   : > { %v1856_v6 = vadd.f32 %v1854_v3, %v1430_v27 }
 0x332   : > { %v1858_v7 = vsel %vm1437_vm9, %v1856_v6, -inf }
 0x335   : > { %v1829_v50 = vpop.f32.mrf.mxu0  ;;  %v1850_v51 = vpop.f32.mrf.mxu1 }
 0x336   : > { %v1855_v55 = vmul.f32 0.35355338, %v1850_v51 }
 0x338   : > { %v4571_v58 = vadd.f32 %v1855_v55, %v1431_v33 }
 0x33a   : > { %v1861_v62 = vsel %vm1437_vm9, %v4571_v58, -inf }
 0x33d   : > { %v1852_v53 = vpop.f32.mrf.mxu1 }
 0x344   : > { %1608 = vmax.xlane.f32.xlu2 %v1607_v56 }
 0x34c   : > { %1862 = vmax.xlane.f32.xlu2 %v1861_v62 }
 0x34d   : > { %1732 = vmax.xlane.f32.xlu1 %v1731_v63 }
 0x351   : > { %1735 = vmax.xlane.f32.xlu0 %v1734_v5 }
 0x359   : > { %1859 = vmax.xlane.f32.xlu0 %v1858_v7 }
 0x36e   : > { %v1487_v8 = vpop.xlane.xlu2 %1486 }
 0x36f   : > { %v1491_v9 = vsub.f32 %v1483_v29, %v1487_v8 }
 0x371   : > { %v1493_v10 = vmul.f32 1.442695, %v1491_v9 }
 0x373   : > { %3573 = vpow2.f32 %v1493_v10 }
 0x376   : > { %v1532_v22 = vpop.permute.xlu2 %1531 }
 0x377   : > { %v1537_v26 = vsel %vm1514_vm10, %v1532_v22, 0 }
 0x379   : > { %v4578_v11 = vpop.eup %3573 }
 0x37a   : > { %v1497_v13 = vsel %vm1437_vm9, %v4578_v11, 0.0 }
 0x37b   : > { %1498 = vadd.xlane.f32.xlu2 %v1497_v13 }
 0x37d   : > { %v1490_v14 = vpop.xlane.xlu1 %1489 }
 0x37e   : > { %v1492_v17 = vsub.f32 %v1484_v35, %v1490_v14  ;;  %v1650_v30 = vpop.permute.xlu2 %1649 }
 0x37f   : > { %v1655_v60 = vsel %vm1514_vm10, %v1650_v30, 0 }
 0x380   : > { %v1495_v19 = vmul.f32 1.442695, %v1492_v17 }
 0x386   : > { %v1606_v15 = vpop.xlane.xlu0 %1605 }
 0x387   : > { %v1610_v16 = vsub.f32 %v1602_v40, %v1606_v15 }
 0x389   : > { %v1612_v18 = vmul.f32 1.442695, %v1610_v16 }
 0x38b   : > { %3575 = vpow2.f32 %v1612_v18 }
 0x38c   : > { %3577 = vpow2.f32 %v1495_v19 }
 0x391   : > { %v4582_v20 = vpop.eup %3575 }
 0x392   : > { %v1616_v21 = vsel %vm1437_vm9, %v4582_v20, 0.0  ;;  %v4589_v25 = vpop.eup %3577 }
 0x393   : > { %1617 = vadd.xlane.f32.xlu0 %v1616_v21  ;;  %1776 = vrot.lane.b32.xlu2 %v4521_v0, %s4065_s4  ;;  %v1500_v29 = vsel %vm1437_vm9, %v4589_v25, 0.0 }
 0x395   : > { %v1510_v23 = vpop.permute.xlu1 %1509 }
 0x396   : > { %v1516_v24 = vsel %vm1514_vm10, %v1510_v23, 0 }
 0x397   : > { %1525 = vmatpush.bf16.msra.mxu3 %v1516_v24 }
 0x399   : > { %v1629_v27 = vpop.permute.xlu0 %1628 }
 0x39a   : > { %v1634_v28 = vsel %vm1514_vm10, %v1629_v27, 0 }
 0x39b   : > { %1546 = vmatpush.bf16.msrb.mxu3 %v1537_v26  ;;  %1643 = vmatpush.bf16.msrb.mxu2 %v1634_v28 }
 0x39c   : > { %1501 = vadd.xlane.f32.xlu0 %v1500_v29 }
 0x3b7   : > { %v1609_v31 = vpop.xlane.xlu2 %1608 }
 0x3b8   : > { %v1611_v32 = vsub.f32 %v1603_v54, %v1609_v31 }
 0x3ba   : > { %v1614_v33 = vmul.f32 1.442695, %v1611_v32 }
 0x3bc   : > { %3579 = vpow2.f32 %v1614_v33 }
 0x3bf   : > { %v1863_v51 = vpop.xlane.xlu2 %1862 }
 0x3c0   : > { %v1733_v34 = vpop.xlane.xlu1 %1732  ;;  %v1865_v54 = vsub.f32 %v4571_v58, %v1863_v51 }
 0x3c1   : > { %v1737_v35 = vsub.f32 %v1729_v61, %v1733_v34 }
 0x3c2   : > { %v3580_v36 = vpop.eup %3579  ;;  %v1868_v57 = vmul.f32 1.442695, %v1865_v54 }
 0x3c3   : > { %v1739_v37 = vmul.f32 1.442695, %v1737_v35  ;;  %v1619_v38 = vsel %vm1437_vm9, %v3580_v36, 0.0 }
 0x3c4   : > { %v1736_v39 = vpop.xlane.xlu0 %1735  ;;  %1620 = vadd.xlane.f32.xlu1 %v1619_v38 }
 0x3c5   : > { %3581 = vpow2.f32 %v1739_v37  ;;  %v1738_v40 = vsub.f32 %v1730_v1, %v1736_v39 }
 0x3c7   : > { %v1741_v41 = vmul.f32 1.442695, %v1738_v40 }
 0x3c9   : > { %3583 = vpow2.f32 %v1741_v41 }
 0x3cb   : > { %v4596_v42 = vpop.eup %3581 }
 0x3cc   : > { %v1860_v43 = vpop.xlane.xlu0 %1859  ;;  %v1743_v44 = vsel %vm1437_vm9, %v4596_v42, 0.0 }
 0x3cd   : > { %v1864_v45 = vsub.f32 %v1856_v6, %v1860_v43  ;;  %1744 = vadd.xlane.f32.xlu2 %v1743_v44 }
 0x3cf   : > { %v3584_v46 = vpop.eup %3583  ;;  %v1866_v47 = vmul.f32 1.442695, %v1864_v45 }
 0x3d0   : > { %v1746_v48 = vsel %vm1437_vm9, %v3584_v46, 0.0 }
 0x3d1   : > { %3585 = vpow2.f32 %v1866_v47  ;;  %1747 = vadd.xlane.f32.xlu0 %v1746_v48 }
 0x3d7   : > { %v4601_v49 = vpop.eup %3585 }
 0x3d8   : > { %v1870_v50 = vsel %vm1437_vm9, %v4601_v49, 0.0 }
 0x3d9   : > { %1871 = vadd.xlane.f32.xlu0 %v1870_v50 }
 0x3dd   : > { %1755 = vrot.lane.b32.xlu1 %v4515_v59, %s4065_s4 }
 0x3e5   : > { %1903 = vrot.lane.b32.xlu2 %v4521_v0, %s4066_s16 }
 0x3ed   : > { %1882 = vrot.lane.b32.xlu0 %v4515_v59, %s4066_s16  ;;  %s5023_s16 = sld [smem:[#allocation38_spill]] }
 0x3ee   : > { %v1499_v52 = vpop.xlane.xlu2 %1498 }
 0x3ef   : > { %3587 = vrcp.f32 %v1499_v52 }
 0x3f0   : > { %3589 = vpow2.f32 %v1868_v57 }
 0x3f3   : > { %s5024_s19 = scalar_lea.vmem %s5023_s16, %s4412_s5  ;;  %s5027_s16 = sld [smem:[#allocation39_spill]] }
 0x3f5   : > { %v3588_v53 = vpop.eup %3587 }
 0x3f6   : > { %v1505_v55 = vmul.f32 %v3588_v53, %v4578_v11  ;;  %v3590_v61 = vpop.eup %3589  ;;  %v1777_v6 = vpop.permute.xlu2 %1776 }
 0x3f7   : > { %v1873_v62 = vsel %vm1437_vm9, %v3590_v61, 0.0  ;;  %v1782_v8 = vsel %vm1514_vm10, %v1777_v6, 0 }
 0x3f8   : > { %v1507_v56 = vpack.c.bf16 %v1505_v55, %v1505_v55  ;;  %v3393_v55 = vld [vmem:[%s4431_s11 + $0x8] sm:$0xff] }
 0x3f9   : > { %1973 = vmatpush.bf16.msra.mxu0 %v3393_v55 }
 0x3fa   : > { %3281 = vmatmul.msk.bf16.vlgmr.msra.gmra.mxu3 %vm1437_vm9, %v1507_v56 }
 0x3fb   : > { %1664 = vmatpush.bf16.msra.mxu3 %v1655_v60  ;;  %v3392_v60 = vld [vmem:[%s4431_s11] sm:$0xff] }
 0x3fd   : > { %1974 = vmatpush.bf16.msra.mxu0 %v3392_v60 }
 0x406   : > { %v1618_v0 = vpop.xlane.xlu0 %1617 }
 0x407   : > { %3591 = vrcp.f32 %v1618_v0  ;;  %1874 = vadd.xlane.f32.xlu1 %v1873_v62 }
 0x40d   : > { %v3592_v59 = vpop.eup %3591 }
 0x40e   : > { %v1624_v63 = vmul.f32 %v3592_v59, %v4582_v20 }
 0x40f   : > { %v1502_v58 = vpop.xlane.xlu0 %1501 }
 0x410   : > { %3593 = vrcp.f32 %v1502_v58  ;;  %v1626_v1 = vpack.c.bf16 %v1624_v63, %v1624_v63 }
 0x412   : > { %3285 = vmatmul.msk.bf16.vlgmr.msrb.gmra.mxu2 %vm1437_vm9, %v1626_v1 }
 0x416   : > { %v3594_v3 = vpop.eup %3593 }
 0x417   : > { %v1506_v5 = vmul.f32 %v3594_v3, %v4589_v25 }
 0x419   : > { %v1508_v7 = vpack.c.bf16 %v1506_v5, %v1506_v5  ;;  %v3557_v5 = vld [vmem:[%s5024_s19] ss:$0 sm:$0xff]  ;;  %s5028_s19 = scalar_lea.vmem %s5027_s16, %s4412_s5 }
 0x41b   : > { %3282 = vmatmul.msk.bf16.vlgmr.msrb.gmra.mxu3 %vm1437_vm9, %v1508_v7 }
 0x41c   : > { %1791 = vmatpush.bf16.msrb.mxu3 %v1782_v8 }
 0x437   : > { %v1621_v9 = vpop.xlane.xlu1 %1620 }
 0x438   : > { %3595 = vrcp.f32 %v1621_v9 }
 0x43e   : > { %v3596_v10 = vpop.eup %3595 }
 0x43f   : > { %v1625_v11 = vmul.f32 %v3596_v10, %v3580_v36 }
 0x440   : > { %v1745_v13 = vpop.xlane.xlu2 %1744 }
 0x441   : > { %v1627_v14 = vpack.c.bf16 %v1625_v11, %v1625_v11  ;;  %3597 = vrcp.f32 %v1745_v13 }
 0x443   : > { %3286 = vmatmul.msk.bf16.vlgmr.msra.gmra.mxu3 %vm1437_vm9, %v1627_v14 }
 0x444   : > { %v1748_v15 = vpop.xlane.xlu0 %1747 }
 0x445   : > { %3599 = vrcp.f32 %v1748_v15  ;;  %v3397_v15 = vld [vmem:[%s1091_s30 + $0x8] sm:$0xff] }
 0x447   : > { %v3598_v18 = vpop.eup %3597 }
 0x448   : > { %v1904_v16 = vpop.permute.xlu2 %1903  ;;  %v1751_v21 = vmul.f32 %v3598_v18, %v4596_v42 }
 0x449   : > { %v1909_v17 = vsel %vm1514_vm10, %v1904_v16, 0  ;;  %v3396_v16 = vld [vmem:[%s1091_s30] sm:$0xff]  ;;  %s5025_s30 = sld [smem:[#allocation43_spill]] }
 0x44a   : > { %1918 = vmatpush.bf16.msra.mxu3 %v1909_v17  ;;  %v1753_v25 = vpack.c.bf16 %v1751_v21, %v1751_v21 }
 0x44b   : > { %v3600_v19 = vpop.eup %3599 }
 0x44c   : > { %v1752_v20 = vmul.f32 %v3600_v19, %v3584_v46  ;;  %v1872_v26 = vpop.xlane.xlu0 %1871 }
 0x44d   : > { %3601 = vrcp.f32 %v1872_v26  ;;  %v3395_v26 = vld [vmem:[%s4444_s14 + $0x8] sm:$0xff] }
 0x44e   : > { %v1754_v24 = vpack.c.bf16 %v1752_v20, %v1752_v20  ;;  %2069 = vmatpush.bf16.msra.mxu1 %v3395_v26 }
 0x44f   : > { %v1756_v22 = vpop.permute.xlu1 %1755  ;;  %s5026_s2 = scalar_lea.vmem %s5025_s30, %s4412_s5 }
 0x450   : > { %v1761_v23 = vsel %vm1514_vm10, %v1756_v22, 0 }
 0x451   : > { %1770 = vmatpush.bf16.msra.mxu2 %v1761_v23 }
 0x453   : > { %3290 = vmatmul.msk.bf16.vlgmr.msrb.gmra.mxu3 %vm1437_vm9, %v1754_v24  ;;  %v3602_v27 = vpop.eup %3601 }
 0x454   : > { %3289 = vmatmul.msk.bf16.vlgmr.msra.gmra.mxu2 %vm1437_vm9, %v1753_v25  ;;  %v1878_v28 = vmul.f32 %v3602_v27, %v4601_v49 }
 0x456   : > { %v1880_v31 = vpack.c.bf16 %v1878_v28, %v1878_v28 }
 0x45f   : > { %v1883_v29 = vpop.permute.xlu0 %1882 }
 0x460   : > { %v1888_v30 = vsel %vm1514_vm10, %v1883_v29, 0 }
 0x461   : > { %1897 = vmatpush.bf16.msrb.mxu2 %v1888_v30  ;;  %v3394_v30 = vld [vmem:[%s4444_s14] sm:$0xff] }
 0x462   : > { %2070 = vmatpush.bf16.msra.mxu1 %v3394_v30 }
 0x464   : > { %3293 = vmatmul.msk.bf16.vlgmr.msrb.gmra.mxu2 %vm1437_vm9, %v1880_v31  ;;  %v3560_v31 = vld [vmem:[%s5026_s2] ss:$0 sm:$0xff]  ;;  %s5029_s2 = scalar_lea.vmem %s4933_s13, %s4412_s5 }
 0x465   : > { %2111 = vmatpush.bf16.msra.mxu2 %v3397_v15 }
 0x469   : > { %2112 = vmatpush.bf16.msra.mxu2 %v3396_v16 }
 0x47a   : > { %v1875_v32 = vpop.xlane.xlu1 %1874 }
 0x47b   : > { %3603 = vrcp.f32 %v1875_v32 }
 0x47d   : > { %v1527_v33 = vpop.f32.mrf.mxu3 }
 0x47e   : > { %1552 = vst.msk [vmem:[#allocation3] sm:$0xff] %vm1437_vm9, %v1527_v33 }
 0x481   : > { %v3604_v34 = vpop.eup %3603 }
 0x482   : > { %v1879_v35 = vmul.f32 %v3604_v34, %v3590_v61 }
 0x484   : > { %v1881_v36 = vpack.c.bf16 %v1879_v35, %v1879_v35 }
 0x485   : > { %v1529_v37 = vpop.f32.mrf.mxu3 }
 0x486   : > { %3294 = vmatmul.msk.bf16.vlgmr.msra.gmra.mxu3 %vm1437_vm9, %v1881_v36 }
 0x495   : > { %v1645_v38 = vpop.f32.mrf.mxu2 }
 0x496   : > { %1672 = vrot.lane.b32.xlu0 %v1645_v38, %s4067_s0 }
 0x49d   : > { %v1647_v40 = vpop.f32.mrf.mxu2 }
 0x49e   : > { %v1548_v39 = vpop.f32.mrf.mxu3 }
 0x49f   : > { %1553 = vst.msk [vmem:[#allocation3 + $0x8] sm:$0xff] %vm1437_vm9, %v1548_v39 }
 0x4a6   : > { %v1550_v41 = vpop.f32.mrf.mxu3 }
 0x4c6   : > { %v1666_v42 = vpop.f32.mrf.mxu3 }
 0x4c7   : > { %1674 = vrot.lane.b32.xlu2 %v1666_v42, %s4067_s0 }
 0x4ce   : > { %v1668_v43 = vpop.f32.mrf.mxu3 }
 0x4d6   : > { %v1793_v44 = vpop.f32.mrf.mxu3 }
 0x4d7   : > { %1801 = vrot.lane.b32.xlu2 %v1793_v44, %s4068_s17  ;;  %v1772_v45 = vpop.f32.mrf.mxu2 }
 0x4d8   : > { %1799 = vrot.lane.b32.xlu0 %v1772_v45, %s4068_s17 }
 0x4de   : > { %v1795_v46 = vpop.f32.mrf.mxu3 }
 0x4df   : > { %v1774_v47 = vpop.f32.mrf.mxu2 }
 0x4e7   : > { %v1899_v48 = vpop.f32.mrf.mxu2 }
 0x4e8   : > { %1926 = vrot.lane.b32.xlu0 %v1899_v48, %s4069_s24 }
 0x4ef   : > { %v1901_v49 = vpop.f32.mrf.mxu2 }
 0x508   : > { %v1673_v50 = vpop.permute.xlu0 %1672 }
 0x509   : > { %1679 = vst.msk [vmem:[#allocation3] sm:$0xff] %vm1678_vm11, %v1673_v50  ;;  %v1920_v51 = vpop.f32.mrf.mxu3 }
 0x50a   : > { %1928 = vrot.lane.b32.xlu1 %v1920_v51, %s4069_s24 }
 0x511   : > { %v1922_v52 = vpop.f32.mrf.mxu3 }
 0x521   : > { %v1675_v53 = vpop.permute.xlu2 %1674 }
 0x522   : > { %1680 = vst.msk [vmem:[#allocation3 + $0x8] sm:$0xff] %vm1678_vm11, %v1675_v53 }
 0x531   : > { %v1802_v54 = vpop.permute.xlu2 %1801 }
 0x532   : > { %1807 = vst.msk [vmem:[#allocation3 + $0x8] sm:$0xff] %vm1805_vm12, %v1802_v54 }
 0x54a   : > { %v1800_v56 = vpop.permute.xlu0 %1799 }
 0x54b   : > { %1806 = vst.msk [vmem:[#allocation3] sm:$0xff] %vm1805_vm12, %v1800_v56 }
 0x55a   : > { %v1927_v57 = vpop.permute.xlu0 %1926 }
 0x55b   : > { %1933 = vst.msk [vmem:[#allocation3] sm:$0xff] %vm1932_vm13, %v1927_v57 }
 0x562   : > { %v1935_v0 = vld [vmem:[#allocation3] sm:$0xff] }
 0x563   : > { %v1937_v62 = vpack.c.bf16 %v1935_v0, %v1935_v0 }
 0x565   : > { %v1949_v58 = vunpack.c.l.b16 %v1937_v62 }
 0x57c   : > { %v1929_v61 = vpop.permute.xlu1 %1928 }
 0x57d   : > { %1934 = vst.msk [vmem:[#allocation3 + $0x8] sm:$0xff] %vm1932_vm13, %v1929_v61  ;;  %v3558_v61 = vld [vmem:[%s5028_s19] ss:$0 sm:$0xff] }
 0x584   : > { %v1936_v59 = vld [vmem:[#allocation3 + $0x8] sm:$0xff] }
 0x585   : > { %v1938_v63 = vpack.c.bf16 %v1936_v59, %v1936_v59 }
 0x587   : > { %v1950_v1 = vunpack.c.l.b16 %v1938_v63  ;;  %v3559_v63 = vld [vmem:[%s1081_s10] ss:$0 sm:$0xff] }
 0x589   : > { %v1951_v3 = vpack.c.b16 %v1950_v1, %v1949_v58 }
 0x58b   : > { %3303 = vmatmul.msk.bf16.vlgmr.msra.gmra.mxu0 %vm1328_vm1, %v1951_v3 }
 0x608   : > { %v1976_v6 = vpop.f32.mrf.mxu0 }
 0x609   : > { %v1977_v7 = vadd.f32 %v3557_v5, %v1976_v6 }
 0x60b   : > { %v4652_v8 = vadd.f32 %v1977_v7, %v4482_v2  ;;  %v3389_v2 = vld [vmem:[#allocation7] sm:$0xff] }
 0x60c   : > { %3325 = vmatmul.msk.bf16.vlgmr.msra.gmra.mxu2 %vm1328_vm1, %v3389_v2 }
 0x60d   : > { %v1985_v9 = vsel %vm1328_vm1, %v4652_v8, 0.0 }
 0x60e   : > { %1986 = vadd.xlane.f32.xlu2 %v1985_v9  ;;  %v3561_v9 = vld [vmem:[%s5029_s2] ss:$0 sm:$0xff] }
 0x610   : > { %v1978_v10 = vpop.f32.mrf.mxu0 }
 0x611   : > { %v1979_v11 = vadd.f32 %v3557_v5, %v1978_v10 }
 0x613   : > { %v4657_v13 = vadd.f32 %v1979_v11, %v4486_v4 }
 0x615   : > { %v1988_v14 = vsel %vm1328_vm1, %v4657_v13, 0.0 }
 0x616   : > { %1989 = vadd.xlane.f32.xlu0 %v1988_v14 }
 0x681   : > { %v1987_v17 = vpop.xlane.xlu2 %1986 }
 0x682   : > { %v1991_v18 = vmul.f32 %v1987_v17, %v4490_v12 }
 0x684   : > { %v1993_v4 = vsub.f32 %v4652_v8, %v1991_v18 }
 0x686   : > { %v1995_v19 = vmul.f32 %v1993_v4, %v1993_v4 }
 0x688   : > { %v1997_v20 = vsel %vm1328_vm1, %v1995_v19, 0.0 }
 0x689   : > { %v1990_v21 = vpop.xlane.xlu0 %1989  ;;  %1998 = vadd.xlane.f32.xlu1 %v1997_v20 }
 0x68a   : > { %v1992_v22 = vmul.f32 %v1990_v21, %v4490_v12 }
 0x68c   : > { %v1994_v23 = vsub.f32 %v4657_v13, %v1992_v22 }
 0x68e   : > { %v1996_v24 = vmul.f32 %v1994_v23, %v1994_v23 }
 0x68f   : > { %v2114_v32 = vpop.f32.mrf.mxu2 }
 0x690   : > { %v2000_v25 = vsel %vm1328_vm1, %v1996_v24, 0.0  ;;  %v2115_v35 = vadd.f32 %v3560_v31, %v2114_v32  ;;  %v4728_v32 = vld [vmem:[#allocation10] sm:$0xff] }
 0x691   : > { %2001 = vadd.xlane.f32.xlu2 %v2000_v25 }
 0x692   : > { %v2119_v38 = vpack.c.bf16 %v2115_v35, %v2115_v35 }
 0x694   : > { %v2129_v40 = vsel %vm1437_vm9, %v2119_v38, 0  ;;  %v2192_v41 = vunpack.c.l.b16 %v2119_v38 }
 0x695   : > { %2138 = vmatpush.bf16.xpose.msrb.mxu3 %v2129_v40 }
 0x696   : > { %v4682_v43 = vpack.c.b16 %v2192_v41, %v2192_v41 }
 0x697   : > { %v2116_v44 = vpop.f32.mrf.mxu2 }
 0x698   : > { %v2117_v46 = vadd.f32 %v3560_v31, %v2116_v44  ;;  %2246 = vrot.lane.b32.xlu0 %v4682_v43, %s4061_s8 }
 0x69a   : > { %v2120_v48 = vpack.c.bf16 %v2117_v46, %v2117_v46 }
 0x69c   : > { %v2148_v52 = vsel %vm1437_vm9, %v2120_v48, 0  ;;  %v2216_v53 = vunpack.c.l.b16 %v2120_v48 }
 0x69d   : > { %2157 = vmatpush.bf16.xpose.msrb.mxu0 %v2148_v52 }
 0x69e   : > { %v4687_v55 = vpack.c.b16 %v2216_v53, %v2216_v53 }
 0x6a9   : > { %2272 = vrot.lane.b32.xlu2 %v4687_v55, %s4061_s8 }
 0x6b1   : > { %2375 = vrot.lane.b32.xlu2 %v4682_v43, %s4059_s21 }
 0x6fc   : > { %v1999_v27 = vpop.xlane.xlu1 %1998 }
 0x6fd   : > { %v2003_v28 = vmul.f32 %v1999_v27, %v4490_v12 }
 0x6ff   : > { %v2005_v29 = vadd.f32 1e-05, %v2003_v28 }
 0x701   : > { %3605 = vrsqrt.f32 %v2005_v29  ;;  %vm2013_vm15 = vweird.f32 %v2005_v29 }
 0x704   : > { %v2002_v33 = vpop.xlane.xlu2 %2001 }
 0x705   : > { %v2004_v34 = vmul.f32 %v2002_v33, %v4490_v12 }
 0x707   : > { %v3606_v36 = vpop.eup %3605  ;;  %v2006_v37 = vadd.f32 1e-05, %v2004_v34 }
 0x708   : > { %v2008_v39 = vmul.f32 %v3606_v36, %v2005_v29  ;;  %vm2014_vm14 = vweird.f32 %v3606_v36 }
 0x709   : > { %3607 = vrsqrt.f32 %v2006_v37  ;;  %vm2015_vm0 = vmor %vm2013_vm15, %vm2014_vm14  ;;  %vm2023_vm3 = vweird.f32 %v2006_v37 }
 0x70a   : > { %v2009_v42 = vmul.f32 %v3606_v36, %v2008_v39  ;;  %v2247_v21 = vpop.permute.xlu0 %2246 }
 0x70c   : > { %v2010_v45 = vmul.f32 0.5, %v2009_v42  ;;  %v2273_v20 = vpop.permute.xlu2 %2272 }
 0x70d   : > { %v2278_v22 = vsel %vm1437_vm9, %v2273_v20, 0 }
 0x70e   : > { %v2011_v47 = vsub.f32 1.5, %v2010_v45  ;;  %2287 = vmatpush.bf16.xpose.msra.mxu0 %v2278_v22 }
 0x70f   : > { %v3608_v49 = vpop.eup %3607 }
 0x710   : > { %v2012_v50 = vmul.f32 %v3606_v36, %v2011_v47  ;;  %v2018_v51 = vmul.f32 %v3608_v49, %v2006_v37  ;;  %vm2024_vm2 = vweird.f32 %v3608_v49 }
 0x711   : > { %vm2025_vm4 = vmor %vm2023_vm3, %vm2024_vm2 }
 0x712   : > { %v2019_v54 = vmul.f32 %v3608_v49, %v2018_v51  ;;  %v2016_v56 = vsel %vm2015_vm0, %v3606_v36, %v2012_v50  ;;  %v4730_v36 = vld [vmem:[#allocation10 + $0x8] sm:$0xff] }
 0x713   : > { %v2027_v0 = vmul.f32 %v2016_v56, %v1993_v4 }
 0x714   : > { %v2020_v57 = vmul.f32 0.5, %v2019_v54  ;;  %v2376_v24 = vpop.permute.xlu2 %2375 }
 0x715   : > { %v2032_v58 = vmul.f32 %v3558_v61, %v2027_v0  ;;  %v2381_v25 = vsel %vm1437_vm9, %v2376_v24, 0 }
 0x716   : > { %v2021_v60 = vsub.f32 1.5, %v2020_v57 }
 0x717   : > { %v2037_v5 = vadd.f32 %v3559_v63, %v2032_v58 }
 0x718   : > { %v2022_v62 = vmul.f32 %v3608_v49, %v2021_v60 }
 0x71a   : > { %v2026_v59 = vsel %vm2025_vm4, %v3608_v49, %v2022_v62 }
 0x71b   : > { %v2028_v1 = vmul.f32 %v2026_v59, %v1994_v23  ;;  %v2252_v23 = vsel %vm1437_vm9, %v2247_v21, 0 }
 0x71c   : > { %2261 = vmatpush.bf16.xpose.msra.mxu3 %v2252_v23 }
 0x71d   : > { %v2033_v3 = vmul.f32 %v3558_v61, %v2028_v1 }
 0x71f   : > { %v2038_v6 = vadd.f32 %v3559_v63, %v2033_v3 }
 0x721   : > { %v2039_v7 = vpack.c.bf16 %v2038_v6, %v2037_v5 }
 0x723   : > { %3312 = vmatmul.msk.bf16.vlgmr.msra.gmra.mxu1 %vm1328_vm1, %v2039_v7 }
 0x7a0   : > { %v2072_v10 = vpop.f32.mrf.mxu1 }
 0x7a1   : > { %v2073_v11 = vadd.f32 %v3561_v9, %v2072_v10 }
 0x7a3   : > { %v2123_v14 = vpack.c.bf16 %v2073_v11, %v2073_v11 }
 0x7a5   : > { %v2242_v15 = vunpack.c.l.b16 %v2123_v14  ;;  %3326 = vmatmul.msk.bf16.vlgmr.msrb.gmra.mxu3 %vm1437_vm9, %v2123_v14 }
 0x7a6   : > { %2390 = vmatpush.bf16.xpose.msrb.mxu3 %v2381_v25 }
 0x7a7   : > { %v2243_v16 = vpack.c.b16 %v2242_v15, %v2242_v15 }
 0x7a8   : > { %v2074_v2 = vpop.f32.mrf.mxu1 }
 0x7a9   : > { %v2075_v17 = vadd.f32 %v3561_v9, %v2074_v2  ;;  %2373 = vrot.lane.b32.xlu2 %v2243_v16, %s4059_s21  ;;  %2244 = vrot.lane.b32.xlu1 %v2243_v16, %s4061_s8 }
 0x7ab   : > { %v2124_v18 = vpack.c.bf16 %v2075_v17, %v2075_v17 }
 0x7ad   : > { %v2268_v4 = vunpack.c.l.b16 %v2124_v18  ;;  %3327 = vmatmul.msk.bf16.vlgmr.msrb.gmra.mxu0 %vm1437_vm9, %v2124_v18 }
 0x7af   : > { %v2269_v19 = vpack.c.b16 %v2268_v4, %v2268_v4 }
 0x7b1   : > { %2270 = vrot.lane.b32.xlu0 %v2269_v19, %s4061_s8  ;;  %2501 = vrot.lane.b32.xlu2 %v4682_v43, %s4062_s27  ;;  %s5034_s8 = sld [smem:[#allocation51_spill]] }
 0x7b2   : > { %2524 = vrot.lane.b32.xlu1 %v4687_v55, %s4062_s27 }
 0x7b9   : > { %2398 = vrot.lane.b32.xlu0 %v4687_v55, %s4059_s21  ;;  %2522 = vrot.lane.b32.xlu2 %v2269_v19, %s4062_s27 }
 0x7c1   : > { %2396 = vrot.lane.b32.xlu0 %v2269_v19, %s4059_s21 }
 0x7c9   : > { %2499 = vrot.lane.b32.xlu0 %v2243_v16, %s4062_s27  ;;  %s5035_s27 = scalar_lea.vmem %s5034_s8, %s4412_s5 }
 0x7d1   : > { %2218 = vrot.lane.b32.xlu0 %v4687_v55, %s4057_s23 }
 0x803   : > { %v2374_v26 = vpop.permute.xlu2 %2373 }
 0x80b   : > { %v2502_v27 = vpop.permute.xlu2 %2501 }
 0x80c   : > { %v2507_v29 = vsel %vm1437_vm9, %v2502_v27, 0 }
 0x813   : > { %v2523_v50 = vpop.permute.xlu2 %2522 }
 0x81b   : > { %v2245_v28 = vpop.permute.xlu1 %2244 }
 0x81c   : > { %3330 = vmatmul.msk.bf16.vlgmr.msra.gmra.mxu3 %vm1437_vm9, %v2245_v28 }
 0x81d   : > { %2516 = vmatpush.bf16.xpose.msra.mxu3 %v2507_v29 }
 0x823   : > { %v2271_v30 = vpop.permute.xlu0 %2270 }
 0x824   : > { %3331 = vmatmul.msk.bf16.vlgmr.msra.gmra.mxu0 %vm1437_vm9, %v2271_v30  ;;  %v2525_v34 = vpop.permute.xlu1 %2524 }
 0x825   : > { %v2530_v41 = vsel %vm1437_vm9, %v2525_v34, 0 }
 0x828   : > { %v2140_v31 = vpop.f32.mrf.mxu3 }
 0x829   : > { %v2163_v33 = vmul.f32 0.35355338, %v2140_v31 }
 0x82a   : > { %v2159_v35 = vpop.f32.mrf.mxu0 }
 0x82b   : > { %v2164_v37 = vmul.f32 0.35355338, %v2159_v35  ;;  %v2399_v38 = vpop.permute.xlu0 %2398  ;;  %v2165_v39 = vadd.f32 %v2163_v33, %v4728_v32 }
 0x82c   : > { %v2404_v40 = vsel %vm1437_vm9, %v2399_v38, 0  ;;  %3334 = vmatmul.msk.bf16.vlgmr.msrb.gmra.mxu3 %vm1437_vm9, %v2374_v26 }
 0x82d   : > { %2413 = vmatpush.bf16.xpose.msrb.mxu0 %v2404_v40  ;;  %v2167_v42 = vsel %vm1437_vm9, %v2165_v39, -inf  ;;  %v2166_v44 = vadd.f32 %v2164_v37, %v4730_v36 }
 0x82e   : > { %2168 = vmax.xlane.f32.xlu0 %v2167_v42 }
 0x82f   : > { %v2170_v45 = vsel %vm1437_vm9, %v2166_v44, -inf }
 0x830   : > { %2171 = vmax.xlane.f32.xlu1 %v2170_v45  ;;  %v2142_v46 = vpop.f32.mrf.mxu3 }
 0x832   : > { %v2161_v47 = vpop.f32.mrf.mxu0 }
 0x833   : > { %v2397_v48 = vpop.permute.xlu0 %2396 }
 0x834   : > { %3335 = vmatmul.msk.bf16.vlgmr.msrb.gmra.mxu0 %vm1437_vm9, %v2397_v48 }
 0x835   : > { %2539 = vmatpush.bf16.xpose.msra.mxu0 %v2530_v41 }
 0x83b   : > { %v2500_v49 = vpop.permute.xlu0 %2499 }
 0x83c   : > { %3338 = vmatmul.msk.bf16.vlgmr.msra.gmra.mxu3 %vm1437_vm9, %v2500_v49 }
 0x843   : > { %v2219_v51 = vpop.permute.xlu0 %2218 }
 0x844   : > { %v2224_v52 = vsel %vm1514_vm10, %v2219_v51, 0  ;;  %3339 = vmatmul.msk.bf16.vlgmr.msra.gmra.mxu0 %vm1437_vm9, %v2523_v50 }
 0x845   : > { %2233 = vmatpush.bf16.msrb.mxu2 %v2224_v52 }
 0x89f   : > { %v2263_v53 = vpop.f32.mrf.mxu3 }
 0x8a0   : > { %v2293_v54 = vmul.f32 0.35355338, %v2263_v53 }
 0x8a1   : > { %v2169_v56 = vpop.xlane.xlu0 %2168  ;;  %v2289_v57 = vpop.f32.mrf.mxu0 }
 0x8a2   : > { %v2173_v60 = vsub.f32 %v2165_v39, %v2169_v56  ;;  %v2294_v61 = vmul.f32 0.35355338, %v2289_v57  ;;  %v2295_v0 = vadd.f32 %v2293_v54, %v4728_v32 }
 0x8a3   : > { %v2172_v62 = vpop.xlane.xlu1 %2171 }
 0x8a4   : > { %v2175_v59 = vmul.f32 1.442695, %v2173_v60  ;;  %v2174_v63 = vsub.f32 %v2166_v44, %v2172_v62  ;;  %v2297_v58 = vsel %vm1437_vm9, %v2295_v0, -inf  ;;  %v2296_v1 = vadd.f32 %v2294_v61, %v4730_v36 }
 0x8a5   : > { %2298 = vmax.xlane.f32.xlu1 %v2297_v58 }
 0x8a6   : > { %3609 = vpow2.f32 %v2175_v59  ;;  %v2177_v3 = vmul.f32 1.442695, %v2174_v63  ;;  %v2300_v5 = vsel %vm1437_vm9, %v2296_v1, -inf }
 0x8a7   : > { %v2265_v6 = vpop.f32.mrf.mxu3  ;;  %2301 = vmax.xlane.f32.xlu2 %v2300_v5 }
 0x8a8   : > { %3611 = vpow2.f32 %v2177_v3 }
 0x8a9   : > { %v2291_v7 = vpop.f32.mrf.mxu0 }
 0x8ac   : > { %v4747_v9 = vpop.eup %3609 }
 0x8ad   : > { %v2179_v10 = vsel %vm1437_vm9, %v4747_v9, 0.0 }
 0x8ae   : > { %v3612_v11 = vpop.eup %3611  ;;  %2180 = vadd.xlane.f32.xlu1 %v2179_v10 }
 0x8af   : > { %v2392_v14 = vpop.f32.mrf.mxu3  ;;  %v2182_v15 = vsel %vm1437_vm9, %v3612_v11, 0.0 }
 0x8b0   : > { %v2419_v16 = vmul.f32 0.35355338, %v2392_v14  ;;  %2183 = vadd.xlane.f32.xlu0 %v2182_v15 }
 0x8b1   : > { %v2415_v2 = vpop.f32.mrf.mxu0 }
 0x8b2   : > { %v2420_v17 = vmul.f32 0.35355338, %v2415_v2  ;;  %v2421_v18 = vadd.f32 %v2419_v16, %v4728_v32 }
 0x8b4   : > { %v2423_v4 = vsel %vm1437_vm9, %v2421_v18, -inf  ;;  %v2422_v19 = vadd.f32 %v2420_v17, %v4730_v36 }
 0x8b5   : > { %2424 = vmax.xlane.f32.xlu2 %v2423_v4 }
 0x8b6   : > { %v2426_v20 = vsel %vm1437_vm9, %v2422_v19, -inf }
 0x8b7   : > { %v2394_v21 = vpop.f32.mrf.mxu3 }
 0x8b8   : > { %2427 = vmax.xlane.f32.xlu0 %v2426_v20 }
 0x8b9   : > { %v2417_v22 = vpop.f32.mrf.mxu0 }
 0x8bf   : > { %v2518_v23 = vpop.f32.mrf.mxu3 }
 0x8c0   : > { %v2545_v24 = vmul.f32 0.35355338, %v2518_v23 }
 0x8c1   : > { %v2541_v25 = vpop.f32.mrf.mxu0 }
 0x8c2   : > { %v2547_v26 = vadd.f32 %v2545_v24, %v4728_v32  ;;  %v2546_v30 = vmul.f32 0.35355338, %v2541_v25 }
 0x8c4   : > { %v2549_v27 = vsel %vm1437_vm9, %v2547_v26, -inf  ;;  %v4767_v31 = vadd.f32 %v2546_v30, %v4730_v36 }
 0x8c5   : > { %2550 = vmax.xlane.f32.xlu2 %v2549_v27 }
 0x8c6   : > { %v2552_v32 = vsel %vm1437_vm9, %v4767_v31, -inf }
 0x8c7   : > { %2321 = vrot.lane.b32.xlu1 %v4682_v43, %s4056_s1  ;;  %v2520_v28 = vpop.f32.mrf.mxu3 }
 0x8c9   : > { %v2543_v29 = vpop.f32.mrf.mxu0 }
 0x8cc   : > { %2342 = vrot.lane.b32.xlu0 %v4687_v55, %s4056_s1 }
 0x8cf   : > { %2468 = vrot.lane.b32.xlu1 %v4687_v55, %s4058_s18 }
 0x8dd   : > { %2194 = vrot.lane.b32.xlu2 %v4682_v43, %s4057_s23  ;;  %s5030_s23 = sld [smem:[#allocation45_spill]] }
 0x8f9   : > { %2553 = vmax.xlane.f32.xlu1 %v2552_v32 }
 0x918   : > { %v2299_v33 = vpop.xlane.xlu1 %2298 }
 0x919   : > { %v2303_v34 = vsub.f32 %v2295_v0, %v2299_v33 }
 0x91a   : > { %v2302_v35 = vpop.xlane.xlu2 %2301 }
 0x91b   : > { %v2305_v37 = vmul.f32 1.442695, %v2303_v34  ;;  %v2304_v38 = vsub.f32 %v2296_v1, %v2302_v35 }
 0x91d   : > { %3613 = vpow2.f32 %v2305_v37  ;;  %v2307_v39 = vmul.f32 1.442695, %v2304_v38 }
 0x91f   : > { %3615 = vpow2.f32 %v2307_v39 }
 0x921   : > { %v2181_v54 = vpop.xlane.xlu1 %2180 }
 0x923   : > { %v4771_v40 = vpop.eup %3613  ;;  %v2184_v41 = vpop.xlane.xlu0 %2183 }
 0x924   : > { %3617 = vrcp.f32 %v2184_v41  ;;  %v2309_v36 = vsel %vm1437_vm9, %v4771_v40, 0.0 }
 0x925   : > { %2310 = vadd.xlane.f32.xlu1 %v2309_v36  ;;  %v4775_v44 = vpop.eup %3615 }
 0x926   : > { %v2312_v51 = vsel %vm1437_vm9, %v4775_v44, 0.0 }
 0x928   : > { %v2425_v42 = vpop.xlane.xlu2 %2424 }
 0x929   : > { %v2429_v45 = vsub.f32 %v2421_v18, %v2425_v42 }
 0x92a   : > { %v3618_v46 = vpop.eup %3617 }
 0x92b   : > { %v2188_v47 = vmul.f32 %v3618_v46, %v3612_v11  ;;  %v2431_v48 = vmul.f32 1.442695, %v2429_v45  ;;  %v2428_v49 = vpop.xlane.xlu0 %2427 }
 0x92c   : > { %v2430_v50 = vsub.f32 %v2422_v19, %v2428_v49 }
 0x92d   : > { %v2190_v52 = vpack.c.bf16 %v2188_v47, %v2188_v47  ;;  %3619 = vpow2.f32 %v2431_v48  ;;  %2313 = vadd.xlane.f32.xlu1 %v2312_v51 }
 0x92e   : > { %v2433_v53 = vmul.f32 1.442695, %v2430_v50 }
 0x92f   : > { %3329 = vmatmul.msk.bf16.vlgmr.msrb.gmra.mxu2 %vm1437_vm9, %v2190_v52 }
 0x930   : > { %3621 = vpow2.f32 %v2433_v53 }
 0x931   : > { %3623 = vrcp.f32 %v2181_v54 }
 0x933   : > { %v3620_v56 = vpop.eup %3619 }
 0x934   : > { %v2435_v57 = vsel %vm1437_vm9, %v3620_v56, 0.0 }
 0x935   : > { %2436 = vadd.xlane.f32.xlu2 %v2435_v57 }
 0x936   : > { %v3622_v60 = vpop.eup %3621 }
 0x937   : > { %v2438_v61 = vsel %vm1437_vm9, %v3622_v60, 0.0  ;;  %v3624_v58 = vpop.eup %3623 }
 0x938   : > { %2439 = vadd.xlane.f32.xlu0 %v2438_v61  ;;  %v2551_v0 = vpop.xlane.xlu2 %2550  ;;  %v2187_v3 = vmul.f32 %v3624_v58, %v4747_v9 }
 0x939   : > { %v2555_v62 = vsub.f32 %v2547_v26, %v2551_v0  ;;  %v2322_v59 = vpop.permute.xlu1 %2321 }
 0x93a   : > { %v2327_v11 = vsel %vm1514_vm10, %v2322_v59, 0  ;;  %v2189_v16 = vpack.c.bf16 %v2187_v3, %v2187_v3 }
 0x93b   : > { %v2557_v63 = vmul.f32 1.442695, %v2555_v62 }
 0x93d   : > { %3625 = vpow2.f32 %v2557_v63 }
 0x93e   : > { %v2343_v1 = vpop.permute.xlu0 %2342 }
 0x93f   : > { %v2348_v5 = vsel %vm1514_vm10, %v2343_v1, 0 }
 0x940   : > { %2357 = vmatpush.bf16.msra.mxu2 %v2348_v5  ;;  %v2195_v6 = vpop.permute.xlu2 %2194 }
 0x941   : > { %v2200_v7 = vsel %vm1514_vm10, %v2195_v6, 0  ;;  %v2469_v10 = vpop.permute.xlu1 %2468  ;;  %v3399_v6 = vld [vmem:[%s1101_s26 + $0x8] sm:$0xff] }
 0x942   : > { %v2474_v14 = vsel %vm1514_vm10, %v2469_v10, 0  ;;  %2209 = vmatpush.bf16.msrb.mxu1 %v2200_v7  ;;  %2663 = vmatpush.bf16.msrb.mxu3 %v3399_v6 }
 0x943   : > { %v3626_v15 = vpop.eup %3625 }
 0x944   : > { %2483 = vmatpush.bf16.msrb.mxu2 %v2474_v14  ;;  %v2561_v2 = vsel %vm1437_vm9, %v3626_v15, 0.0 }
 0x945   : > { %2562 = vadd.xlane.f32.xlu2 %v2561_v2  ;;  %3328 = vmatmul.msk.bf16.vlgmr.msrb.gmra.mxu1 %vm1437_vm9, %v2189_v16 }
 0x946   : > { %2336 = vmatpush.bf16.msra.mxu1 %v2327_v11  ;;  %2447 = vrot.lane.b32.xlu1 %v4682_v43, %s4058_s18  ;;  %v3398_v11 = vld [vmem:[%s1101_s26] sm:$0xff]  ;;  %s5031_s26 = scalar_lea.vmem %s5030_s23, %s4412_s5 }
 0x947   : > { %2664 = vmatpush.bf16.msrb.mxu3 %v3398_v11  ;;  %v3402_v11 = vld [vmem:[%s4470_s15] sm:$0xff] }
 0x94c   : > { %2594 = vrot.lane.b32.xlu0 %v4687_v55, %s4060_s12 }
 0x95d   : > { %2573 = vrot.lane.b32.xlu2 %v4682_v43, %s4060_s12 }
 0x96c   : > { %v2554_v9 = vpop.xlane.xlu1 %2553 }
 0x96d   : > { %v2556_v17 = vsub.f32 %v4767_v31, %v2554_v9 }
 0x96f   : > { %v2559_v18 = vmul.f32 1.442695, %v2556_v17 }
 0x971   : > { %3627 = vpow2.f32 %v2559_v18 }
 0x977   : > { %v3628_v4 = vpop.eup %3627 }
 0x978   : > { %v2564_v19 = vsel %vm1437_vm9, %v3628_v4, 0.0 }
 0x979   : > { %2565 = vadd.xlane.f32.xlu1 %v2564_v19 }
 0x998   : > { %v2311_v20 = vpop.xlane.xlu1 %2310 }
 0x999   : > { %3629 = vrcp.f32 %v2311_v20  ;;  %v3562_v20 = vld [vmem:[%s5031_s26] ss:$0 sm:$0xff] }
 0x99f   : > { %v3630_v21 = vpop.eup %3629 }
 0x9a0   : > { %v2317_v22 = vmul.f32 %v3630_v21, %v4771_v40  ;;  %v2314_v23 = vpop.xlane.xlu1 %2313 }
 0x9a1   : > { %3631 = vrcp.f32 %v2314_v23 }
 0x9a2   : > { %v2319_v55 = vpack.c.bf16 %v2317_v22, %v2317_v22 }
 0x9a4   : > { %3332 = vmatmul.msk.bf16.vlgmr.msra.gmra.mxu1 %vm1437_vm9, %v2319_v55 }
 0x9a7   : > { %v3632_v43 = vpop.eup %3631 }
 0x9a8   : > { %v2318_v24 = vmul.f32 %v3632_v43, %v4775_v44  ;;  %v2437_v26 = vpop.xlane.xlu2 %2436 }
 0x9aa   : > { %v2320_v25 = vpack.c.bf16 %v2318_v24, %v2318_v24 }
 0x9ab   : > { %v2440_v27 = vpop.xlane.xlu0 %2439 }
 0x9ac   : > { %3333 = vmatmul.msk.bf16.vlgmr.msra.gmra.mxu2 %vm1437_vm9, %v2320_v25  ;;  %3633 = vrcp.f32 %v2440_v27 }
 0x9ad   : > { %3635 = vrcp.f32 %v2437_v26 }
 0x9b2   : > { %v2235_v28 = vpop.f32.mrf.mxu2  ;;  %v3634_v29 = vpop.eup %3633 }
 0x9b3   : > { %2240 = vst.msk [vmem:[#allocation3 + $0x8] sm:$0xff] %vm1437_vm9, %v2235_v28  ;;  %v3636_v30 = vpop.eup %3635  ;;  %v2444_v31 = vmul.f32 %v3634_v29, %v3622_v60 }
 0x9b4   : > { %v2443_v32 = vmul.f32 %v3636_v30, %v3620_v56 }
 0x9b5   : > { %v2446_v37 = vpack.c.bf16 %v2444_v31, %v2444_v31 }
 0x9b6   : > { %v2445_v39 = vpack.c.bf16 %v2443_v32, %v2443_v32 }
 0x9b8   : > { %v2448_v33 = vpop.permute.xlu1 %2447  ;;  %v2563_v34 = vpop.xlane.xlu2 %2562 }
 0x9b9   : > { %v2453_v35 = vsel %vm1514_vm10, %v2448_v33, 0  ;;  %3637 = vrcp.f32 %v2563_v34 }
 0x9ba   : > { %v2237_v38 = vpop.f32.mrf.mxu2  ;;  %2462 = vmatpush.bf16.msrb.mxu1 %v2453_v35  ;;  %v3401_v35 = vld [vmem:[%s1120_s20 + $0x8] sm:$0xff] }
 0x9bb   : > { %2759 = vmatpush.bf16.msrb.mxu0 %v3401_v35 }
 0x9bc   : > { %3337 = vmatmul.msk.bf16.vlgmr.msrb.gmra.mxu2 %vm1437_vm9, %v2446_v37 }
 0x9bd   : > { %3336 = vmatmul.msk.bf16.vlgmr.msrb.gmra.mxu1 %vm1437_vm9, %v2445_v39 }
 0x9be   : > { %v2595_v40 = vpop.permute.xlu0 %2594 }
 0x9bf   : > { %v2600_v41 = vsel %vm1514_vm10, %v2595_v40, 0  ;;  %v3638_v45 = vpop.eup %3637  ;;  %v3400_v40 = vld [vmem:[%s1120_s20] sm:$0xff] }
 0x9c0   : > { %2609 = vmatpush.bf16.msra.mxu2 %v2600_v41  ;;  %v2574_v36 = vpop.permute.xlu2 %2573  ;;  %v2569_v46 = vmul.f32 %v3638_v45, %v3626_v15  ;;  %2760 = vmatpush.bf16.msrb.mxu0 %v3400_v40  ;;  %v3405_v41 = vld [vmem:[%s4470_s15 + $0x18] sm:$0xff] }
 0x9c1   : > { %v2579_v42 = vsel %vm1514_vm10, %v2574_v36, 0 }
 0x9c2   : > { %v2211_v44 = vpop.f32.mrf.mxu1  ;;  %2588 = vmatpush.bf16.msra.mxu1 %v2579_v42  ;;  %v2571_v48 = vpack.c.bf16 %v2569_v46, %v2569_v46 }
 0x9c3   : > { %2239 = vst.msk [vmem:[#allocation3] sm:$0xff] %vm1437_vm9, %v2211_v44 }
 0x9c6   : > { %2814 = vmatpush.bf16.msrb.mxu1 %v3405_v41 }
 0x9ca   : > { %v2213_v47 = vpop.f32.mrf.mxu1 }
 0x9cd   : > { %3340 = vmatmul.msk.bf16.vlgmr.msra.gmra.mxu1 %vm1437_vm9, %v2571_v48 }
 0x9ec   : > { %v2566_v49 = vpop.xlane.xlu1 %2565 }
 0x9ed   : > { %3639 = vrcp.f32 %v2566_v49 }
 0x9f3   : > { %v3640_v50 = vpop.eup %3639 }
 0x9f4   : > { %v2570_v51 = vmul.f32 %v3640_v50, %v3628_v4 }
 0x9f6   : > { %v2572_v52 = vpack.c.bf16 %v2570_v51, %v2570_v51 }
 0x9f8   : > { %3341 = vmatmul.msk.bf16.vlgmr.msra.gmra.mxu2 %vm1437_vm9, %v2572_v52 }
 0xa21   : > { %v2338_v53 = vpop.f32.mrf.mxu1 }
 0xa22   : > { %2365 = vrot.lane.b32.xlu0 %v2338_v53, %s4067_s0 }
 0xa29   : > { %v2340_v54 = vpop.f32.mrf.mxu1 }
 0xa2f   : > { %v2359_v56 = vpop.f32.mrf.mxu2 }
 0xa30   : > { %2367 = vrot.lane.b32.xlu0 %v2359_v56, %s4067_s0 }
 0xa37   : > { %v2361_v57 = vpop.f32.mrf.mxu2 }
 0xa3a   : > { %v2464_v60 = vpop.f32.mrf.mxu1 }
 0xa3b   : > { %2491 = vrot.lane.b32.xlu2 %v2464_v60, %s4068_s17  ;;  %v3563_v60 = vld [vmem:[%s1299_s7] ss:$0 sm:$0xff] }
 0xa3f   : > { %v2485_v61 = vpop.f32.mrf.mxu2 }
 0xa40   : > { %2493 = vrot.lane.b32.xlu0 %v2485_v61, %s4068_s17 }
 0xa42   : > { %v2466_v0 = vpop.f32.mrf.mxu1 }
 0xa47   : > { %v2487_v62 = vpop.f32.mrf.mxu2 }
 0xa4a   : > { %v2590_v59 = vpop.f32.mrf.mxu1 }
 0xa4b   : > { %2617 = vrot.lane.b32.xlu1 %v2590_v59, %s4069_s24  ;;  %v3564_v59 = vld [vmem:[%s1110_s6] ss:$0 sm:$0xff] }
 0xa52   : > { %v2592_v63 = vpop.f32.mrf.mxu1 }
 0xa7b   : > { %v2611_v58 = vpop.f32.mrf.mxu2 }
 0xa7c   : > { %2619 = vrot.lane.b32.xlu2 %v2611_v58, %s4069_s24  ;;  %s5037_s24 = sld [smem:[#allocation53_spill]] (!%p3377_p3) }
 0xa83   : > { %v2613_v1 = vpop.f32.mrf.mxu2 }
 0xa94   : > { %v2366_v3 = vpop.permute.xlu0 %2365 }
 0xa95   : > { %2371 = vst.msk [vmem:[#allocation3] sm:$0xff] %vm1678_vm11, %v2366_v3  ;;  %v2492_v5 = vpop.permute.xlu2 %2491 }
 0xa96   : > { %2497 = vst.msk [vmem:[#allocation3] sm:$0xff] %vm1805_vm12, %v2492_v5 }
 0xaa2   : > { %v2368_v7 = vpop.permute.xlu0 %2367 }
 0xaa3   : > { %2372 = vst.msk [vmem:[#allocation3 + $0x8] sm:$0xff] %vm1678_vm11, %v2368_v7  ;;  %v3404_v7 = vld [vmem:[%s4470_s15 + $0x10] sm:$0xff]  ;;  %vm2806_vm11 = vcmask 523264  }
 0xaa4   : > { %2815 = vmatpush.bf16.msrb.mxu1 %v3404_v7 }
 0xab2   : > { %v2494_v10 = vpop.permute.xlu0 %2493 }
 0xab3   : > { %2498 = vst.msk [vmem:[#allocation3 + $0x8] sm:$0xff] %vm1805_vm12, %v2494_v10  ;;  %v3403_v10 = vld [vmem:[%s4470_s15 + $0x8] sm:$0xff]  ;;  %s5036_s15 = sld [smem:[#allocation52_spill]] (!%p3377_p3) }
 0xab4   : > { %2816 = vmatpush.bf16.msrb.mxu1 %v3403_v10 }
 0xab8   : > { %2817 = vmatpush.bf16.msrb.mxu1 %v3402_v11 }
 0xabd   : > { %v2618_v14 = vpop.permute.xlu1 %2617 }
 0xabe   : > { %2623 = vst.msk [vmem:[#allocation3] sm:$0xff] %vm1932_vm13, %v2618_v14 }
 0xac5   : > { %v2625_v16 = vld [vmem:[#allocation3] sm:$0xff] }
 0xac6   : > { %v2627_v2 = vpack.c.bf16 %v2625_v16, %v2625_v16 }
 0xac8   : > { %v2639_v18 = vunpack.c.l.b16 %v2627_v2 }
 0xad6   : > { %v2620_v15 = vpop.permute.xlu2 %2619 }
 0xad7   : > { %2624 = vst.msk [vmem:[#allocation3 + $0x8] sm:$0xff] %vm1932_vm13, %v2620_v15  ;;  %v3565_v15 = vld [vmem:[%s1302_s9] ss:$0 sm:$0xff] }
 0xade   : > { %v2626_v9 = vld [vmem:[#allocation3 + $0x8] sm:$0xff] }
 0xadf   : > { %v2628_v17 = vpack.c.bf16 %v2626_v9, %v2626_v9 }
 0xae1   : > { %v2640_v4 = vunpack.c.l.b16 %v2628_v17 }
 0xae3   : > { %v2641_v19 = vpack.c.b16 %v2640_v4, %v2639_v18 }
 0xae5   : > { %3350 = vmatmul.msk.bf16.vlgmr.msrb.gmra.mxu3 %vm1328_vm1, %v2641_v19  ;;  %v3566_v19 = vld [vmem:[%s5035_s27] ss:$0 sm:$0xff] }
 0xb68   : > { %v2666_v21 = vpop.f32.mrf.mxu3 }
 0xb69   : > { %v2667_v22 = vadd.f32 %v3562_v20, %v2666_v21 }
 0xb6b   : > { %v4833_v23 = vadd.f32 %v2667_v22, %v4652_v8 }
 0xb6d   : > { %v2675_v55 = vsel %vm1328_vm1, %v4833_v23, 0.0 }
 0xb6e   : > { %2676 = vadd.xlane.f32.xlu0 %v2675_v55 }
 0xb70   : > { %v2668_v43 = vpop.f32.mrf.mxu3 }
 0xb71   : > { %v2669_v24 = vadd.f32 %v3562_v20, %v2668_v43 }
 0xb73   : > { %v4838_v25 = vadd.f32 %v2669_v24, %v4657_v13 }
 0xb75   : > { %v2678_v26 = vsel %vm1328_vm1, %v4838_v25, 0.0 }
 0xb76   : > { %2679 = vadd.xlane.f32.xlu2 %v2678_v26 }
 0xbe1   : > { %v2677_v27 = vpop.xlane.xlu0 %2676 }
 0xbe2   : > { %v2681_v28 = vmul.f32 %v2677_v27, %v4490_v12 }
 0xbe4   : > { %v2683_v8 = vsub.f32 %v4833_v23, %v2681_v28 }
 0xbe6   : > { %v2685_v29 = vmul.f32 %v2683_v8, %v2683_v8 }
 0xbe8   : > { %v2687_v30 = vsel %vm1328_vm1, %v2685_v29, 0.0 }
 0xbe9   : > { %v2680_v31 = vpop.xlane.xlu2 %2679  ;;  %2688 = vadd.xlane.f32.xlu1 %v2687_v30 }
 0xbea   : > { %v2682_v32 = vmul.f32 %v2680_v31, %v4490_v12 }
 0xbec   : > { %v2684_v13 = vsub.f32 %v4838_v25, %v2682_v32 }
 0xbee   : > { %v2686_v33 = vmul.f32 %v2684_v13, %v2684_v13 }
 0xbf0   : > { %v2690_v34 = vsel %vm1328_vm1, %v2686_v33, 0.0 }
 0xbf1   : > { %2691 = vadd.xlane.f32.xlu0 %v2690_v34 }
 0xc5c   : > { %v2689_v37 = vpop.xlane.xlu1 %2688 }
 0xc5d   : > { %v2693_v38 = vmul.f32 %v2689_v37, %v4490_v12 }
 0xc5f   : > { %v2695_v39 = vadd.f32 1e-05, %v2693_v38 }
 0xc61   : > { %3641 = vrsqrt.f32 %v2695_v39  ;;  %vm2703_vm6 = vweird.f32 %v2695_v39 }
 0xc64   : > { %v2692_v36 = vpop.xlane.xlu0 %2691 }
 0xc65   : > { %v2694_v42 = vmul.f32 %v2692_v36, %v4490_v12 }
 0xc67   : > { %v3642_v44 = vpop.eup %3641  ;;  %v2696_v45 = vadd.f32 1e-05, %v2694_v42 }
 0xc68   : > { %v2698_v46 = vmul.f32 %v3642_v44, %v2695_v39  ;;  %vm2704_vm5 = vweird.f32 %v3642_v44 }
 0xc69   : > { %3643 = vrsqrt.f32 %v2696_v45  ;;  %vm2705_vm7 = vmor %vm2703_vm6, %vm2704_vm5  ;;  %vm2713_vm9 = vweird.f32 %v2696_v45 }
 0xc6a   : > { %v2699_v47 = vmul.f32 %v3642_v44, %v2698_v46 }
 0xc6c   : > { %v2700_v48 = vmul.f32 0.5, %v2699_v47 }
 0xc6e   : > { %v2701_v49 = vsub.f32 1.5, %v2700_v48 }
 0xc6f   : > { %v3644_v50 = vpop.eup %3643 }
 0xc70   : > { %v2702_v51 = vmul.f32 %v3642_v44, %v2701_v49  ;;  %v2708_v52 = vmul.f32 %v3644_v50, %v2696_v45  ;;  %vm2714_vm8 = vweird.f32 %v3644_v50 }
 0xc71   : > { %vm2715_vm10 = vmor %vm2713_vm9, %vm2714_vm8 }
 0xc72   : > { %v2709_v53 = vmul.f32 %v3644_v50, %v2708_v52  ;;  %v2706_v54 = vsel %vm2705_vm7, %v3642_v44, %v2702_v51 }
 0xc73   : > { %v2717_v61 = vmul.f32 %v2706_v54, %v2683_v8 }
 0xc74   : > { %v2710_v56 = vmul.f32 0.5, %v2709_v53 }
 0xc75   : > { %v2722_v63 = vmul.f32 %v3563_v60, %v2717_v61 }
 0xc76   : > { %v2711_v57 = vsub.f32 1.5, %v2710_v56 }
 0xc77   : > { %v2727_v3 = vadd.f32 %v3564_v59, %v2722_v63 }
 0xc78   : > { %v2712_v0 = vmul.f32 %v3644_v50, %v2711_v57 }
 0xc7a   : > { %v2716_v62 = vsel %vm2715_vm10, %v3644_v50, %v2712_v0 }
 0xc7b   : > { %v2718_v58 = vmul.f32 %v2716_v62, %v2684_v13 }
 0xc7d   : > { %v2723_v1 = vmul.f32 %v3563_v60, %v2718_v58 }
 0xc7f   : > { %v2728_v5 = vadd.f32 %v3564_v59, %v2723_v1 }
 0xc81   : > { %v2729_v6 = vpack.c.bf16 %v2728_v5, %v2727_v3 }
 0xc83   : > { %3359 = vmatmul.msk.bf16.vlgmr.msrb.gmra.mxu0 %vm1328_vm1, %v2729_v6 }
 0xd00   : > { %v2762_v14 = vpop.f32.mrf.mxu0 }
 0xd01   : > { %v2763_v16 = vadd.f32 %v3565_v15, %v2762_v14 }
 0xd03   : > { %v2767_v17 = vmax.f32 %v2763_v16, 0.0 }
 0xd08   : > { %v2764_v2 = vpop.f32.mrf.mxu0 }
 0xd09   : > { %v2765_v9 = vadd.f32 %v3565_v15, %v2764_v2 }
 0xd0b   : > { %v2768_v18 = vmax.f32 %v2765_v9, 0.0 }
 0xd0d   : > { %v2769_v4 = vpack.c.bf16 %v2768_v18, %v2767_v17 }
 0xd0f   : > { %3376 = vmatmul.msk.bf16.vlgmr.msrb.gmra.mxu1 %vm2806_vm11, %v2769_v4 }
 0xd8c   : > { %v2819_v20 = vpop.f32.mrf.mxu1 }
 0xd8d   : > { %v2820_v21 = vadd.f32 %v3566_v19, %v2819_v20 }
 0xd8f   : > { %v2824_v22 = vadd.f32 %v2820_v21, %v4833_v23 }
 0xd91   : > { %2826 = vst.msk [vmem:[#allocation2] sm:$0xff] %vm1328_vm1, %v2824_v22 }
 0xd94   : > { %v2821_v55 = vpop.f32.mrf.mxu1 }
 0xd95   : > { %v2822_v43 = vadd.f32 %v3566_v19, %v2821_v55  ;;  %2831 = sbr.rel (%p3377_p3) target bundleno = 3759 (0xeaf), region = 172 }
 0xd97   : > { %v2825_v24 = vadd.f32 %v2822_v43, %v4838_v25 }
 0xd99   : > { %2827 = vst.msk [vmem:[#allocation2 + $0x8] sm:$0xff] %vm1328_vm1, %v2825_v24 }
 0xd9a   : > { %v2834_v26 = vsel %vm1328_vm1, %v2824_v22, 0.0  ;;  %v2837_v27 = vsel %vm1328_vm1, %v2825_v24, 0.0  ;;  %v3645_v49 = vld [vmem:[%s5036_s15] ss:$0 sm:$0xff] }
 0xd9b   : > { %2835 = vadd.xlane.f32.xlu0 %v2834_v26  ;;  %v3646_v52 = vld [vmem:[%s5037_s24] ss:$0 sm:$0xff] }
 0xda3   : > { %2838 = vadd.xlane.f32.xlu0 %v2837_v27 }
 0xe0e   : > { %v2836_v28 = vpop.xlane.xlu0 %2835 }
 0xe0f   : > { %v2840_v23 = vmul.f32 %v2836_v28, %v4490_v12 }
 0xe11   : > { %v2842_v8 = vsub.f32 %v2824_v22, %v2840_v23 }
 0xe13   : > { %v2844_v29 = vmul.f32 %v2842_v8, %v2842_v8 }
 0xe15   : > { %v2846_v30 = vsel %vm1328_vm1, %v2844_v29, 0.0 }
 0xe16   : > { %2847 = vadd.xlane.f32.xlu1 %v2846_v30  ;;  %v2839_v25 = vpop.xlane.xlu0 %2838 }
 0xe17   : > { %v2841_v31 = vmul.f32 %v2839_v25, %v4490_v12 }
 0xe19   : > { %v2843_v32 = vsub.f32 %v2825_v24, %v2841_v31 }
 0xe1b   : > { %v2845_v13 = vmul.f32 %v2843_v32, %v2843_v32 }
 0xe1d   : > { %v2849_v33 = vsel %vm1328_vm1, %v2845_v13, 0.0 }
 0xe1e   : > { %2850 = vadd.xlane.f32.xlu1 %v2849_v33 }
 0xe89   : > { %v2848_v34 = vpop.xlane.xlu1 %2847 }
 0xe8a   : > { %v2852_v35 = vmul.f32 %v2848_v34, %v4490_v12 }
 0xe8c   : > { %v2854_v37 = vadd.f32 1e-05, %v2852_v35 }
 0xe8e   : > { %3647 = vrsqrt.f32 %v2854_v37  ;;  %vm2862_vm13 = vweird.f32 %v2854_v37 }
 0xe91   : > { %v2851_v38 = vpop.xlane.xlu1 %2850 }
 0xe92   : > { %v2853_v39 = vmul.f32 %v2851_v38, %v4490_v12 }
 0xe94   : > { %v3648_v40 = vpop.eup %3647  ;;  %v2855_v41 = vadd.f32 1e-05, %v2853_v39 }
 0xe95   : > { %v2857_v36 = vmul.f32 %v3648_v40, %v2854_v37  ;;  %vm2863_vm12 = vweird.f32 %v3648_v40 }
 0xe96   : > { %3649 = vrsqrt.f32 %v2855_v41  ;;  %vm2864_vm14 = vmor %vm2862_vm13, %vm2863_vm12  ;;  %vm2872_vm0 = vweird.f32 %v2855_v41 }
 0xe97   : > { %v2858_v42 = vmul.f32 %v3648_v40, %v2857_v36 }
 0xe99   : > { %v2859_v44 = vmul.f32 0.5, %v2858_v42 }
 0xe9b   : > { %v2860_v45 = vsub.f32 1.5, %v2859_v44 }
 0xe9c   : > { %v3650_v46 = vpop.eup %3649 }
 0xe9d   : > { %v2861_v47 = vmul.f32 %v3648_v40, %v2860_v45  ;;  %v2867_v48 = vmul.f32 %v3650_v46, %v2855_v41  ;;  %vm2873_vm15 = vweird.f32 %v3650_v46 }
 0xe9e   : > { %vm2874_vm2 = vmor %vm2872_vm0, %vm2873_vm15 }
 0xe9f   : > { %v2865_v50 = vsel %vm2864_vm14, %v3648_v40, %v2861_v47  ;;  %v2868_v51 = vmul.f32 %v3650_v46, %v2867_v48 }
 0xea0   : > { %v2876_v12 = vmul.f32 %v2865_v50, %v2842_v8 }
 0xea1   : > { %v2869_v53 = vmul.f32 0.5, %v2868_v51 }
 0xea2   : > { %v2881_v54 = vmul.f32 %v3645_v49, %v2876_v12 }
 0xea3   : > { %v2870_v56 = vsub.f32 1.5, %v2869_v53 }
 0xea4   : > { %v2886_v57 = vadd.f32 %v3646_v52, %v2881_v54 }
 0xea5   : > { %v2871_v60 = vmul.f32 %v3650_v46, %v2870_v56 }
 0xea6   : > { %2888 = vst.msk [vmem:[#allocation18] sm:$0xff] %vm1328_vm1, %v2886_v57 }
 0xea7   : > { %v2875_v61 = vsel %vm2874_vm2, %v3650_v46, %v2871_v60 }
 0xea8   : > { %v2877_v0 = vmul.f32 %v2875_v61, %v2843_v32 }
 0xeaa   : > { %v2882_v62 = vmul.f32 %v3645_v49, %v2877_v0 }
 0xeac   : > { %v2887_v59 = vadd.f32 %v3646_v52, %v2882_v62 }
 0xeae   : > { %2889 = vst.msk [vmem:[#allocation18 + $0x8] sm:$0xff] %vm1328_vm1, %v2887_v59 }
 0xeaf PF: > { %p3479_p4 = scmp.eq.s32.totalorder %s4236_s29, 1  ;;  %s5038_s16 = sld [smem:[#allocation54_spill]] }
 0xeb0   : > { %s4070_s11 = smov [#allocation18]   ;;  %s4071_s2 = smov 128  }
 0xeb1   : > { %s2898_s30 = sshll.u32 %s4070_s11, 4  ;;  %s2899_s30 = int_to_ptr.vmem [resolvable:$true] %s2898_s30 }
 0xeb5   : > { %s2900_s19 = sshll.u32 %s5038_s16, 4  ;;  %s2901_s19 = int_to_ptr.hbm [resolvable:$true] %s2900_s19 }
 0xeb6   : > { %3435 = dma.vmem_to_hbm [thread:$0]  (%p3479_p4), %s2899_s30, 256, %s2901_s19, [#allocation6], %s4071_s2, %s4071_s2, %s4067_s0  }
 0xeb7   : > { %4020 = dma.done.wait (%p3479_p4), [#allocation6], 256  }
 0xeb8   : > { %4022 = vsyncadd (%p3479_p4), [#allocation6], 4294967040 }
 0xeb9 PF: > { %s5039_s10 = sld [smem:[#allocation26_spill]]  ;;  %s5044_s27 = smov %s4029_s3 }
 0xeba   : > { %s5040_s1 = sld [smem:[#allocation24_spill]] }
 0xebb   : > { %s5041_s7 = sld [smem:[#allocation28_spill]] }
 0xebc   : > { %s5042_s28 = sld [smem:[#allocation25_spill]] }
 0xebd   : > { %s5043_s8 = sld [smem:[#allocation27_spill]] }
 0xebf   : > { %s40_s4 = sadd.s32 1, %s5039_s10  }
 0xec0   : > { %p37_p5 = scmp.ge.s32.totalorder %s40_s4, 4   ;;  %s5045_s3 = smov %s5040_s1 }
 0xec2   :  { %39 = sbr.rel (!%p37_p5) target bundleno = 33 (0x21), region = 286 }
 0xec7   :  { %2917 = vsyncpa [#allocation5], 1 }
 0xec8   :  { %2919 = vsyncpa [#allocation5 + $0x1], 1 }
 0xec9   :  { %2920 = vsyncpa [#allocation8], 1 }
 0xeca   :  { %2921 = vsyncpa [#allocation11], 1 }
 0xecb   :  { %2922 = vsyncpa [#allocation6], 1 }
 0xecc   :  { %2924 = vsyncpa [#allocation6 + $0x1], 1 }

</bundles_post_ra>
